<compile_context>
chip_gen: v7x
topology: tpu7x:2x2x1
jax: 0.10.0
libtpu: 0.0.40
codegen_flags: <defaults>
</compile_context>

<pallas_src>
import functools
import numpy as np
import jax
import jax.numpy as jnp
from jax import lax
from jax.experimental import pallas as pl
from jax.experimental.pallas import tpu as pltpu

NP = 8  # node dim padded to a full sublane tile (makes the sublane roll exact)


# ----------------------------------------------------------------------------
# Host-side preparation shared by kernel and reference.
# ----------------------------------------------------------------------------
def _reorder_rzn_to_nrz(w, H):
    # GRU blocks come as [r | z | n] on the last axis; put n first so it is
    # lane-aligned with h (lanes 0:H) and r|z pack into one contiguous block.
    return jnp.concatenate(
        [w[..., 2 * H:3 * H], w[..., 0:H], w[..., H:2 * H]], axis=-1)


def prepare_inputs(x, ahat, adj, params):
    """Weight folding, gate reordering, bias pre-broadcast, bf16 casts, row pad."""
    H = params["whh_t"].shape[0]
    L = params["wl"].shape[0]
    N = x.shape[0]
    C = params["wf"].shape[1]

    # GCN aggregation folded to the host: kernel computes relu(xa @ W1 + b1).
    xa = jnp.dot(ahat, x)                                        # (N, F) f32

    # Per-layer message weight folded into the GRU input projection and fused
    # with the hidden projection:  Wcat[l] = [Wc[l] | 0 | Whh^T | 0]  (L, H, 8H).
    wc = jnp.einsum("lij,jk->lik", params["wl"], params["wih_t"])  # (L,H,3H) [r|z|n]
    wc = _reorder_rzn_to_nrz(wc, H)                                # [n|r|z]
    whh = _reorder_rzn_to_nrz(params["whh_t"], H)                  # (H,3H)  [n|r|z]
    whh_l = jnp.broadcast_to(whh[None], (L, H, 3 * H))
    zpad = jnp.zeros((L, H, H), jnp.float32)
    wcat = jnp.concatenate([wc, zpad, whh_l, zpad], axis=-1)       # (L, H, 8H)

    bih = _reorder_rzn_to_nrz(params["bih"], H)                    # (1,3H) [n|r|z]
    bhh = _reorder_rzn_to_nrz(params["bhh"], H)
    bin_b = jnp.broadcast_to(bih[:, 0:H], (NP, H))                 # b_in
    bhn_b = jnp.broadcast_to(bhh[:, 0:H], (NP, H))                 # b_hn
    brz_b = jnp.broadcast_to(bih[:, H:3 * H] + bhh[:, H:3 * H], (NP, 2 * H))

    def pad_rows(a):
        return jnp.zeros((NP,) + a.shape[1:], a.dtype).at[:a.shape[0]].set(a)

    return {
        "xa": pad_rows(xa).astype(jnp.bfloat16),                    # (NP, F)
        "adj": jnp.zeros((NP, NP), jnp.float32).at[:N, :N].set(adj),
        "w1": params["w1"].astype(jnp.bfloat16),                    # (F, H)
        "b1": jnp.broadcast_to(params["b1"], (NP, H)),              # (NP, H) f32
        "wcat": wcat.astype(jnp.bfloat16),                          # (L, H, 8H)
        "bin": bin_b, "bhn": bhn_b, "brz": brz_b,                   # f32
        "wf": params["wf"].astype(jnp.bfloat16),                    # (H, C)
        "bf": jnp.broadcast_to(params["bf"], (NP, C)),              # (NP, C) f32
    }


# ----------------------------------------------------------------------------
# Pallas kernel: whole forward pass, gridless, everything resident in VMEM.
# ----------------------------------------------------------------------------
def gnn_kernel(xa_ref, adj_ref, w1_ref, b1_ref, wcat_ref,
               bin_ref, bhn_ref, brz_ref, wf_ref, bf_ref, out_ref,
               *, use_shift):
    H = bin_ref.shape[1]
    G3 = 3 * H
    L = wcat_ref.shape[0]

    # ---- GCNConv (aggregation pre-folded host-side): h = relu(xa @ W1 + b1) ----
    h = jnp.maximum(
        jnp.dot(xa_ref[...], w1_ref[...], preferred_element_type=jnp.float32)
        + b1_ref[...], 0.0)

    # F.dropout(x, training=self.training) -> identity under inference semantics.
    # TODO(synk): training-mode dropout (pltpu.prng_seed/prng_random_bits mask)
    #             not implemented; eval-mode identity used.

    # Loop-invariant values hoisted out of the unrolled recurrence (JAX does not
    # CSE broadcasts; keep them out of the 32x-unrolled body).
    bin_b = bin_ref[...]
    bhn_b = bhn_ref[...]
    brz_b = brz_ref[...]
    if use_shift:
        # Path graph 0->1->2->3: adj @ v == shift v down one sublane, row 0 = 0.
        row_mask = (lax.broadcasted_iota(jnp.int32, (NP, G3), 0) >= 1
                    ).astype(jnp.float32)
    else:
        # Dense fallback: pre-broadcast the adjacency columns once.
        adj_cols = [jnp.broadcast_to(adj_ref[:, j:j + 1], (NP, G3))
                    for j in range(NP)]

    # ---- GatedGraphConv: L shared-GRUCell propagation steps (static unroll) ----
    for l in range(L):
        # Single fused MXU matmul per step: m = h @ [Wc_l | 0 | Whh^T | 0].
        m = jnp.dot(h.astype(jnp.bfloat16), wcat_ref[l],
                    preferred_element_type=jnp.float32)            # (NP, 8H) f32
        mh = m[:, 4 * H:4 * H + G3]            # h @ Whh^T, lane-128 aligned
        if use_shift:
            # adj @ (h @ Wc_l) as one sublane rotate of a full vreg + mask.
            ag = pltpu.roll(m[:, 0:4 * H], shift=1, axis=0)[:, 0:G3] * row_mask
        else:
            mi = m[:, 0:G3]                    # h @ Wc_l (needs aggregation)
            ag = adj_cols[0] * mi[0:1, :]
            for j in range(1, NP):
                ag = ag + adj_cols[j] * mi[j:j + 1, :]
        # GRU gate math in f32; gates ordered [n | r | z].
        s = jax.nn.sigmoid(ag[:, H:G3] + mh[:, H:G3] + brz_b)      # [r|z], 1 EUP pass
        r = s[:, 0:H]
        z = s[:, H:2 * H]
        n = jnp.tanh(ag[:, 0:H] + bin_b + r * (mh[:, 0:H] + bhn_b))
        h = n + z * (h - n)                    # == (1-z)*n + z*h

    h = jnp.maximum(h, 0.0)

    # ---- Final linear classifier (`batch` is unused in the module's forward) ----
    out_ref[...] = jnp.dot(h.astype(jnp.bfloat16), wf_ref[...],
                           preferred_element_type=jnp.float32) + bf_ref[...]


def gnn_forward(x, ahat, adj, params):
    N = x.shape[0]
    C = params["wf"].shape[1]
    p = prepare_inputs(x, ahat, adj, params)

    # Detect the static path-graph adjacency (edge_index [[0,1,2],[1,2,3]]) so the
    # per-step aggregation can be a single sublane roll; dense VPU path otherwise.
    shift = np.zeros((N, N), np.float32)
    shift[np.arange(1, N), np.arange(N - 1)] = 1.0
    use_shift = bool(np.allclose(np.asarray(adj), shift))

    args = (p["xa"], p["adj"], p["w1"], p["b1"], p["wcat"],
            p["bin"], p["bhn"], p["brz"], p["wf"], p["bf"])
    out = pl.pallas_call(
        functools.partial(gnn_kernel, use_shift=use_shift),
        out_shape=jax.ShapeDtypeStruct((NP, C), jnp.float32),
        in_specs=[pl.BlockSpec(memory_space=pltpu.MemorySpace.VMEM)] * len(args),
        out_specs=pl.BlockSpec(memory_space=pltpu.MemorySpace.VMEM),
    )(*args)
    return out[:N]


# ----------------------------------------------------------------------------
# Pure-JAX reference with identical folding / ordering / mixed precision.
# ----------------------------------------------------------------------------
def reference_forward(x, ahat, adj, params):
    N = x.shape[0]
    H = params["whh_t"].shape[0]
    G3 = 3 * H
    p = prepare_inputs(x, ahat, adj, params)
    L = p["wcat"].shape[0]

    h = jnp.maximum(
        jnp.dot(p["xa"], p["w1"], preferred_element_type=jnp.float32) + p["b1"],
        0.0)
    adj_p = p["adj"]
    for l in range(L):
        m = jnp.dot(h.astype(jnp.bfloat16), p["wcat"][l],
                    preferred_element_type=jnp.float32)
        mi = m[:, 0:G3]
        mh = m[:, 4 * H:4 * H + G3]
        ag = jnp.dot(adj_p, mi)               # exact for 0/1 adjacency
        s = jax.nn.sigmoid(ag[:, H:G3] + mh[:, H:G3] + p["brz"])
        r = s[:, 0:H]
        z = s[:, H:2 * H]
        n = jnp.tanh(ag[:, 0:H] + p["bin"] + r * (mh[:, 0:H] + p["bhn"]))
        h = n + z * (h - n)
    h = jnp.maximum(h, 0.0)
    out = jnp.dot(h.astype(jnp.bfloat16), p["wf"],
                  preferred_element_type=jnp.float32) + p["bf"]
    return out[:N]


if __name__ == "__main__":
    # ---- shapes implied by the module ----
    F_in = 9 * 128          # GCNConv input_size
    H = 32                  # hidden_size (== GatedGraphConv out_channels)
    L = H                   # GatedGraphConv(hidden_size, hidden_size) -> num_layers = 32
    C = 7                   # num_classes
    N = 4                   # nodes implied by edge_index [[0,1,2],[1,2,3]]

    edge_index = np.array([[0, 1, 2], [1, 2, 3]], dtype=np.int64)
    src, tgt = edge_index[0], edge_index[1]

    # Dense adjacency: adj[i, j] = 1 iff edge j -> i (message source j, target i).
    adj = jnp.zeros((N, N), jnp.float32).at[tgt, src].set(1.0)
    # GCN symmetric normalization with self-loops.
    a_sl = adj + jnp.eye(N, dtype=jnp.float32)
    deg = a_sl.sum(axis=1)
    dinv = jnp.where(deg > 0, 1.0 / jnp.sqrt(deg), 0.0)
    ahat = dinv[:, None] * a_sl * dinv[None, :]

    # ---- deterministic parameters ----
    key = jax.random.PRNGKey(0)
    ks = jax.random.split(key, 10)
    params = {
        "w1":    0.05 * jax.random.normal(ks[0], (F_in, H), jnp.float32),
        "b1":    0.05 * jax.random.normal(ks[1], (1, H), jnp.float32),
        "wl":    0.05 * jax.random.normal(ks[2], (L, H, H), jnp.float32),
        "wih_t": 0.05 * jax.random.normal(ks[3], (H, 3 * H), jnp.float32),
        "whh_t": 0.05 * jax.random.normal(ks[4], (H, 3 * H), jnp.float32),
        "bih":   0.05 * jax.random.normal(ks[5], (1, 3 * H), jnp.float32),
        "bhh":   0.05 * jax.random.normal(ks[6], (1, 3 * H), jnp.float32),
        "wf":    0.05 * jax.random.normal(ks[7], (H, C), jnp.float32),
        "bf":    0.05 * jax.random.normal(ks[8], (1, C), jnp.float32),
    }

    x = jax.random.normal(ks[9], (N, F_in), jnp.float32)

    out = gnn_forward(x, ahat, adj, params)
    out = jax.block_until_ready(out)

    ref = jax.block_until_ready(reference_forward(x, ahat, adj, params))
    np.testing.assert_allclose(np.asarray(out), np.asarray(ref), rtol=2e-3, atol=2e-3)

    assert out.shape == (N, C)
    print("KERNEL_OK")
</pallas_src>

<mosaic_0001>
module attributes {stable_mosaic.version = 11 : i64} {
  func.func @gnn_kernel(%arg0: memref<8x1152xbf16, #tpu.memory_space<vmem>>, %arg1: memref<8x8xf32, #tpu.memory_space<vmem>>, %arg2: memref<1152x32xbf16, #tpu.memory_space<vmem>>, %arg3: memref<8x32xf32, #tpu.memory_space<vmem>>, %arg4: memref<32x32x256xbf16, #tpu.memory_space<vmem>>, %arg5: memref<8x32xf32, #tpu.memory_space<vmem>>, %arg6: memref<8x32xf32, #tpu.memory_space<vmem>>, %arg7: memref<8x64xf32, #tpu.memory_space<vmem>>, %arg8: memref<32x7xbf16, #tpu.memory_space<vmem>>, %arg9: memref<8x7xf32, #tpu.memory_space<vmem>>, %arg10: memref<8x7xf32, #tpu.memory_space<vmem>>) attributes {dimension_semantics = [], scalar_prefetch = 0 : i64, scratch_operands = 0 : i64, tpu.core_type = #tpu.core_type<tc>} {
    %c0 = arith.constant 0 : index
    %c0_0 = arith.constant 0 : index
    %0 = vector.load %arg0[%c0, %c0_0] : memref<8x1152xbf16, #tpu.memory_space<vmem>>, vector<8x1152xbf16>
    %c0_1 = arith.constant 0 : index
    %c0_2 = arith.constant 0 : index
    %1 = vector.load %arg2[%c0_1, %c0_2] : memref<1152x32xbf16, #tpu.memory_space<vmem>>, vector<1152x32xbf16>
    %cst = arith.constant dense<0.000000e+00> : vector<8x32xf32>
    %2 = tpu.matmul %0, %1, %cst {dimension_numbers = #tpu.dot_dimension_numbers<[1], [0], [0], [1], [0, 0, 1, 1], [], []>} : vector<8x1152xbf16>, vector<1152x32xbf16>, vector<8x32xf32> -> vector<8x32xf32>
    %c0_3 = arith.constant 0 : index
    %c0_4 = arith.constant 0 : index
    %3 = vector.load %arg3[%c0_3, %c0_4] : memref<8x32xf32, #tpu.memory_space<vmem>>, vector<8x32xf32>
    %4 = arith.addf %2, %3 : vector<8x32xf32>
    %cst_5 = arith.constant 0.000000e+00 : f32
    %5 = vector.broadcast %cst_5 : f32 to vector<8x32xf32>
    %6 = arith.maximumf %4, %5 : vector<8x32xf32>
    %c0_6 = arith.constant 0 : index
    %c0_7 = arith.constant 0 : index
    %7 = vector.load %arg5[%c0_6, %c0_7] : memref<8x32xf32, #tpu.memory_space<vmem>>, vector<8x32xf32>
    %c0_8 = arith.constant 0 : index
    %c0_9 = arith.constant 0 : index
    %8 = vector.load %arg6[%c0_8, %c0_9] : memref<8x32xf32, #tpu.memory_space<vmem>>, vector<8x32xf32>
    %c0_10 = arith.constant 0 : index
    %c0_11 = arith.constant 0 : index
    %9 = vector.load %arg7[%c0_10, %c0_11] : memref<8x64xf32, #tpu.memory_space<vmem>>, vector<8x64xf32>
    %10 = tpu.iota {dimensions = array<i32: 0>} : vector<8x96xi32>
    %c1_i32 = arith.constant 1 : i32
    %11 = vector.broadcast %c1_i32 : i32 to vector<8x96xi32>
    %12 = arith.cmpi sge, %10, %11 : vector<8x96xi32>
    %13 = arith.extui %12 : vector<8x96xi1> to vector<8x96xi32>
    %14 = arith.sitofp %13 : vector<8x96xi32> to vector<8x96xf32>
    %15 = arith.truncf %6 : vector<8x32xf32> to vector<8x32xbf16>
    %c0_12 = arith.constant 0 : index
    %c0_13 = arith.constant 0 : index
    %c0_14 = arith.constant 0 : index
    %16 = vector.load %arg4[%c0_12, %c0_13, %c0_14] : memref<32x32x256xbf16, #tpu.memory_space<vmem>>, vector<1x32x256xbf16>
    %17 = vector.shape_cast %16 : vector<1x32x256xbf16> to vector<32x256xbf16>
    %cst_15 = arith.constant dense<0.000000e+00> : vector<8x256xf32>
    %18 = tpu.matmul %15, %17, %cst_15 {dimension_numbers = #tpu.dot_dimension_numbers<[1], [0], [0], [1], [0, 0, 1, 1], [], []>} : vector<8x32xbf16>, vector<32x256xbf16>, vector<8x256xf32> -> vector<8x256xf32>
    %19 = vector.extract_strided_slice %18 {offsets = [0, 128], sizes = [8, 96], strides = [1, 1]} : vector<8x256xf32> to vector<8x96xf32>
    %20 = vector.extract_strided_slice %18 {offsets = [0, 0], sizes = [8, 128], strides = [1, 1]} : vector<8x256xf32> to vector<8x128xf32>
    %c1_i32_16 = arith.constant 1 : i32
    %21 = tpu.dynamic_rotate %20 by %c1_i32_16 dim 0 : vector<8x128xf32>, i32 -> vector<8x128xf32>
    %22 = vector.extract_strided_slice %21 {offsets = [0, 0], sizes = [8, 96], strides = [1, 1]} : vector<8x128xf32> to vector<8x96xf32>
    %23 = arith.mulf %22, %14 : vector<8x96xf32>
    %24 = vector.extract_strided_slice %23 {offsets = [0, 32], sizes = [8, 64], strides = [1, 1]} : vector<8x96xf32> to vector<8x64xf32>
    %25 = vector.extract_strided_slice %19 {offsets = [0, 32], sizes = [8, 64], strides = [1, 1]} : vector<8x96xf32> to vector<8x64xf32>
    %26 = arith.addf %24, %25 : vector<8x64xf32>
    %27 = arith.addf %26, %9 : vector<8x64xf32>
    %28 = arith.negf %27 : vector<8x64xf32>
    %29 = math.exp %28 : vector<8x64xf32>
    %cst_17 = arith.constant 1.000000e+00 : f32
    %30 = vector.broadcast %cst_17 : f32 to vector<8x64xf32>
    %31 = arith.addf %30, %29 : vector<8x64xf32>
    %32 = arith.divf %30, %31 : vector<8x64xf32>
    %33 = vector.extract_strided_slice %32 {offsets = [0, 0], sizes = [8, 32], strides = [1, 1]} : vector<8x64xf32> to vector<8x32xf32>
    %34 = vector.extract_strided_slice %32 {offsets = [0, 32], sizes = [8, 32], strides = [1, 1]} : vector<8x64xf32> to vector<8x32xf32>
    %35 = vector.extract_strided_slice %23 {offsets = [0, 0], sizes = [8, 32], strides = [1, 1]} : vector<8x96xf32> to vector<8x32xf32>
    %36 = arith.addf %35, %7 : vector<8x32xf32>
    %37 = vector.extract_strided_slice %19 {offsets = [0, 0], sizes = [8, 32], strides = [1, 1]} : vector<8x96xf32> to vector<8x32xf32>
    %38 = arith.addf %37, %8 : vector<8x32xf32>
    %39 = arith.mulf %33, %38 : vector<8x32xf32>
    %40 = arith.addf %36, %39 : vector<8x32xf32>
    %41 = math.tanh %40 : vector<8x32xf32>
    %42 = arith.subf %6, %41 : vector<8x32xf32>
    %43 = arith.mulf %34, %42 : vector<8x32xf32>
    %44 = arith.addf %41, %43 : vector<8x32xf32>
    %45 = arith.truncf %44 : vector<8x32xf32> to vector<8x32xbf16>
    %c1 = arith.constant 1 : index
    %c0_18 = arith.constant 0 : index
    %c0_19 = arith.constant 0 : index
    %46 = vector.load %arg4[%c1, %c0_18, %c0_19] : memref<32x32x256xbf16, #tpu.memory_space<vmem>>, vector<1x32x256xbf16>
    %47 = vector.shape_cast %46 : vector<1x32x256xbf16> to vector<32x256xbf16>
    %cst_20 = arith.constant dense<0.000000e+00> : vector<8x256xf32>
    %48 = tpu.matmul %45, %47, %cst_20 {dimension_numbers = #tpu.dot_dimension_numbers<[1], [0], [0], [1], [0, 0, 1, 1], [], []>} : vector<8x32xbf16>, vector<32x256xbf16>, vector<8x256xf32> -> vector<8x256xf32>
    %49 = vector.extract_strided_slice %48 {offsets = [0, 128], sizes = [8, 96], strides = [1, 1]} : vector<8x256xf32> to vector<8x96xf32>
    %50 = vector.extract_strided_slice %48 {offsets = [0, 0], sizes = [8, 128], strides = [1, 1]} : vector<8x256xf32> to vector<8x128xf32>
    %c1_i32_21 = arith.constant 1 : i32
    %51 = tpu.dynamic_rotate %50 by %c1_i32_21 dim 0 : vector<8x128xf32>, i32 -> vector<8x128xf32>
    %52 = vector.extract_strided_slice %51 {offsets = [0, 0], sizes = [8, 96], strides = [1, 1]} : vector<8x128xf32> to vector<8x96xf32>
    %53 = arith.mulf %52, %14 : vector<8x96xf32>
    %54 = vector.extract_strided_slice %53 {offsets = [0, 32], sizes = [8, 64], strides = [1, 1]} : vector<8x96xf32> to vector<8x64xf32>
    %55 = vector.extract_strided_slice %49 {offsets = [0, 32], sizes = [8, 64], strides = [1, 1]} : vector<8x96xf32> to vector<8x64xf32>
    %56 = arith.addf %54, %55 : vector<8x64xf32>
    %57 = arith.addf %56, %9 : vector<8x64xf32>
    %58 = arith.negf %57 : vector<8x64xf32>
    %59 = math.exp %58 : vector<8x64xf32>
    %cst_22 = arith.constant 1.000000e+00 : f32
    %60 = vector.broadcast %cst_22 : f32 to vector<8x64xf32>
    %61 = arith.addf %60, %59 : vector<8x64xf32>
    %62 = arith.divf %60, %61 : vector<8x64xf32>
    %63 = vector.extract_strided_slice %62 {offsets = [0, 0], sizes = [8, 32], strides = [1, 1]} : vector<8x64xf32> to vector<8x32xf32>
    %64 = vector.extract_strided_slice %62 {offsets = [0, 32], sizes = [8, 32], strides = [1, 1]} : vector<8x64xf32> to vector<8x32xf32>
    %65 = vector.extract_strided_slice %53 {offsets = [0, 0], sizes = [8, 32], strides = [1, 1]} : vector<8x96xf32> to vector<8x32xf32>
    %66 = arith.addf %65, %7 : vector<8x32xf32>
    %67 = vector.extract_strided_slice %49 {offsets = [0, 0], sizes = [8, 32], strides = [1, 1]} : vector<8x96xf32> to vector<8x32xf32>
    %68 = arith.addf %67, %8 : vector<8x32xf32>
    %69 = arith.mulf %63, %68 : vector<8x32xf32>
    %70 = arith.addf %66, %69 : vector<8x32xf32>
    %71 = math.tanh %70 : vector<8x32xf32>
    %72 = arith.subf %44, %71 : vector<8x32xf32>
    %73 = arith.mulf %64, %72 : vector<8x32xf32>
    %74 = arith.addf %71, %73 : vector<8x32xf32>
    %75 = arith.truncf %74 : vector<8x32xf32> to vector<8x32xbf16>
    %c2 = arith.constant 2 : index
    %c0_23 = arith.constant 0 : index
    %c0_24 = arith.constant 0 : index
    %76 = vector.load %arg4[%c2, %c0_23, %c0_24] : memref<32x32x256xbf16, #tpu.memory_space<vmem>>, vector<1x32x256xbf16>
    %77 = vector.shape_cast %76 : vector<1x32x256xbf16> to vector<32x256xbf16>
    %cst_25 = arith.constant dense<0.000000e+00> : vector<8x256xf32>
    %78 = tpu.matmul %75, %77, %cst_25 {dimension_numbers = #tpu.dot_dimension_numbers<[1], [0], [0], [1], [0, 0, 1, 1], [], []>} : vector<8x32xbf16>, vector<32x256xbf16>, vector<8x256xf32> -> vector<8x256xf32>
    %79 = vector.extract_strided_slice %78 {offsets = [0, 128], sizes = [8, 96], strides = [1, 1]} : vector<8x256xf32> to vector<8x96xf32>
    %80 = vector.extract_strided_slice %78 {offsets = [0, 0], sizes = [8, 128], strides = [1, 1]} : vector<8x256xf32> to vector<8x128xf32>
    %c1_i32_26 = arith.constant 1 : i32
    %81 = tpu.dynamic_rotate %80 by %c1_i32_26 dim 0 : vector<8x128xf32>, i32 -> vector<8x128xf32>
    %82 = vector.extract_strided_slice %81 {offsets = [0, 0], sizes = [8, 96], strides = [1, 1]} : vector<8x128xf32> to vector<8x96xf32>
    %83 = arith.mulf %82, %14 : vector<8x96xf32>
    %84 = vector.extract_strided_slice %83 {offsets = [0, 32], sizes = [8, 64], strides = [1, 1]} : vector<8x96xf32> to vector<8x64xf32>
    %85 = vector.extract_strided_slice %79 {offsets = [0, 32], sizes = [8, 64], strides = [1, 1]} : vector<8x96xf32> to vector<8x64xf32>
    %86 = arith.addf %84, %85 : vector<8x64xf32>
    %87 = arith.addf %86, %9 : vector<8x64xf32>
    %88 = arith.negf %87 : vector<8x64xf32>
    %89 = math.exp %88 : vector<8x64xf32>
    %cst_27 = arith.constant 1.000000e+00 : f32
    %90 = vector.broadcast %cst_27 : f32 to vector<8x64xf32>
    %91 = arith.addf %90, %89 : vector<8x64xf32>
    %92 = arith.divf %90, %91 : vector<8x64xf32>
    %93 = vector.extract_strided_slice %92 {offsets = [0, 0], sizes = [8, 32], strides = [1, 1]} : vector<8x64xf32> to vector<8x32xf32>
    %94 = vector.extract_strided_slice %92 {offsets = [0, 32], sizes = [8, 32], strides = [1, 1]} : vector<8x64xf32> to vector<8x32xf32>
    %95 = vector.extract_strided_slice %83 {offsets = [0, 0], sizes = [8, 32], strides = [1, 1]} : vector<8x96xf32> to vector<8x32xf32>
    %96 = arith.addf %95, %7 : vector<8x32xf32>
    %97 = vector.extract_strided_slice %79 {offsets = [0, 0], sizes = [8, 32], strides = [1, 1]} : vector<8x96xf32> to vector<8x32xf32>
    %98 = arith.addf %97, %8 : vector<8x32xf32>
    %99 = arith.mulf %93, %98 : vector<8x32xf32>
    %100 = arith.addf %96, %99 : vector<8x32xf32>
    %101 = math.tanh %100 : vector<8x32xf32>
    %102 = arith.subf %74, %101 : vector<8x32xf32>
    %103 = arith.mulf %94, %102 : vector<8x32xf32>
    %104 = arith.addf %101, %103 : vector<8x32xf32>
    %105 = arith.truncf %104 : vector<8x32xf32> to vector<8x32xbf16>
    %c3 = arith.constant 3 : index
    %c0_28 = arith.constant 0 : index
    %c0_29 = arith.constant 0 : index
    %106 = vector.load %arg4[%c3, %c0_28, %c0_29] : memref<32x32x256xbf16, #tpu.memory_space<vmem>>, vector<1x32x256xbf16>
    %107 = vector.shape_cast %106 : vector<1x32x256xbf16> to vector<32x256xbf16>
    %cst_30 = arith.constant dense<0.000000e+00> : vector<8x256xf32>
    %108 = tpu.matmul %105, %107, %cst_30 {dimension_numbers = #tpu.dot_dimension_numbers<[1], [0], [0], [1], [0, 0, 1, 1], [], []>} : vector<8x32xbf16>, vector<32x256xbf16>, vector<8x256xf32> -> vector<8x256xf32>
    %109 = vector.extract_strided_slice %108 {offsets = [0, 128], sizes = [8, 96], strides = [1, 1]} : vector<8x256xf32> to vector<8x96xf32>
    %110 = vector.extract_strided_slice %108 {offsets = [0, 0], sizes = [8, 128], strides = [1, 1]} : vector<8x256xf32> to vector<8x128xf32>
    %c1_i32_31 = arith.constant 1 : i32
    %111 = tpu.dynamic_rotate %110 by %c1_i32_31 dim 0 : vector<8x128xf32>, i32 -> vector<8x128xf32>
    %112 = vector.extract_strided_slice %111 {offsets = [0, 0], sizes = [8, 96], strides = [1, 1]} : vector<8x128xf32> to vector<8x96xf32>
    %113 = arith.mulf %112, %14 : vector<8x96xf32>
    %114 = vector.extract_strided_slice %113 {offsets = [0, 32], sizes = [8, 64], strides = [1, 1]} : vector<8x96xf32> to vector<8x64xf32>
    %115 = vector.extract_strided_slice %109 {offsets = [0, 32], sizes = [8, 64], strides = [1, 1]} : vector<8x96xf32> to vector<8x64xf32>
    %116 = arith.addf %114, %115 : vector<8x64xf32>
    %117 = arith.addf %116, %9 : vector<8x64xf32>
    %118 = arith.negf %117 : vector<8x64xf32>
    %119 = math.exp %118 : vector<8x64xf32>
    %cst_32 = arith.constant 1.000000e+00 : f32
    %120 = vector.broadcast %cst_32 : f32 to vector<8x64xf32>
    %121 = arith.addf %120, %119 : vector<8x64xf32>
    %122 = arith.divf %120, %121 : vector<8x64xf32>
    %123 = vector.extract_strided_slice %122 {offsets = [0, 0], sizes = [8, 32], strides = [1, 1]} : vector<8x64xf32> to vector<8x32xf32>
    %124 = vector.extract_strided_slice %122 {offsets = [0, 32], sizes = [8, 32], strides = [1, 1]} : vector<8x64xf32> to vector<8x32xf32>
    %125 = vector.extract_strided_slice %113 {offsets = [0, 0], sizes = [8, 32], strides = [1, 1]} : vector<8x96xf32> to vector<8x32xf32>
    %126 = arith.addf %125, %7 : vector<8x32xf32>
    %127 = vector.extract_strided_slice %109 {offsets = [0, 0], sizes = [8, 32], strides = [1, 1]} : vector<8x96xf32> to vector<8x32xf32>
    %128 = arith.addf %127, %8 : vector<8x32xf32>
    %129 = arith.mulf %123, %128 : vector<8x32xf32>
    %130 = arith.addf %126, %129 : vector<8x32xf32>
    %131 = math.tanh %130 : vector<8x32xf32>
    %132 = arith.subf %104, %131 : vector<8x32xf32>
    %133 = arith.mulf %124, %132 : vector<8x32xf32>
    %134 = arith.addf %131, %133 : vector<8x32xf32>
    %135 = arith.truncf %134 : vector<8x32xf32> to vector<8x32xbf16>
    %c4 = arith.constant 4 : index
    %c0_33 = arith.constant 0 : index
    %c0_34 = arith.constant 0 : index
    %136 = vector.load %arg4[%c4, %c0_33, %c0_34] : memref<32x32x256xbf16, #tpu.memory_space<vmem>>, vector<1x32x256xbf16>
    %137 = vector.shape_cast %136 : vector<1x32x256xbf16> to vector<32x256xbf16>
    %cst_35 = arith.constant dense<0.000000e+00> : vector<8x256xf32>
    %138 = tpu.matmul %135, %137, %cst_35 {dimension_numbers = #tpu.dot_dimension_numbers<[1], [0], [0], [1], [0, 0, 1, 1], [], []>} : vector<8x32xbf16>, vector<32x256xbf16>, vector<8x256xf32> -> vector<8x256xf32>
    %139 = vector.extract_strided_slice %138 {offsets = [0, 128], sizes = [8, 96], strides = [1, 1]} : vector<8x256xf32> to vector<8x96xf32>
    %140 = vector.extract_strided_slice %138 {offsets = [0, 0], sizes = [8, 128], strides = [1, 1]} : vector<8x256xf32> to vector<8x128xf32>
    %c1_i32_36 = arith.constant 1 : i32
    %141 = tpu.dynamic_rotate %140 by %c1_i32_36 dim 0 : vector<8x128xf32>, i32 -> vector<8x128xf32>
    %142 = vector.extract_strided_slice %141 {offsets = [0, 0], sizes = [8, 96], strides = [1, 1]} : vector<8x128xf32> to vector<8x96xf32>
    %143 = arith.mulf %142, %14 : vector<8x96xf32>
    %144 = vector.extract_strided_slice %143 {offsets = [0, 32], sizes = [8, 64], strides = [1, 1]} : vector<8x96xf32> to vector<8x64xf32>
    %145 = vector.extract_strided_slice %139 {offsets = [0, 32], sizes = [8, 64], strides = [1, 1]} : vector<8x96xf32> to vector<8x64xf32>
    %146 = arith.addf %144, %145 : vector<8x64xf32>
    %147 = arith.addf %146, %9 : vector<8x64xf32>
    %148 = arith.negf %147 : vector<8x64xf32>
    %149 = math.exp %148 : vector<8x64xf32>
    %cst_37 = arith.constant 1.000000e+00 : f32
    %150 = vector.broadcast %cst_37 : f32 to vector<8x64xf32>
    %151 = arith.addf %150, %149 : vector<8x64xf32>
    %152 = arith.divf %150, %151 : vector<8x64xf32>
    %153 = vector.extract_strided_slice %152 {offsets = [0, 0], sizes = [8, 32], strides = [1, 1]} : vector<8x64xf32> to vector<8x32xf32>
    %154 = vector.extract_strided_slice %152 {offsets = [0, 32], sizes = [8, 32], strides = [1, 1]} : vector<8x64xf32> to vector<8x32xf32>
    %155 = vector.extract_strided_slice %143 {offsets = [0, 0], sizes = [8, 32], strides = [1, 1]} : vector<8x96xf32> to vector<8x32xf32>
    %156 = arith.addf %155, %7 : vector<8x32xf32>
    %157 = vector.extract_strided_slice %139 {offsets = [0, 0], sizes = [8, 32], strides = [1, 1]} : vector<8x96xf32> to vector<8x32xf32>
    %158 = arith.addf %157, %8 : vector<8x32xf32>
    %159 = arith.mulf %153, %158 : vector<8x32xf32>
    %160 = arith.addf %156, %159 : vector<8x32xf32>
    %161 = math.tanh %160 : vector<8x32xf32>
    %162 = arith.subf %134, %161 : vector<8x32xf32>
    %163 = arith.mulf %154, %162 : vector<8x32xf32>
    %164 = arith.addf %161, %163 : vector<8x32xf32>
    %165 = arith.truncf %164 : vector<8x32xf32> to vector<8x32xbf16>
    %c5 = arith.constant 5 : index
    %c0_38 = arith.constant 0 : index
    %c0_39 = arith.constant 0 : index
    %166 = vector.load %arg4[%c5, %c0_38, %c0_39] : memref<32x32x256xbf16, #tpu.memory_space<vmem>>, vector<1x32x256xbf16>
    %167 = vector.shape_cast %166 : vector<1x32x256xbf16> to vector<32x256xbf16>
    %cst_40 = arith.constant dense<0.000000e+00> : vector<8x256xf32>
    %168 = tpu.matmul %165, %167, %cst_40 {dimension_numbers = #tpu.dot_dimension_numbers<[1], [0], [0], [1], [0, 0, 1, 1], [], []>} : vector<8x32xbf16>, vector<32x256xbf16>, vector<8x256xf32> -> vector<8x256xf32>
    %169 = vector.extract_strided_slice %168 {offsets = [0, 128], sizes = [8, 96], strides = [1, 1]} : vector<8x256xf32> to vector<8x96xf32>
    %170 = vector.extract_strided_slice %168 {offsets = [0, 0], sizes = [8, 128], strides = [1, 1]} : vector<8x256xf32> to vector<8x128xf32>
    %c1_i32_41 = arith.constant 1 : i32
    %171 = tpu.dynamic_rotate %170 by %c1_i32_41 dim 0 : vector<8x128xf32>, i32 -> vector<8x128xf32>
    %172 = vector.extract_strided_slice %171 {offsets = [0, 0], sizes = [8, 96], strides = [1, 1]} : vector<8x128xf32> to vector<8x96xf32>
    %173 = arith.mulf %172, %14 : vector<8x96xf32>
    %174 = vector.extract_strided_slice %173 {offsets = [0, 32], sizes = [8, 64], strides = [1, 1]} : vector<8x96xf32> to vector<8x64xf32>
    %175 = vector.extract_strided_slice %169 {offsets = [0, 32], sizes = [8, 64], strides = [1, 1]} : vector<8x96xf32> to vector<8x64xf32>
    %176 = arith.addf %174, %175 : vector<8x64xf32>
    %177 = arith.addf %176, %9 : vector<8x64xf32>
    %178 = arith.negf %177 : vector<8x64xf32>
    %179 = math.exp %178 : vector<8x64xf32>
    %cst_42 = arith.constant 1.000000e+00 : f32
    %180 = vector.broadcast %cst_42 : f32 to vector<8x64xf32>
    %181 = arith.addf %180, %179 : vector<8x64xf32>
    %182 = arith.divf %180, %181 : vector<8x64xf32>
    %183 = vector.extract_strided_slice %182 {offsets = [0, 0], sizes = [8, 32], strides = [1, 1]} : vector<8x64xf32> to vector<8x32xf32>
    %184 = vector.extract_strided_slice %182 {offsets = [0, 32], sizes = [8, 32], strides = [1, 1]} : vector<8x64xf32> to vector<8x32xf32>
    %185 = vector.extract_strided_slice %173 {offsets = [0, 0], sizes = [8, 32], strides = [1, 1]} : vector<8x96xf32> to vector<8x32xf32>
    %186 = arith.addf %185, %7 : vector<8x32xf32>
    %187 = vector.extract_strided_slice %169 {offsets = [0, 0], sizes = [8, 32], strides = [1, 1]} : vector<8x96xf32> to vector<8x32xf32>
    %188 = arith.addf %187, %8 : vector<8x32xf32>
    %189 = arith.mulf %183, %188 : vector<8x32xf32>
    %190 = arith.addf %186, %189 : vector<8x32xf32>
    %191 = math.tanh %190 : vector<8x32xf32>
    %192 = arith.subf %164, %191 : vector<8x32xf32>
    %193 = arith.mulf %184, %192 : vector<8x32xf32>
    %194 = arith.addf %191, %193 : vector<8x32xf32>
    %195 = arith.truncf %194 : vector<8x32xf32> to vector<8x32xbf16>
    %c6 = arith.constant 6 : index
    %c0_43 = arith.constant 0 : index
    %c0_44 = arith.constant 0 : index
    %196 = vector.load %arg4[%c6, %c0_43, %c0_44] : memref<32x32x256xbf16, #tpu.memory_space<vmem>>, vector<1x32x256xbf16>
    %197 = vector.shape_cast %196 : vector<1x32x256xbf16> to vector<32x256xbf16>
    %cst_45 = arith.constant dense<0.000000e+00> : vector<8x256xf32>
    %198 = tpu.matmul %195, %197, %cst_45 {dimension_numbers = #tpu.dot_dimension_numbers<[1], [0], [0], [1], [0, 0, 1, 1], [], []>} : vector<8x32xbf16>, vector<32x256xbf16>, vector<8x256xf32> -> vector<8x256xf32>
    %199 = vector.extract_strided_slice %198 {offsets = [0, 128], sizes = [8, 96], strides = [1, 1]} : vector<8x256xf32> to vector<8x96xf32>
    %200 = vector.extract_strided_slice %198 {offsets = [0, 0], sizes = [8, 128], strides = [1, 1]} : vector<8x256xf32> to vector<8x128xf32>
    %c1_i32_46 = arith.constant 1 : i32
    %201 = tpu.dynamic_rotate %200 by %c1_i32_46 dim 0 : vector<8x128xf32>, i32 -> vector<8x128xf32>
    %202 = vector.extract_strided_slice %201 {offsets = [0, 0], sizes = [8, 96], strides = [1, 1]} : vector<8x128xf32> to vector<8x96xf32>
    %203 = arith.mulf %202, %14 : vector<8x96xf32>
    %204 = vector.extract_strided_slice %203 {offsets = [0, 32], sizes = [8, 64], strides = [1, 1]} : vector<8x96xf32> to vector<8x64xf32>
    %205 = vector.extract_strided_slice %199 {offsets = [0, 32], sizes = [8, 64], strides = [1, 1]} : vector<8x96xf32> to vector<8x64xf32>
    %206 = arith.addf %204, %205 : vector<8x64xf32>
    %207 = arith.addf %206, %9 : vector<8x64xf32>
    %208 = arith.negf %207 : vector<8x64xf32>
    %209 = math.exp %208 : vector<8x64xf32>
    %cst_47 = arith.constant 1.000000e+00 : f32
    %210 = vector.broadcast %cst_47 : f32 to vector<8x64xf32>
    %211 = arith.addf %210, %209 : vector<8x64xf32>
    %212 = arith.divf %210, %211 : vector<8x64xf32>
    %213 = vector.extract_strided_slice %212 {offsets = [0, 0], sizes = [8, 32], strides = [1, 1]} : vector<8x64xf32> to vector<8x32xf32>
    %214 = vector.extract_strided_slice %212 {offsets = [0, 32], sizes = [8, 32], strides = [1, 1]} : vector<8x64xf32> to vector<8x32xf32>
    %215 = vector.extract_strided_slice %203 {offsets = [0, 0], sizes = [8, 32], strides = [1, 1]} : vector<8x96xf32> to vector<8x32xf32>
    %216 = arith.addf %215, %7 : vector<8x32xf32>
    %217 = vector.extract_strided_slice %199 {offsets = [0, 0], sizes = [8, 32], strides = [1, 1]} : vector<8x96xf32> to vector<8x32xf32>
    %218 = arith.addf %217, %8 : vector<8x32xf32>
    %219 = arith.mulf %213, %218 : vector<8x32xf32>
    %220 = arith.addf %216, %219 : vector<8x32xf32>
    %221 = math.tanh %220 : vector<8x32xf32>
    %222 = arith.subf %194, %221 : vector<8x32xf32>
    %223 = arith.mulf %214, %222 : vector<8x32xf32>
    %224 = arith.addf %221, %223 : vector<8x32xf32>
    %225 = arith.truncf %224 : vector<8x32xf32> to vector<8x32xbf16>
    %c7 = arith.constant 7 : index
    %c0_48 = arith.constant 0 : index
    %c0_49 = arith.constant 0 : index
    %226 = vector.load %arg4[%c7, %c0_48, %c0_49] : memref<32x32x256xbf16, #tpu.memory_space<vmem>>, vector<1x32x256xbf16>
    %227 = vector.shape_cast %226 : vector<1x32x256xbf16> to vector<32x256xbf16>
    %cst_50 = arith.constant dense<0.000000e+00> : vector<8x256xf32>
    %228 = tpu.matmul %225, %227, %cst_50 {dimension_numbers = #tpu.dot_dimension_numbers<[1], [0], [0], [1], [0, 0, 1, 1], [], []>} : vector<8x32xbf16>, vector<32x256xbf16>, vector<8x256xf32> -> vector<8x256xf32>
    %229 = vector.extract_strided_slice %228 {offsets = [0, 128], sizes = [8, 96], strides = [1, 1]} : vector<8x256xf32> to vector<8x96xf32>
    %230 = vector.extract_strided_slice %228 {offsets = [0, 0], sizes = [8, 128], strides = [1, 1]} : vector<8x256xf32> to vector<8x128xf32>
    %c1_i32_51 = arith.constant 1 : i32
    %231 = tpu.dynamic_rotate %230 by %c1_i32_51 dim 0 : vector<8x128xf32>, i32 -> vector<8x128xf32>
    %232 = vector.extract_strided_slice %231 {offsets = [0, 0], sizes = [8, 96], strides = [1, 1]} : vector<8x128xf32> to vector<8x96xf32>
    %233 = arith.mulf %232, %14 : vector<8x96xf32>
    %234 = vector.extract_strided_slice %233 {offsets = [0, 32], sizes = [8, 64], strides = [1, 1]} : vector<8x96xf32> to vector<8x64xf32>
    %235 = vector.extract_strided_slice %229 {offsets = [0, 32], sizes = [8, 64], strides = [1, 1]} : vector<8x96xf32> to vector<8x64xf32>
    %236 = arith.addf %234, %235 : vector<8x64xf32>
    %237 = arith.addf %236, %9 : vector<8x64xf32>
    %238 = arith.negf %237 : vector<8x64xf32>
    %239 = math.exp %238 : vector<8x64xf32>
    %cst_52 = arith.constant 1.000000e+00 : f32
    %240 = vector.broadcast %cst_52 : f32 to vector<8x64xf32>
    %241 = arith.addf %240, %239 : vector<8x64xf32>
    %242 = arith.divf %240, %241 : vector<8x64xf32>
    %243 = vector.extract_strided_slice %242 {offsets = [0, 0], sizes = [8, 32], strides = [1, 1]} : vector<8x64xf32> to vector<8x32xf32>
    %244 = vector.extract_strided_slice %242 {offsets = [0, 32], sizes = [8, 32], strides = [1, 1]} : vector<8x64xf32> to vector<8x32xf32>
    %245 = vector.extract_strided_slice %233 {offsets = [0, 0], sizes = [8, 32], strides = [1, 1]} : vector<8x96xf32> to vector<8x32xf32>
    %246 = arith.addf %245, %7 : vector<8x32xf32>
    %247 = vector.extract_strided_slice %229 {offsets = [0, 0], sizes = [8, 32], strides = [1, 1]} : vector<8x96xf32> to vector<8x32xf32>
    %248 = arith.addf %247, %8 : vector<8x32xf32>
    %249 = arith.mulf %243, %248 : vector<8x32xf32>
    %250 = arith.addf %246, %249 : vector<8x32xf32>
    %251 = math.tanh %250 : vector<8x32xf32>
    %252 = arith.subf %224, %251 : vector<8x32xf32>
    %253 = arith.mulf %244, %252 : vector<8x32xf32>
    %254 = arith.addf %251, %253 : vector<8x32xf32>
    %255 = arith.truncf %254 : vector<8x32xf32> to vector<8x32xbf16>
    %c8 = arith.constant 8 : index
    %c0_53 = arith.constant 0 : index
    %c0_54 = arith.constant 0 : index
    %256 = vector.load %arg4[%c8, %c0_53, %c0_54] : memref<32x32x256xbf16, #tpu.memory_space<vmem>>, vector<1x32x256xbf16>
    %257 = vector.shape_cast %256 : vector<1x32x256xbf16> to vector<32x256xbf16>
    %cst_55 = arith.constant dense<0.000000e+00> : vector<8x256xf32>
    %258 = tpu.matmul %255, %257, %cst_55 {dimension_numbers = #tpu.dot_dimension_numbers<[1], [0], [0], [1], [0, 0, 1, 1], [], []>} : vector<8x32xbf16>, vector<32x256xbf16>, vector<8x256xf32> -> vector<8x256xf32>
    %259 = vector.extract_strided_slice %258 {offsets = [0, 128], sizes = [8, 96], strides = [1, 1]} : vector<8x256xf32> to vector<8x96xf32>
    %260 = vector.extract_strided_slice %258 {offsets = [0, 0], sizes = [8, 128], strides = [1, 1]} : vector<8x256xf32> to vector<8x128xf32>
    %c1_i32_56 = arith.constant 1 : i32
    %261 = tpu.dynamic_rotate %260 by %c1_i32_56 dim 0 : vector<8x128xf32>, i32 -> vector<8x128xf32>
    %262 = vector.extract_strided_slice %261 {offsets = [0, 0], sizes = [8, 96], strides = [1, 1]} : vector<8x128xf32> to vector<8x96xf32>
    %263 = arith.mulf %262, %14 : vector<8x96xf32>
    %264 = vector.extract_strided_slice %263 {offsets = [0, 32], sizes = [8, 64], strides = [1, 1]} : vector<8x96xf32> to vector<8x64xf32>
    %265 = vector.extract_strided_slice %259 {offsets = [0, 32], sizes = [8, 64], strides = [1, 1]} : vector<8x96xf32> to vector<8x64xf32>
    %266 = arith.addf %264, %265 : vector<8x64xf32>
    %267 = arith.addf %266, %9 : vector<8x64xf32>
    %268 = arith.negf %267 : vector<8x64xf32>
    %269 = math.exp %268 : vector<8x64xf32>
    %cst_57 = arith.constant 1.000000e+00 : f32
    %270 = vector.broadcast %cst_57 : f32 to vector<8x64xf32>
    %271 = arith.addf %270, %269 : vector<8x64xf32>
    %272 = arith.divf %270, %271 : vector<8x64xf32>
    %273 = vector.extract_strided_slice %272 {offsets = [0, 0], sizes = [8, 32], strides = [1, 1]} : vector<8x64xf32> to vector<8x32xf32>
    %274 = vector.extract_strided_slice %272 {offsets = [0, 32], sizes = [8, 32], strides = [1, 1]} : vector<8x64xf32> to vector<8x32xf32>
    %275 = vector.extract_strided_slice %263 {offsets = [0, 0], sizes = [8, 32], strides = [1, 1]} : vector<8x96xf32> to vector<8x32xf32>
    %276 = arith.addf %275, %7 : vector<8x32xf32>
    %277 = vector.extract_strided_slice %259 {offsets = [0, 0], sizes = [8, 32], strides = [1, 1]} : vector<8x96xf32> to vector<8x32xf32>
    %278 = arith.addf %277, %8 : vector<8x32xf32>
    %279 = arith.mulf %273, %278 : vector<8x32xf32>
    %280 = arith.addf %276, %279 : vector<8x32xf32>
    %281 = math.tanh %280 : vector<8x32xf32>
    %282 = arith.subf %254, %281 : vector<8x32xf32>
    %283 = arith.mulf %274, %282 : vector<8x32xf32>
    %284 = arith.addf %281, %283 : vector<8x32xf32>
    %285 = arith.truncf %284 : vector<8x32xf32> to vector<8x32xbf16>
    %c9 = arith.constant 9 : index
    %c0_58 = arith.constant 0 : index
    %c0_59 = arith.constant 0 : index
    %286 = vector.load %arg4[%c9, %c0_58, %c0_59] : memref<32x32x256xbf16, #tpu.memory_space<vmem>>, vector<1x32x256xbf16>
    %287 = vector.shape_cast %286 : vector<1x32x256xbf16> to vector<32x256xbf16>
    %cst_60 = arith.constant dense<0.000000e+00> : vector<8x256xf32>
    %288 = tpu.matmul %285, %287, %cst_60 {dimension_numbers = #tpu.dot_dimension_numbers<[1], [0], [0], [1], [0, 0, 1, 1], [], []>} : vector<8x32xbf16>, vector<32x256xbf16>, vector<8x256xf32> -> vector<8x256xf32>
    %289 = vector.extract_strided_slice %288 {offsets = [0, 128], sizes = [8, 96], strides = [1, 1]} : vector<8x256xf32> to vector<8x96xf32>
    %290 = vector.extract_strided_slice %288 {offsets = [0, 0], sizes = [8, 128], strides = [1, 1]} : vector<8x256xf32> to vector<8x128xf32>
    %c1_i32_61 = arith.constant 1 : i32
    %291 = tpu.dynamic_rotate %290 by %c1_i32_61 dim 0 : vector<8x128xf32>, i32 -> vector<8x128xf32>
    %292 = vector.extract_strided_slice %291 {offsets = [0, 0], sizes = [8, 96], strides = [1, 1]} : vector<8x128xf32> to vector<8x96xf32>
    %293 = arith.mulf %292, %14 : vector<8x96xf32>
    %294 = vector.extract_strided_slice %293 {offsets = [0, 32], sizes = [8, 64], strides = [1, 1]} : vector<8x96xf32> to vector<8x64xf32>
    %295 = vector.extract_strided_slice %289 {offsets = [0, 32], sizes = [8, 64], strides = [1, 1]} : vector<8x96xf32> to vector<8x64xf32>
    %296 = arith.addf %294, %295 : vector<8x64xf32>
    %297 = arith.addf %296, %9 : vector<8x64xf32>
    %298 = arith.negf %297 : vector<8x64xf32>
    %299 = math.exp %298 : vector<8x64xf32>
    %cst_62 = arith.constant 1.000000e+00 : f32
    %300 = vector.broadcast %cst_62 : f32 to vector<8x64xf32>
    %301 = arith.addf %300, %299 : vector<8x64xf32>
    %302 = arith.divf %300, %301 : vector<8x64xf32>
    %303 = vector.extract_strided_slice %302 {offsets = [0, 0], sizes = [8, 32], strides = [1, 1]} : vector<8x64xf32> to vector<8x32xf32>
    %304 = vector.extract_strided_slice %302 {offsets = [0, 32], sizes = [8, 32], strides = [1, 1]} : vector<8x64xf32> to vector<8x32xf32>
    %305 = vector.extract_strided_slice %293 {offsets = [0, 0], sizes = [8, 32], strides = [1, 1]} : vector<8x96xf32> to vector<8x32xf32>
    %306 = arith.addf %305, %7 : vector<8x32xf32>
    %307 = vector.extract_strided_slice %289 {offsets = [0, 0], sizes = [8, 32], strides = [1, 1]} : vector<8x96xf32> to vector<8x32xf32>
    %308 = arith.addf %307, %8 : vector<8x32xf32>
    %309 = arith.mulf %303, %308 : vector<8x32xf32>
    %310 = arith.addf %306, %309 : vector<8x32xf32>
    %311 = math.tanh %310 : vector<8x32xf32>
    %312 = arith.subf %284, %311 : vector<8x32xf32>
    %313 = arith.mulf %304, %312 : vector<8x32xf32>
    %314 = arith.addf %311, %313 : vector<8x32xf32>
    %315 = arith.truncf %314 : vector<8x32xf32> to vector<8x32xbf16>
    %c10 = arith.constant 10 : index
    %c0_63 = arith.constant 0 : index
    %c0_64 = arith.constant 0 : index
    %316 = vector.load %arg4[%c10, %c0_63, %c0_64] : memref<32x32x256xbf16, #tpu.memory_space<vmem>>, vector<1x32x256xbf16>
    %317 = vector.shape_cast %316 : vector<1x32x256xbf16> to vector<32x256xbf16>
    %cst_65 = arith.constant dense<0.000000e+00> : vector<8x256xf32>
    %318 = tpu.matmul %315, %317, %cst_65 {dimension_numbers = #tpu.dot_dimension_numbers<[1], [0], [0], [1], [0, 0, 1, 1], [], []>} : vector<8x32xbf16>, vector<32x256xbf16>, vector<8x256xf32> -> vector<8x256xf32>
    %319 = vector.extract_strided_slice %318 {offsets = [0, 128], sizes = [8, 96], strides = [1, 1]} : vector<8x256xf32> to vector<8x96xf32>
    %320 = vector.extract_strided_slice %318 {offsets = [0, 0], sizes = [8, 128], strides = [1, 1]} : vector<8x256xf32> to vector<8x128xf32>
    %c1_i32_66 = arith.constant 1 : i32
    %321 = tpu.dynamic_rotate %320 by %c1_i32_66 dim 0 : vector<8x128xf32>, i32 -> vector<8x128xf32>
    %322 = vector.extract_strided_slice %321 {offsets = [0, 0], sizes = [8, 96], strides = [1, 1]} : vector<8x128xf32> to vector<8x96xf32>
    %323 = arith.mulf %322, %14 : vector<8x96xf32>
    %324 = vector.extract_strided_slice %323 {offsets = [0, 32], sizes = [8, 64], strides = [1, 1]} : vector<8x96xf32> to vector<8x64xf32>
    %325 = vector.extract_strided_slice %319 {offsets = [0, 32], sizes = [8, 64], strides = [1, 1]} : vector<8x96xf32> to vector<8x64xf32>
    %326 = arith.addf %324, %325 : vector<8x64xf32>
    %327 = arith.addf %326, %9 : vector<8x64xf32>
    %328 = arith.negf %327 : vector<8x64xf32>
    %329 = math.exp %328 : vector<8x64xf32>
    %cst_67 = arith.constant 1.000000e+00 : f32
    %330 = vector.broadcast %cst_67 : f32 to vector<8x64xf32>
    %331 = arith.addf %330, %329 : vector<8x64xf32>
    %332 = arith.divf %330, %331 : vector<8x64xf32>
    %333 = vector.extract_strided_slice %332 {offsets = [0, 0], sizes = [8, 32], strides = [1, 1]} : vector<8x64xf32> to vector<8x32xf32>
    %334 = vector.extract_strided_slice %332 {offsets = [0, 32], sizes = [8, 32], strides = [1, 1]} : vector<8x64xf32> to vector<8x32xf32>
    %335 = vector.extract_strided_slice %323 {offsets = [0, 0], sizes = [8, 32], strides = [1, 1]} : vector<8x96xf32> to vector<8x32xf32>
    %336 = arith.addf %335, %7 : vector<8x32xf32>
    %337 = vector.extract_strided_slice %319 {offsets = [0, 0], sizes = [8, 32], strides = [1, 1]} : vector<8x96xf32> to vector<8x32xf32>
    %338 = arith.addf %337, %8 : vector<8x32xf32>
    %339 = arith.mulf %333, %338 : vector<8x32xf32>
    %340 = arith.addf %336, %339 : vector<8x32xf32>
    %341 = math.tanh %340 : vector<8x32xf32>
    %342 = arith.subf %314, %341 : vector<8x32xf32>
    %343 = arith.mulf %334, %342 : vector<8x32xf32>
    %344 = arith.addf %341, %343 : vector<8x32xf32>
    %345 = arith.truncf %344 : vector<8x32xf32> to vector<8x32xbf16>
    %c11 = arith.constant 11 : index
    %c0_68 = arith.constant 0 : index
    %c0_69 = arith.constant 0 : index
    %346 = vector.load %arg4[%c11, %c0_68, %c0_69] : memref<32x32x256xbf16, #tpu.memory_space<vmem>>, vector<1x32x256xbf16>
    %347 = vector.shape_cast %346 : vector<1x32x256xbf16> to vector<32x256xbf16>
    %cst_70 = arith.constant dense<0.000000e+00> : vector<8x256xf32>
    %348 = tpu.matmul %345, %347, %cst_70 {dimension_numbers = #tpu.dot_dimension_numbers<[1], [0], [0], [1], [0, 0, 1, 1], [], []>} : vector<8x32xbf16>, vector<32x256xbf16>, vector<8x256xf32> -> vector<8x256xf32>
    %349 = vector.extract_strided_slice %348 {offsets = [0, 128], sizes = [8, 96], strides = [1, 1]} : vector<8x256xf32> to vector<8x96xf32>
    %350 = vector.extract_strided_slice %348 {offsets = [0, 0], sizes = [8, 128], strides = [1, 1]} : vector<8x256xf32> to vector<8x128xf32>
    %c1_i32_71 = arith.constant 1 : i32
    %351 = tpu.dynamic_rotate %350 by %c1_i32_71 dim 0 : vector<8x128xf32>, i32 -> vector<8x128xf32>
    %352 = vector.extract_strided_slice %351 {offsets = [0, 0], sizes = [8, 96], strides = [1, 1]} : vector<8x128xf32> to vector<8x96xf32>
    %353 = arith.mulf %352, %14 : vector<8x96xf32>
    %354 = vector.extract_strided_slice %353 {offsets = [0, 32], sizes = [8, 64], strides = [1, 1]} : vector<8x96xf32> to vector<8x64xf32>
    %355 = vector.extract_strided_slice %349 {offsets = [0, 32], sizes = [8, 64], strides = [1, 1]} : vector<8x96xf32> to vector<8x64xf32>
    %356 = arith.addf %354, %355 : vector<8x64xf32>
    %357 = arith.addf %356, %9 : vector<8x64xf32>
    %358 = arith.negf %357 : vector<8x64xf32>
    %359 = math.exp %358 : vector<8x64xf32>
    %cst_72 = arith.constant 1.000000e+00 : f32
    %360 = vector.broadcast %cst_72 : f32 to vector<8x64xf32>
    %361 = arith.addf %360, %359 : vector<8x64xf32>
    %362 = arith.divf %360, %361 : vector<8x64xf32>
    %363 = vector.extract_strided_slice %362 {offsets = [0, 0], sizes = [8, 32], strides = [1, 1]} : vector<8x64xf32> to vector<8x32xf32>
    %364 = vector.extract_strided_slice %362 {offsets = [0, 32], sizes = [8, 32], strides = [1, 1]} : vector<8x64xf32> to vector<8x32xf32>
    %365 = vector.extract_strided_slice %353 {offsets = [0, 0], sizes = [8, 32], strides = [1, 1]} : vector<8x96xf32> to vector<8x32xf32>
    %366 = arith.addf %365, %7 : vector<8x32xf32>
    %367 = vector.extract_strided_slice %349 {offsets = [0, 0], sizes = [8, 32], strides = [1, 1]} : vector<8x96xf32> to vector<8x32xf32>
    %368 = arith.addf %367, %8 : vector<8x32xf32>
    %369 = arith.mulf %363, %368 : vector<8x32xf32>
    %370 = arith.addf %366, %369 : vector<8x32xf32>
    %371 = math.tanh %370 : vector<8x32xf32>
    %372 = arith.subf %344, %371 : vector<8x32xf32>
    %373 = arith.mulf %364, %372 : vector<8x32xf32>
    %374 = arith.addf %371, %373 : vector<8x32xf32>
    %375 = arith.truncf %374 : vector<8x32xf32> to vector<8x32xbf16>
    %c12 = arith.constant 12 : index
    %c0_73 = arith.constant 0 : index
    %c0_74 = arith.constant 0 : index
    %376 = vector.load %arg4[%c12, %c0_73, %c0_74] : memref<32x32x256xbf16, #tpu.memory_space<vmem>>, vector<1x32x256xbf16>
    %377 = vector.shape_cast %376 : vector<1x32x256xbf16> to vector<32x256xbf16>
    %cst_75 = arith.constant dense<0.000000e+00> : vector<8x256xf32>
    %378 = tpu.matmul %375, %377, %cst_75 {dimension_numbers = #tpu.dot_dimension_numbers<[1], [0], [0], [1], [0, 0, 1, 1], [], []>} : vector<8x32xbf16>, vector<32x256xbf16>, vector<8x256xf32> -> vector<8x256xf32>
    %379 = vector.extract_strided_slice %378 {offsets = [0, 128], sizes = [8, 96], strides = [1, 1]} : vector<8x256xf32> to vector<8x96xf32>
    %380 = vector.extract_strided_slice %378 {offsets = [0, 0], sizes = [8, 128], strides = [1, 1]} : vector<8x256xf32> to vector<8x128xf32>
    %c1_i32_76 = arith.constant 1 : i32
    %381 = tpu.dynamic_rotate %380 by %c1_i32_76 dim 0 : vector<8x128xf32>, i32 -> vector<8x128xf32>
    %382 = vector.extract_strided_slice %381 {offsets = [0, 0], sizes = [8, 96], strides = [1, 1]} : vector<8x128xf32> to vector<8x96xf32>
    %383 = arith.mulf %382, %14 : vector<8x96xf32>
    %384 = vector.extract_strided_slice %383 {offsets = [0, 32], sizes = [8, 64], strides = [1, 1]} : vector<8x96xf32> to vector<8x64xf32>
    %385 = vector.extract_strided_slice %379 {offsets = [0, 32], sizes = [8, 64], strides = [1, 1]} : vector<8x96xf32> to vector<8x64xf32>
    %386 = arith.addf %384, %385 : vector<8x64xf32>
    %387 = arith.addf %386, %9 : vector<8x64xf32>
    %388 = arith.negf %387 : vector<8x64xf32>
    %389 = math.exp %388 : vector<8x64xf32>
    %cst_77 = arith.constant 1.000000e+00 : f32
    %390 = vector.broadcast %cst_77 : f32 to vector<8x64xf32>
    %391 = arith.addf %390, %389 : vector<8x64xf32>
    %392 = arith.divf %390, %391 : vector<8x64xf32>
    %393 = vector.extract_strided_slice %392 {offsets = [0, 0], sizes = [8, 32], strides = [1, 1]} : vector<8x64xf32> to vector<8x32xf32>
    %394 = vector.extract_strided_slice %392 {offsets = [0, 32], sizes = [8, 32], strides = [1, 1]} : vector<8x64xf32> to vector<8x32xf32>
    %395 = vector.extract_strided_slice %383 {offsets = [0, 0], sizes = [8, 32], strides = [1, 1]} : vector<8x96xf32> to vector<8x32xf32>
    %396 = arith.addf %395, %7 : vector<8x32xf32>
    %397 = vector.extract_strided_slice %379 {offsets = [0, 0], sizes = [8, 32], strides = [1, 1]} : vector<8x96xf32> to vector<8x32xf32>
    %398 = arith.addf %397, %8 : vector<8x32xf32>
    %399 = arith.mulf %393, %398 : vector<8x32xf32>
    %400 = arith.addf %396, %399 : vector<8x32xf32>
    %401 = math.tanh %400 : vector<8x32xf32>
    %402 = arith.subf %374, %401 : vector<8x32xf32>
    %403 = arith.mulf %394, %402 : vector<8x32xf32>
    %404 = arith.addf %401, %403 : vector<8x32xf32>
    %405 = arith.truncf %404 : vector<8x32xf32> to vector<8x32xbf16>
    %c13 = arith.constant 13 : index
    %c0_78 = arith.constant 0 : index
    %c0_79 = arith.constant 0 : index
    %406 = vector.load %arg4[%c13, %c0_78, %c0_79] : memref<32x32x256xbf16, #tpu.memory_space<vmem>>, vector<1x32x256xbf16>
    %407 = vector.shape_cast %406 : vector<1x32x256xbf16> to vector<32x256xbf16>
    %cst_80 = arith.constant dense<0.000000e+00> : vector<8x256xf32>
    %408 = tpu.matmul %405, %407, %cst_80 {dimension_numbers = #tpu.dot_dimension_numbers<[1], [0], [0], [1], [0, 0, 1, 1], [], []>} : vector<8x32xbf16>, vector<32x256xbf16>, vector<8x256xf32> -> vector<8x256xf32>
    %409 = vector.extract_strided_slice %408 {offsets = [0, 128], sizes = [8, 96], strides = [1, 1]} : vector<8x256xf32> to vector<8x96xf32>
    %410 = vector.extract_strided_slice %408 {offsets = [0, 0], sizes = [8, 128], strides = [1, 1]} : vector<8x256xf32> to vector<8x128xf32>
    %c1_i32_81 = arith.constant 1 : i32
    %411 = tpu.dynamic_rotate %410 by %c1_i32_81 dim 0 : vector<8x128xf32>, i32 -> vector<8x128xf32>
    %412 = vector.extract_strided_slice %411 {offsets = [0, 0], sizes = [8, 96], strides = [1, 1]} : vector<8x128xf32> to vector<8x96xf32>
    %413 = arith.mulf %412, %14 : vector<8x96xf32>
    %414 = vector.extract_strided_slice %413 {offsets = [0, 32], sizes = [8, 64], strides = [1, 1]} : vector<8x96xf32> to vector<8x64xf32>
    %415 = vector.extract_strided_slice %409 {offsets = [0, 32], sizes = [8, 64], strides = [1, 1]} : vector<8x96xf32> to vector<8x64xf32>
    %416 = arith.addf %414, %415 : vector<8x64xf32>
    %417 = arith.addf %416, %9 : vector<8x64xf32>
    %418 = arith.negf %417 : vector<8x64xf32>
    %419 = math.exp %418 : vector<8x64xf32>
    %cst_82 = arith.constant 1.000000e+00 : f32
    %420 = vector.broadcast %cst_82 : f32 to vector<8x64xf32>
    %421 = arith.addf %420, %419 : vector<8x64xf32>
    %422 = arith.divf %420, %421 : vector<8x64xf32>
    %423 = vector.extract_strided_slice %422 {offsets = [0, 0], sizes = [8, 32], strides = [1, 1]} : vector<8x64xf32> to vector<8x32xf32>
    %424 = vector.extract_strided_slice %422 {offsets = [0, 32], sizes = [8, 32], strides = [1, 1]} : vector<8x64xf32> to vector<8x32xf32>
    %425 = vector.extract_strided_slice %413 {offsets = [0, 0], sizes = [8, 32], strides = [1, 1]} : vector<8x96xf32> to vector<8x32xf32>
    %426 = arith.addf %425, %7 : vector<8x32xf32>
    %427 = vector.extract_strided_slice %409 {offsets = [0, 0], sizes = [8, 32], strides = [1, 1]} : vector<8x96xf32> to vector<8x32xf32>
    %428 = arith.addf %427, %8 : vector<8x32xf32>
    %429 = arith.mulf %423, %428 : vector<8x32xf32>
    %430 = arith.addf %426, %429 : vector<8x32xf32>
    %431 = math.tanh %430 : vector<8x32xf32>
    %432 = arith.subf %404, %431 : vector<8x32xf32>
    %433 = arith.mulf %424, %432 : vector<8x32xf32>
    %434 = arith.addf %431, %433 : vector<8x32xf32>
    %435 = arith.truncf %434 : vector<8x32xf32> to vector<8x32xbf16>
    %c14 = arith.constant 14 : index
    %c0_83 = arith.constant 0 : index
    %c0_84 = arith.constant 0 : index
    %436 = vector.load %arg4[%c14, %c0_83, %c0_84] : memref<32x32x256xbf16, #tpu.memory_space<vmem>>, vector<1x32x256xbf16>
    %437 = vector.shape_cast %436 : vector<1x32x256xbf16> to vector<32x256xbf16>
    %cst_85 = arith.constant dense<0.000000e+00> : vector<8x256xf32>
    %438 = tpu.matmul %435, %437, %cst_85 {dimension_numbers = #tpu.dot_dimension_numbers<[1], [0], [0], [1], [0, 0, 1, 1], [], []>} : vector<8x32xbf16>, vector<32x256xbf16>, vector<8x256xf32> -> vector<8x256xf32>
    %439 = vector.extract_strided_slice %438 {offsets = [0, 128], sizes = [8, 96], strides = [1, 1]} : vector<8x256xf32> to vector<8x96xf32>
    %440 = vector.extract_strided_slice %438 {offsets = [0, 0], sizes = [8, 128], strides = [1, 1]} : vector<8x256xf32> to vector<8x128xf32>
    %c1_i32_86 = arith.constant 1 : i32
    %441 = tpu.dynamic_rotate %440 by %c1_i32_86 dim 0 : vector<8x128xf32>, i32 -> vector<8x128xf32>
    %442 = vector.extract_strided_slice %441 {offsets = [0, 0], sizes = [8, 96], strides = [1, 1]} : vector<8x128xf32> to vector<8x96xf32>
    %443 = arith.mulf %442, %14 : vector<8x96xf32>
    %444 = vector.extract_strided_slice %443 {offsets = [0, 32], sizes = [8, 64], strides = [1, 1]} : vector<8x96xf32> to vector<8x64xf32>
    %445 = vector.extract_strided_slice %439 {offsets = [0, 32], sizes = [8, 64], strides = [1, 1]} : vector<8x96xf32> to vector<8x64xf32>
    %446 = arith.addf %444, %445 : vector<8x64xf32>
    %447 = arith.addf %446, %9 : vector<8x64xf32>
    %448 = arith.negf %447 : vector<8x64xf32>
    %449 = math.exp %448 : vector<8x64xf32>
    %cst_87 = arith.constant 1.000000e+00 : f32
    %450 = vector.broadcast %cst_87 : f32 to vector<8x64xf32>
    %451 = arith.addf %450, %449 : vector<8x64xf32>
    %452 = arith.divf %450, %451 : vector<8x64xf32>
    %453 = vector.extract_strided_slice %452 {offsets = [0, 0], sizes = [8, 32], strides = [1, 1]} : vector<8x64xf32> to vector<8x32xf32>
    %454 = vector.extract_strided_slice %452 {offsets = [0, 32], sizes = [8, 32], strides = [1, 1]} : vector<8x64xf32> to vector<8x32xf32>
    %455 = vector.extract_strided_slice %443 {offsets = [0, 0], sizes = [8, 32], strides = [1, 1]} : vector<8x96xf32> to vector<8x32xf32>
    %456 = arith.addf %455, %7 : vector<8x32xf32>
    %457 = vector.extract_strided_slice %439 {offsets = [0, 0], sizes = [8, 32], strides = [1, 1]} : vector<8x96xf32> to vector<8x32xf32>
    %458 = arith.addf %457, %8 : vector<8x32xf32>
    %459 = arith.mulf %453, %458 : vector<8x32xf32>
    %460 = arith.addf %456, %459 : vector<8x32xf32>
    %461 = math.tanh %460 : vector<8x32xf32>
    %462 = arith.subf %434, %461 : vector<8x32xf32>
    %463 = arith.mulf %454, %462 : vector<8x32xf32>
    %464 = arith.addf %461, %463 : vector<8x32xf32>
    %465 = arith.truncf %464 : vector<8x32xf32> to vector<8x32xbf16>
    %c15 = arith.constant 15 : index
    %c0_88 = arith.constant 0 : index
    %c0_89 = arith.constant 0 : index
    %466 = vector.load %arg4[%c15, %c0_88, %c0_89] : memref<32x32x256xbf16, #tpu.memory_space<vmem>>, vector<1x32x256xbf16>
    %467 = vector.shape_cast %466 : vector<1x32x256xbf16> to vector<32x256xbf16>
    %cst_90 = arith.constant dense<0.000000e+00> : vector<8x256xf32>
    %468 = tpu.matmul %465, %467, %cst_90 {dimension_numbers = #tpu.dot_dimension_numbers<[1], [0], [0], [1], [0, 0, 1, 1], [], []>} : vector<8x32xbf16>, vector<32x256xbf16>, vector<8x256xf32> -> vector<8x256xf32>
    %469 = vector.extract_strided_slice %468 {offsets = [0, 128], sizes = [8, 96], strides = [1, 1]} : vector<8x256xf32> to vector<8x96xf32>
    %470 = vector.extract_strided_slice %468 {offsets = [0, 0], sizes = [8, 128], strides = [1, 1]} : vector<8x256xf32> to vector<8x128xf32>
    %c1_i32_91 = arith.constant 1 : i32
    %471 = tpu.dynamic_rotate %470 by %c1_i32_91 dim 0 : vector<8x128xf32>, i32 -> vector<8x128xf32>
    %472 = vector.extract_strided_slice %471 {offsets = [0, 0], sizes = [8, 96], strides = [1, 1]} : vector<8x128xf32> to vector<8x96xf32>
    %473 = arith.mulf %472, %14 : vector<8x96xf32>
    %474 = vector.extract_strided_slice %473 {offsets = [0, 32], sizes = [8, 64], strides = [1, 1]} : vector<8x96xf32> to vector<8x64xf32>
    %475 = vector.extract_strided_slice %469 {offsets = [0, 32], sizes = [8, 64], strides = [1, 1]} : vector<8x96xf32> to vector<8x64xf32>
    %476 = arith.addf %474, %475 : vector<8x64xf32>
    %477 = arith.addf %476, %9 : vector<8x64xf32>
    %478 = arith.negf %477 : vector<8x64xf32>
    %479 = math.exp %478 : vector<8x64xf32>
    %cst_92 = arith.constant 1.000000e+00 : f32
    %480 = vector.broadcast %cst_92 : f32 to vector<8x64xf32>
    %481 = arith.addf %480, %479 : vector<8x64xf32>
    %482 = arith.divf %480, %481 : vector<8x64xf32>
    %483 = vector.extract_strided_slice %482 {offsets = [0, 0], sizes = [8, 32], strides = [1, 1]} : vector<8x64xf32> to vector<8x32xf32>
    %484 = vector.extract_strided_slice %482 {offsets = [0, 32], sizes = [8, 32], strides = [1, 1]} : vector<8x64xf32> to vector<8x32xf32>
    %485 = vector.extract_strided_slice %473 {offsets = [0, 0], sizes = [8, 32], strides = [1, 1]} : vector<8x96xf32> to vector<8x32xf32>
    %486 = arith.addf %485, %7 : vector<8x32xf32>
    %487 = vector.extract_strided_slice %469 {offsets = [0, 0], sizes = [8, 32], strides = [1, 1]} : vector<8x96xf32> to vector<8x32xf32>
    %488 = arith.addf %487, %8 : vector<8x32xf32>
    %489 = arith.mulf %483, %488 : vector<8x32xf32>
    %490 = arith.addf %486, %489 : vector<8x32xf32>
    %491 = math.tanh %490 : vector<8x32xf32>
    %492 = arith.subf %464, %491 : vector<8x32xf32>
    %493 = arith.mulf %484, %492 : vector<8x32xf32>
    %494 = arith.addf %491, %493 : vector<8x32xf32>
    %495 = arith.truncf %494 : vector<8x32xf32> to vector<8x32xbf16>
    %c16 = arith.constant 16 : index
    %c0_93 = arith.constant 0 : index
    %c0_94 = arith.constant 0 : index
    %496 = vector.load %arg4[%c16, %c0_93, %c0_94] : memref<32x32x256xbf16, #tpu.memory_space<vmem>>, vector<1x32x256xbf16>
    %497 = vector.shape_cast %496 : vector<1x32x256xbf16> to vector<32x256xbf16>
    %cst_95 = arith.constant dense<0.000000e+00> : vector<8x256xf32>
    %498 = tpu.matmul %495, %497, %cst_95 {dimension_numbers = #tpu.dot_dimension_numbers<[1], [0], [0], [1], [0, 0, 1, 1], [], []>} : vector<8x32xbf16>, vector<32x256xbf16>, vector<8x256xf32> -> vector<8x256xf32>
    %499 = vector.extract_strided_slice %498 {offsets = [0, 128], sizes = [8, 96], strides = [1, 1]} : vector<8x256xf32> to vector<8x96xf32>
    %500 = vector.extract_strided_slice %498 {offsets = [0, 0], sizes = [8, 128], strides = [1, 1]} : vector<8x256xf32> to vector<8x128xf32>
    %c1_i32_96 = arith.constant 1 : i32
    %501 = tpu.dynamic_rotate %500 by %c1_i32_96 dim 0 : vector<8x128xf32>, i32 -> vector<8x128xf32>
    %502 = vector.extract_strided_slice %501 {offsets = [0, 0], sizes = [8, 96], strides = [1, 1]} : vector<8x128xf32> to vector<8x96xf32>
    %503 = arith.mulf %502, %14 : vector<8x96xf32>
    %504 = vector.extract_strided_slice %503 {offsets = [0, 32], sizes = [8, 64], strides = [1, 1]} : vector<8x96xf32> to vector<8x64xf32>
    %505 = vector.extract_strided_slice %499 {offsets = [0, 32], sizes = [8, 64], strides = [1, 1]} : vector<8x96xf32> to vector<8x64xf32>
    %506 = arith.addf %504, %505 : vector<8x64xf32>
    %507 = arith.addf %506, %9 : vector<8x64xf32>
    %508 = arith.negf %507 : vector<8x64xf32>
    %509 = math.exp %508 : vector<8x64xf32>
    %cst_97 = arith.constant 1.000000e+00 : f32
    %510 = vector.broadcast %cst_97 : f32 to vector<8x64xf32>
    %511 = arith.addf %510, %509 : vector<8x64xf32>
    %512 = arith.divf %510, %511 : vector<8x64xf32>
    %513 = vector.extract_strided_slice %512 {offsets = [0, 0], sizes = [8, 32], strides = [1, 1]} : vector<8x64xf32> to vector<8x32xf32>
    %514 = vector.extract_strided_slice %512 {offsets = [0, 32], sizes = [8, 32], strides = [1, 1]} : vector<8x64xf32> to vector<8x32xf32>
    %515 = vector.extract_strided_slice %503 {offsets = [0, 0], sizes = [8, 32], strides = [1, 1]} : vector<8x96xf32> to vector<8x32xf32>
    %516 = arith.addf %515, %7 : vector<8x32xf32>
    %517 = vector.extract_strided_slice %499 {offsets = [0, 0], sizes = [8, 32], strides = [1, 1]} : vector<8x96xf32> to vector<8x32xf32>
    %518 = arith.addf %517, %8 : vector<8x32xf32>
    %519 = arith.mulf %513, %518 : vector<8x32xf32>
    %520 = arith.addf %516, %519 : vector<8x32xf32>
    %521 = math.tanh %520 : vector<8x32xf32>
    %522 = arith.subf %494, %521 : vector<8x32xf32>
    %523 = arith.mulf %514, %522 : vector<8x32xf32>
    %524 = arith.addf %521, %523 : vector<8x32xf32>
    %525 = arith.truncf %524 : vector<8x32xf32> to vector<8x32xbf16>
    %c17 = arith.constant 17 : index
    %c0_98 = arith.constant 0 : index
    %c0_99 = arith.constant 0 : index
    %526 = vector.load %arg4[%c17, %c0_98, %c0_99] : memref<32x32x256xbf16, #tpu.memory_space<vmem>>, vector<1x32x256xbf16>
    %527 = vector.shape_cast %526 : vector<1x32x256xbf16> to vector<32x256xbf16>
    %cst_100 = arith.constant dense<0.000000e+00> : vector<8x256xf32>
    %528 = tpu.matmul %525, %527, %cst_100 {dimension_numbers = #tpu.dot_dimension_numbers<[1], [0], [0], [1], [0, 0, 1, 1], [], []>} : vector<8x32xbf16>, vector<32x256xbf16>, vector<8x256xf32> -> vector<8x256xf32>
    %529 = vector.extract_strided_slice %528 {offsets = [0, 128], sizes = [8, 96], strides = [1, 1]} : vector<8x256xf32> to vector<8x96xf32>
    %530 = vector.extract_strided_slice %528 {offsets = [0, 0], sizes = [8, 128], strides = [1, 1]} : vector<8x256xf32> to vector<8x128xf32>
    %c1_i32_101 = arith.constant 1 : i32
    %531 = tpu.dynamic_rotate %530 by %c1_i32_101 dim 0 : vector<8x128xf32>, i32 -> vector<8x128xf32>
    %532 = vector.extract_strided_slice %531 {offsets = [0, 0], sizes = [8, 96], strides = [1, 1]} : vector<8x128xf32> to vector<8x96xf32>
    %533 = arith.mulf %532, %14 : vector<8x96xf32>
    %534 = vector.extract_strided_slice %533 {offsets = [0, 32], sizes = [8, 64], strides = [1, 1]} : vector<8x96xf32> to vector<8x64xf32>
    %535 = vector.extract_strided_slice %529 {offsets = [0, 32], sizes = [8, 64], strides = [1, 1]} : vector<8x96xf32> to vector<8x64xf32>
    %536 = arith.addf %534, %535 : vector<8x64xf32>
    %537 = arith.addf %536, %9 : vector<8x64xf32>
    %538 = arith.negf %537 : vector<8x64xf32>
    %539 = math.exp %538 : vector<8x64xf32>
    %cst_102 = arith.constant 1.000000e+00 : f32
    %540 = vector.broadcast %cst_102 : f32 to vector<8x64xf32>
    %541 = arith.addf %540, %539 : vector<8x64xf32>
    %542 = arith.divf %540, %541 : vector<8x64xf32>
    %543 = vector.extract_strided_slice %542 {offsets = [0, 0], sizes = [8, 32], strides = [1, 1]} : vector<8x64xf32> to vector<8x32xf32>
    %544 = vector.extract_strided_slice %542 {offsets = [0, 32], sizes = [8, 32], strides = [1, 1]} : vector<8x64xf32> to vector<8x32xf32>
    %545 = vector.extract_strided_slice %533 {offsets = [0, 0], sizes = [8, 32], strides = [1, 1]} : vector<8x96xf32> to vector<8x32xf32>
    %546 = arith.addf %545, %7 : vector<8x32xf32>
    %547 = vector.extract_strided_slice %529 {offsets = [0, 0], sizes = [8, 32], strides = [1, 1]} : vector<8x96xf32> to vector<8x32xf32>
    %548 = arith.addf %547, %8 : vector<8x32xf32>
    %549 = arith.mulf %543, %548 : vector<8x32xf32>
    %550 = arith.addf %546, %549 : vector<8x32xf32>
    %551 = math.tanh %550 : vector<8x32xf32>
    %552 = arith.subf %524, %551 : vector<8x32xf32>
    %553 = arith.mulf %544, %552 : vector<8x32xf32>
    %554 = arith.addf %551, %553 : vector<8x32xf32>
    %555 = arith.truncf %554 : vector<8x32xf32> to vector<8x32xbf16>
    %c18 = arith.constant 18 : index
    %c0_103 = arith.constant 0 : index
    %c0_104 = arith.constant 0 : index
    %556 = vector.load %arg4[%c18, %c0_103, %c0_104] : memref<32x32x256xbf16, #tpu.memory_space<vmem>>, vector<1x32x256xbf16>
    %557 = vector.shape_cast %556 : vector<1x32x256xbf16> to vector<32x256xbf16>
    %cst_105 = arith.constant dense<0.000000e+00> : vector<8x256xf32>
    %558 = tpu.matmul %555, %557, %cst_105 {dimension_numbers = #tpu.dot_dimension_numbers<[1], [0], [0], [1], [0, 0, 1, 1], [], []>} : vector<8x32xbf16>, vector<32x256xbf16>, vector<8x256xf32> -> vector<8x256xf32>
    %559 = vector.extract_strided_slice %558 {offsets = [0, 128], sizes = [8, 96], strides = [1, 1]} : vector<8x256xf32> to vector<8x96xf32>
    %560 = vector.extract_strided_slice %558 {offsets = [0, 0], sizes = [8, 128], strides = [1, 1]} : vector<8x256xf32> to vector<8x128xf32>
    %c1_i32_106 = arith.constant 1 : i32
    %561 = tpu.dynamic_rotate %560 by %c1_i32_106 dim 0 : vector<8x128xf32>, i32 -> vector<8x128xf32>
    %562 = vector.extract_strided_slice %561 {offsets = [0, 0], sizes = [8, 96], strides = [1, 1]} : vector<8x128xf32> to vector<8x96xf32>
    %563 = arith.mulf %562, %14 : vector<8x96xf32>
    %564 = vector.extract_strided_slice %563 {offsets = [0, 32], sizes = [8, 64], strides = [1, 1]} : vector<8x96xf32> to vector<8x64xf32>
    %565 = vector.extract_strided_slice %559 {offsets = [0, 32], sizes = [8, 64], strides = [1, 1]} : vector<8x96xf32> to vector<8x64xf32>
    %566 = arith.addf %564, %565 : vector<8x64xf32>
    %567 = arith.addf %566, %9 : vector<8x64xf32>
    %568 = arith.negf %567 : vector<8x64xf32>
    %569 = math.exp %568 : vector<8x64xf32>
    %cst_107 = arith.constant 1.000000e+00 : f32
    %570 = vector.broadcast %cst_107 : f32 to vector<8x64xf32>
    %571 = arith.addf %570, %569 : vector<8x64xf32>
    %572 = arith.divf %570, %571 : vector<8x64xf32>
    %573 = vector.extract_strided_slice %572 {offsets = [0, 0], sizes = [8, 32], strides = [1, 1]} : vector<8x64xf32> to vector<8x32xf32>
    %574 = vector.extract_strided_slice %572 {offsets = [0, 32], sizes = [8, 32], strides = [1, 1]} : vector<8x64xf32> to vector<8x32xf32>
    %575 = vector.extract_strided_slice %563 {offsets = [0, 0], sizes = [8, 32], strides = [1, 1]} : vector<8x96xf32> to vector<8x32xf32>
    %576 = arith.addf %575, %7 : vector<8x32xf32>
    %577 = vector.extract_strided_slice %559 {offsets = [0, 0], sizes = [8, 32], strides = [1, 1]} : vector<8x96xf32> to vector<8x32xf32>
    %578 = arith.addf %577, %8 : vector<8x32xf32>
    %579 = arith.mulf %573, %578 : vector<8x32xf32>
    %580 = arith.addf %576, %579 : vector<8x32xf32>
    %581 = math.tanh %580 : vector<8x32xf32>
    %582 = arith.subf %554, %581 : vector<8x32xf32>
    %583 = arith.mulf %574, %582 : vector<8x32xf32>
    %584 = arith.addf %581, %583 : vector<8x32xf32>
    %585 = arith.truncf %584 : vector<8x32xf32> to vector<8x32xbf16>
    %c19 = arith.constant 19 : index
    %c0_108 = arith.constant 0 : index
    %c0_109 = arith.constant 0 : index
    %586 = vector.load %arg4[%c19, %c0_108, %c0_109] : memref<32x32x256xbf16, #tpu.memory_space<vmem>>, vector<1x32x256xbf16>
    %587 = vector.shape_cast %586 : vector<1x32x256xbf16> to vector<32x256xbf16>
    %cst_110 = arith.constant dense<0.000000e+00> : vector<8x256xf32>
    %588 = tpu.matmul %585, %587, %cst_110 {dimension_numbers = #tpu.dot_dimension_numbers<[1], [0], [0], [1], [0, 0, 1, 1], [], []>} : vector<8x32xbf16>, vector<32x256xbf16>, vector<8x256xf32> -> vector<8x256xf32>
    %589 = vector.extract_strided_slice %588 {offsets = [0, 128], sizes = [8, 96], strides = [1, 1]} : vector<8x256xf32> to vector<8x96xf32>
    %590 = vector.extract_strided_slice %588 {offsets = [0, 0], sizes = [8, 128], strides = [1, 1]} : vector<8x256xf32> to vector<8x128xf32>
    %c1_i32_111 = arith.constant 1 : i32
    %591 = tpu.dynamic_rotate %590 by %c1_i32_111 dim 0 : vector<8x128xf32>, i32 -> vector<8x128xf32>
    %592 = vector.extract_strided_slice %591 {offsets = [0, 0], sizes = [8, 96], strides = [1, 1]} : vector<8x128xf32> to vector<8x96xf32>
    %593 = arith.mulf %592, %14 : vector<8x96xf32>
    %594 = vector.extract_strided_slice %593 {offsets = [0, 32], sizes = [8, 64], strides = [1, 1]} : vector<8x96xf32> to vector<8x64xf32>
    %595 = vector.extract_strided_slice %589 {offsets = [0, 32], sizes = [8, 64], strides = [1, 1]} : vector<8x96xf32> to vector<8x64xf32>
    %596 = arith.addf %594, %595 : vector<8x64xf32>
    %597 = arith.addf %596, %9 : vector<8x64xf32>
    %598 = arith.negf %597 : vector<8x64xf32>
    %599 = math.exp %598 : vector<8x64xf32>
    %cst_112 = arith.constant 1.000000e+00 : f32
    %600 = vector.broadcast %cst_112 : f32 to vector<8x64xf32>
    %601 = arith.addf %600, %599 : vector<8x64xf32>
    %602 = arith.divf %600, %601 : vector<8x64xf32>
    %603 = vector.extract_strided_slice %602 {offsets = [0, 0], sizes = [8, 32], strides = [1, 1]} : vector<8x64xf32> to vector<8x32xf32>
    %604 = vector.extract_strided_slice %602 {offsets = [0, 32], sizes = [8, 32], strides = [1, 1]} : vector<8x64xf32> to vector<8x32xf32>
    %605 = vector.extract_strided_slice %593 {offsets = [0, 0], sizes = [8, 32], strides = [1, 1]} : vector<8x96xf32> to vector<8x32xf32>
    %606 = arith.addf %605, %7 : vector<8x32xf32>
    %607 = vector.extract_strided_slice %589 {offsets = [0, 0], sizes = [8, 32], strides = [1, 1]} : vector<8x96xf32> to vector<8x32xf32>
    %608 = arith.addf %607, %8 : vector<8x32xf32>
    %609 = arith.mulf %603, %608 : vector<8x32xf32>
    %610 = arith.addf %606, %609 : vector<8x32xf32>
    %611 = math.tanh %610 : vector<8x32xf32>
    %612 = arith.subf %584, %611 : vector<8x32xf32>
    %613 = arith.mulf %604, %612 : vector<8x32xf32>
    %614 = arith.addf %611, %613 : vector<8x32xf32>
    %615 = arith.truncf %614 : vector<8x32xf32> to vector<8x32xbf16>
    %c20 = arith.constant 20 : index
    %c0_113 = arith.constant 0 : index
    %c0_114 = arith.constant 0 : index
    %616 = vector.load %arg4[%c20, %c0_113, %c0_114] : memref<32x32x256xbf16, #tpu.memory_space<vmem>>, vector<1x32x256xbf16>
    %617 = vector.shape_cast %616 : vector<1x32x256xbf16> to vector<32x256xbf16>
    %cst_115 = arith.constant dense<0.000000e+00> : vector<8x256xf32>
    %618 = tpu.matmul %615, %617, %cst_115 {dimension_numbers = #tpu.dot_dimension_numbers<[1], [0], [0], [1], [0, 0, 1, 1], [], []>} : vector<8x32xbf16>, vector<32x256xbf16>, vector<8x256xf32> -> vector<8x256xf32>
    %619 = vector.extract_strided_slice %618 {offsets = [0, 128], sizes = [8, 96], strides = [1, 1]} : vector<8x256xf32> to vector<8x96xf32>
    %620 = vector.extract_strided_slice %618 {offsets = [0, 0], sizes = [8, 128], strides = [1, 1]} : vector<8x256xf32> to vector<8x128xf32>
    %c1_i32_116 = arith.constant 1 : i32
    %621 = tpu.dynamic_rotate %620 by %c1_i32_116 dim 0 : vector<8x128xf32>, i32 -> vector<8x128xf32>
    %622 = vector.extract_strided_slice %621 {offsets = [0, 0], sizes = [8, 96], strides = [1, 1]} : vector<8x128xf32> to vector<8x96xf32>
    %623 = arith.mulf %622, %14 : vector<8x96xf32>
    %624 = vector.extract_strided_slice %623 {offsets = [0, 32], sizes = [8, 64], strides = [1, 1]} : vector<8x96xf32> to vector<8x64xf32>
    %625 = vector.extract_strided_slice %619 {offsets = [0, 32], sizes = [8, 64], strides = [1, 1]} : vector<8x96xf32> to vector<8x64xf32>
    %626 = arith.addf %624, %625 : vector<8x64xf32>
    %627 = arith.addf %626, %9 : vector<8x64xf32>
    %628 = arith.negf %627 : vector<8x64xf32>
    %629 = math.exp %628 : vector<8x64xf32>
    %cst_117 = arith.constant 1.000000e+00 : f32
    %630 = vector.broadcast %cst_117 : f32 to vector<8x64xf32>
    %631 = arith.addf %630, %629 : vector<8x64xf32>
    %632 = arith.divf %630, %631 : vector<8x64xf32>
    %633 = vector.extract_strided_slice %632 {offsets = [0, 0], sizes = [8, 32], strides = [1, 1]} : vector<8x64xf32> to vector<8x32xf32>
    %634 = vector.extract_strided_slice %632 {offsets = [0, 32], sizes = [8, 32], strides = [1, 1]} : vector<8x64xf32> to vector<8x32xf32>
    %635 = vector.extract_strided_slice %623 {offsets = [0, 0], sizes = [8, 32], strides = [1, 1]} : vector<8x96xf32> to vector<8x32xf32>
    %636 = arith.addf %635, %7 : vector<8x32xf32>
    %637 = vector.extract_strided_slice %619 {offsets = [0, 0], sizes = [8, 32], strides = [1, 1]} : vector<8x96xf32> to vector<8x32xf32>
    %638 = arith.addf %637, %8 : vector<8x32xf32>
    %639 = arith.mulf %633, %638 : vector<8x32xf32>
    %640 = arith.addf %636, %639 : vector<8x32xf32>
    %641 = math.tanh %640 : vector<8x32xf32>
    %642 = arith.subf %614, %641 : vector<8x32xf32>
    %643 = arith.mulf %634, %642 : vector<8x32xf32>
    %644 = arith.addf %641, %643 : vector<8x32xf32>
    %645 = arith.truncf %644 : vector<8x32xf32> to vector<8x32xbf16>
    %c21 = arith.constant 21 : index
    %c0_118 = arith.constant 0 : index
    %c0_119 = arith.constant 0 : index
    %646 = vector.load %arg4[%c21, %c0_118, %c0_119] : memref<32x32x256xbf16, #tpu.memory_space<vmem>>, vector<1x32x256xbf16>
    %647 = vector.shape_cast %646 : vector<1x32x256xbf16> to vector<32x256xbf16>
    %cst_120 = arith.constant dense<0.000000e+00> : vector<8x256xf32>
    %648 = tpu.matmul %645, %647, %cst_120 {dimension_numbers = #tpu.dot_dimension_numbers<[1], [0], [0], [1], [0, 0, 1, 1], [], []>} : vector<8x32xbf16>, vector<32x256xbf16>, vector<8x256xf32> -> vector<8x256xf32>
    %649 = vector.extract_strided_slice %648 {offsets = [0, 128], sizes = [8, 96], strides = [1, 1]} : vector<8x256xf32> to vector<8x96xf32>
    %650 = vector.extract_strided_slice %648 {offsets = [0, 0], sizes = [8, 128], strides = [1, 1]} : vector<8x256xf32> to vector<8x128xf32>
    %c1_i32_121 = arith.constant 1 : i32
    %651 = tpu.dynamic_rotate %650 by %c1_i32_121 dim 0 : vector<8x128xf32>, i32 -> vector<8x128xf32>
    %652 = vector.extract_strided_slice %651 {offsets = [0, 0], sizes = [8, 96], strides = [1, 1]} : vector<8x128xf32> to vector<8x96xf32>
    %653 = arith.mulf %652, %14 : vector<8x96xf32>
    %654 = vector.extract_strided_slice %653 {offsets = [0, 32], sizes = [8, 64], strides = [1, 1]} : vector<8x96xf32> to vector<8x64xf32>
    %655 = vector.extract_strided_slice %649 {offsets = [0, 32], sizes = [8, 64], strides = [1, 1]} : vector<8x96xf32> to vector<8x64xf32>
    %656 = arith.addf %654, %655 : vector<8x64xf32>
    %657 = arith.addf %656, %9 : vector<8x64xf32>
    %658 = arith.negf %657 : vector<8x64xf32>
    %659 = math.exp %658 : vector<8x64xf32>
    %cst_122 = arith.constant 1.000000e+00 : f32
    %660 = vector.broadcast %cst_122 : f32 to vector<8x64xf32>
    %661 = arith.addf %660, %659 : vector<8x64xf32>
    %662 = arith.divf %660, %661 : vector<8x64xf32>
    %663 = vector.extract_strided_slice %662 {offsets = [0, 0], sizes = [8, 32], strides = [1, 1]} : vector<8x64xf32> to vector<8x32xf32>
    %664 = vector.extract_strided_slice %662 {offsets = [0, 32], sizes = [8, 32], strides = [1, 1]} : vector<8x64xf32> to vector<8x32xf32>
    %665 = vector.extract_strided_slice %653 {offsets = [0, 0], sizes = [8, 32], strides = [1, 1]} : vector<8x96xf32> to vector<8x32xf32>
    %666 = arith.addf %665, %7 : vector<8x32xf32>
    %667 = vector.extract_strided_slice %649 {offsets = [0, 0], sizes = [8, 32], strides = [1, 1]} : vector<8x96xf32> to vector<8x32xf32>
    %668 = arith.addf %667, %8 : vector<8x32xf32>
    %669 = arith.mulf %663, %668 : vector<8x32xf32>
    %670 = arith.addf %666, %669 : vector<8x32xf32>
    %671 = math.tanh %670 : vector<8x32xf32>
    %672 = arith.subf %644, %671 : vector<8x32xf32>
    %673 = arith.mulf %664, %672 : vector<8x32xf32>
    %674 = arith.addf %671, %673 : vector<8x32xf32>
    %675 = arith.truncf %674 : vector<8x32xf32> to vector<8x32xbf16>
    %c22 = arith.constant 22 : index
    %c0_123 = arith.constant 0 : index
    %c0_124 = arith.constant 0 : index
    %676 = vector.load %arg4[%c22, %c0_123, %c0_124] : memref<32x32x256xbf16, #tpu.memory_space<vmem>>, vector<1x32x256xbf16>
    %677 = vector.shape_cast %676 : vector<1x32x256xbf16> to vector<32x256xbf16>
    %cst_125 = arith.constant dense<0.000000e+00> : vector<8x256xf32>
    %678 = tpu.matmul %675, %677, %cst_125 {dimension_numbers = #tpu.dot_dimension_numbers<[1], [0], [0], [1], [0, 0, 1, 1], [], []>} : vector<8x32xbf16>, vector<32x256xbf16>, vector<8x256xf32> -> vector<8x256xf32>
    %679 = vector.extract_strided_slice %678 {offsets = [0, 128], sizes = [8, 96], strides = [1, 1]} : vector<8x256xf32> to vector<8x96xf32>
    %680 = vector.extract_strided_slice %678 {offsets = [0, 0], sizes = [8, 128], strides = [1, 1]} : vector<8x256xf32> to vector<8x128xf32>
    %c1_i32_126 = arith.constant 1 : i32
    %681 = tpu.dynamic_rotate %680 by %c1_i32_126 dim 0 : vector<8x128xf32>, i32 -> vector<8x128xf32>
    %682 = vector.extract_strided_slice %681 {offsets = [0, 0], sizes = [8, 96], strides = [1, 1]} : vector<8x128xf32> to vector<8x96xf32>
    %683 = arith.mulf %682, %14 : vector<8x96xf32>
    %684 = vector.extract_strided_slice %683 {offsets = [0, 32], sizes = [8, 64], strides = [1, 1]} : vector<8x96xf32> to vector<8x64xf32>
    %685 = vector.extract_strided_slice %679 {offsets = [0, 32], sizes = [8, 64], strides = [1, 1]} : vector<8x96xf32> to vector<8x64xf32>
    %686 = arith.addf %684, %685 : vector<8x64xf32>
    %687 = arith.addf %686, %9 : vector<8x64xf32>
    %688 = arith.negf %687 : vector<8x64xf32>
    %689 = math.exp %688 : vector<8x64xf32>
    %cst_127 = arith.constant 1.000000e+00 : f32
    %690 = vector.broadcast %cst_127 : f32 to vector<8x64xf32>
    %691 = arith.addf %690, %689 : vector<8x64xf32>
    %692 = arith.divf %690, %691 : vector<8x64xf32>
    %693 = vector.extract_strided_slice %692 {offsets = [0, 0], sizes = [8, 32], strides = [1, 1]} : vector<8x64xf32> to vector<8x32xf32>
    %694 = vector.extract_strided_slice %692 {offsets = [0, 32], sizes = [8, 32], strides = [1, 1]} : vector<8x64xf32> to vector<8x32xf32>
    %695 = vector.extract_strided_slice %683 {offsets = [0, 0], sizes = [8, 32], strides = [1, 1]} : vector<8x96xf32> to vector<8x32xf32>
    %696 = arith.addf %695, %7 : vector<8x32xf32>
    %697 = vector.extract_strided_slice %679 {offsets = [0, 0], sizes = [8, 32], strides = [1, 1]} : vector<8x96xf32> to vector<8x32xf32>
    %698 = arith.addf %697, %8 : vector<8x32xf32>
    %699 = arith.mulf %693, %698 : vector<8x32xf32>
    %700 = arith.addf %696, %699 : vector<8x32xf32>
    %701 = math.tanh %700 : vector<8x32xf32>
    %702 = arith.subf %674, %701 : vector<8x32xf32>
    %703 = arith.mulf %694, %702 : vector<8x32xf32>
    %704 = arith.addf %701, %703 : vector<8x32xf32>
    %705 = arith.truncf %704 : vector<8x32xf32> to vector<8x32xbf16>
    %c23 = arith.constant 23 : index
    %c0_128 = arith.constant 0 : index
    %c0_129 = arith.constant 0 : index
    %706 = vector.load %arg4[%c23, %c0_128, %c0_129] : memref<32x32x256xbf16, #tpu.memory_space<vmem>>, vector<1x32x256xbf16>
    %707 = vector.shape_cast %706 : vector<1x32x256xbf16> to vector<32x256xbf16>
    %cst_130 = arith.constant dense<0.000000e+00> : vector<8x256xf32>
    %708 = tpu.matmul %705, %707, %cst_130 {dimension_numbers = #tpu.dot_dimension_numbers<[1], [0], [0], [1], [0, 0, 1, 1], [], []>} : vector<8x32xbf16>, vector<32x256xbf16>, vector<8x256xf32> -> vector<8x256xf32>
    %709 = vector.extract_strided_slice %708 {offsets = [0, 128], sizes = [8, 96], strides = [1, 1]} : vector<8x256xf32> to vector<8x96xf32>
    %710 = vector.extract_strided_slice %708 {offsets = [0, 0], sizes = [8, 128], strides = [1, 1]} : vector<8x256xf32> to vector<8x128xf32>
    %c1_i32_131 = arith.constant 1 : i32
    %711 = tpu.dynamic_rotate %710 by %c1_i32_131 dim 0 : vector<8x128xf32>, i32 -> vector<8x128xf32>
    %712 = vector.extract_strided_slice %711 {offsets = [0, 0], sizes = [8, 96], strides = [1, 1]} : vector<8x128xf32> to vector<8x96xf32>
    %713 = arith.mulf %712, %14 : vector<8x96xf32>
    %714 = vector.extract_strided_slice %713 {offsets = [0, 32], sizes = [8, 64], strides = [1, 1]} : vector<8x96xf32> to vector<8x64xf32>
    %715 = vector.extract_strided_slice %709 {offsets = [0, 32], sizes = [8, 64], strides = [1, 1]} : vector<8x96xf32> to vector<8x64xf32>
    %716 = arith.addf %714, %715 : vector<8x64xf32>
    %717 = arith.addf %716, %9 : vector<8x64xf32>
    %718 = arith.negf %717 : vector<8x64xf32>
    %719 = math.exp %718 : vector<8x64xf32>
    %cst_132 = arith.constant 1.000000e+00 : f32
    %720 = vector.broadcast %cst_132 : f32 to vector<8x64xf32>
    %721 = arith.addf %720, %719 : vector<8x64xf32>
    %722 = arith.divf %720, %721 : vector<8x64xf32>
    %723 = vector.extract_strided_slice %722 {offsets = [0, 0], sizes = [8, 32], strides = [1, 1]} : vector<8x64xf32> to vector<8x32xf32>
    %724 = vector.extract_strided_slice %722 {offsets = [0, 32], sizes = [8, 32], strides = [1, 1]} : vector<8x64xf32> to vector<8x32xf32>
    %725 = vector.extract_strided_slice %713 {offsets = [0, 0], sizes = [8, 32], strides = [1, 1]} : vector<8x96xf32> to vector<8x32xf32>
    %726 = arith.addf %725, %7 : vector<8x32xf32>
    %727 = vector.extract_strided_slice %709 {offsets = [0, 0], sizes = [8, 32], strides = [1, 1]} : vector<8x96xf32> to vector<8x32xf32>
    %728 = arith.addf %727, %8 : vector<8x32xf32>
    %729 = arith.mulf %723, %728 : vector<8x32xf32>
    %730 = arith.addf %726, %729 : vector<8x32xf32>
    %731 = math.tanh %730 : vector<8x32xf32>
    %732 = arith.subf %704, %731 : vector<8x32xf32>
    %733 = arith.mulf %724, %732 : vector<8x32xf32>
    %734 = arith.addf %731, %733 : vector<8x32xf32>
    %735 = arith.truncf %734 : vector<8x32xf32> to vector<8x32xbf16>
    %c24 = arith.constant 24 : index
    %c0_133 = arith.constant 0 : index
    %c0_134 = arith.constant 0 : index
    %736 = vector.load %arg4[%c24, %c0_133, %c0_134] : memref<32x32x256xbf16, #tpu.memory_space<vmem>>, vector<1x32x256xbf16>
    %737 = vector.shape_cast %736 : vector<1x32x256xbf16> to vector<32x256xbf16>
    %cst_135 = arith.constant dense<0.000000e+00> : vector<8x256xf32>
    %738 = tpu.matmul %735, %737, %cst_135 {dimension_numbers = #tpu.dot_dimension_numbers<[1], [0], [0], [1], [0, 0, 1, 1], [], []>} : vector<8x32xbf16>, vector<32x256xbf16>, vector<8x256xf32> -> vector<8x256xf32>
    %739 = vector.extract_strided_slice %738 {offsets = [0, 128], sizes = [8, 96], strides = [1, 1]} : vector<8x256xf32> to vector<8x96xf32>
    %740 = vector.extract_strided_slice %738 {offsets = [0, 0], sizes = [8, 128], strides = [1, 1]} : vector<8x256xf32> to vector<8x128xf32>
    %c1_i32_136 = arith.constant 1 : i32
    %741 = tpu.dynamic_rotate %740 by %c1_i32_136 dim 0 : vector<8x128xf32>, i32 -> vector<8x128xf32>
    %742 = vector.extract_strided_slice %741 {offsets = [0, 0], sizes = [8, 96], strides = [1, 1]} : vector<8x128xf32> to vector<8x96xf32>
    %743 = arith.mulf %742, %14 : vector<8x96xf32>
    %744 = vector.extract_strided_slice %743 {offsets = [0, 32], sizes = [8, 64], strides = [1, 1]} : vector<8x96xf32> to vector<8x64xf32>
    %745 = vector.extract_strided_slice %739 {offsets = [0, 32], sizes = [8, 64], strides = [1, 1]} : vector<8x96xf32> to vector<8x64xf32>
    %746 = arith.addf %744, %745 : vector<8x64xf32>
    %747 = arith.addf %746, %9 : vector<8x64xf32>
    %748 = arith.negf %747 : vector<8x64xf32>
    %749 = math.exp %748 : vector<8x64xf32>
    %cst_137 = arith.constant 1.000000e+00 : f32
    %750 = vector.broadcast %cst_137 : f32 to vector<8x64xf32>
    %751 = arith.addf %750, %749 : vector<8x64xf32>
    %752 = arith.divf %750, %751 : vector<8x64xf32>
    %753 = vector.extract_strided_slice %752 {offsets = [0, 0], sizes = [8, 32], strides = [1, 1]} : vector<8x64xf32> to vector<8x32xf32>
    %754 = vector.extract_strided_slice %752 {offsets = [0, 32], sizes = [8, 32], strides = [1, 1]} : vector<8x64xf32> to vector<8x32xf32>
    %755 = vector.extract_strided_slice %743 {offsets = [0, 0], sizes = [8, 32], strides = [1, 1]} : vector<8x96xf32> to vector<8x32xf32>
    %756 = arith.addf %755, %7 : vector<8x32xf32>
    %757 = vector.extract_strided_slice %739 {offsets = [0, 0], sizes = [8, 32], strides = [1, 1]} : vector<8x96xf32> to vector<8x32xf32>
    %758 = arith.addf %757, %8 : vector<8x32xf32>
    %759 = arith.mulf %753, %758 : vector<8x32xf32>
    %760 = arith.addf %756, %759 : vector<8x32xf32>
    %761 = math.tanh %760 : vector<8x32xf32>
    %762 = arith.subf %734, %761 : vector<8x32xf32>
    %763 = arith.mulf %754, %762 : vector<8x32xf32>
    %764 = arith.addf %761, %763 : vector<8x32xf32>
    %765 = arith.truncf %764 : vector<8x32xf32> to vector<8x32xbf16>
    %c25 = arith.constant 25 : index
    %c0_138 = arith.constant 0 : index
    %c0_139 = arith.constant 0 : index
    %766 = vector.load %arg4[%c25, %c0_138, %c0_139] : memref<32x32x256xbf16, #tpu.memory_space<vmem>>, vector<1x32x256xbf16>
    %767 = vector.shape_cast %766 : vector<1x32x256xbf16> to vector<32x256xbf16>
    %cst_140 = arith.constant dense<0.000000e+00> : vector<8x256xf32>
    %768 = tpu.matmul %765, %767, %cst_140 {dimension_numbers = #tpu.dot_dimension_numbers<[1], [0], [0], [1], [0, 0, 1, 1], [], []>} : vector<8x32xbf16>, vector<32x256xbf16>, vector<8x256xf32> -> vector<8x256xf32>
    %769 = vector.extract_strided_slice %768 {offsets = [0, 128], sizes = [8, 96], strides = [1, 1]} : vector<8x256xf32> to vector<8x96xf32>
    %770 = vector.extract_strided_slice %768 {offsets = [0, 0], sizes = [8, 128], strides = [1, 1]} : vector<8x256xf32> to vector<8x128xf32>
    %c1_i32_141 = arith.constant 1 : i32
    %771 = tpu.dynamic_rotate %770 by %c1_i32_141 dim 0 : vector<8x128xf32>, i32 -> vector<8x128xf32>
    %772 = vector.extract_strided_slice %771 {offsets = [0, 0], sizes = [8, 96], strides = [1, 1]} : vector<8x128xf32> to vector<8x96xf32>
    %773 = arith.mulf %772, %14 : vector<8x96xf32>
    %774 = vector.extract_strided_slice %773 {offsets = [0, 32], sizes = [8, 64], strides = [1, 1]} : vector<8x96xf32> to vector<8x64xf32>
    %775 = vector.extract_strided_slice %769 {offsets = [0, 32], sizes = [8, 64], strides = [1, 1]} : vector<8x96xf32> to vector<8x64xf32>
    %776 = arith.addf %774, %775 : vector<8x64xf32>
    %777 = arith.addf %776, %9 : vector<8x64xf32>
    %778 = arith.negf %777 : vector<8x64xf32>
    %779 = math.exp %778 : vector<8x64xf32>
    %cst_142 = arith.constant 1.000000e+00 : f32
    %780 = vector.broadcast %cst_142 : f32 to vector<8x64xf32>
    %781 = arith.addf %780, %779 : vector<8x64xf32>
    %782 = arith.divf %780, %781 : vector<8x64xf32>
    %783 = vector.extract_strided_slice %782 {offsets = [0, 0], sizes = [8, 32], strides = [1, 1]} : vector<8x64xf32> to vector<8x32xf32>
    %784 = vector.extract_strided_slice %782 {offsets = [0, 32], sizes = [8, 32], strides = [1, 1]} : vector<8x64xf32> to vector<8x32xf32>
    %785 = vector.extract_strided_slice %773 {offsets = [0, 0], sizes = [8, 32], strides = [1, 1]} : vector<8x96xf32> to vector<8x32xf32>
    %786 = arith.addf %785, %7 : vector<8x32xf32>
    %787 = vector.extract_strided_slice %769 {offsets = [0, 0], sizes = [8, 32], strides = [1, 1]} : vector<8x96xf32> to vector<8x32xf32>
    %788 = arith.addf %787, %8 : vector<8x32xf32>
    %789 = arith.mulf %783, %788 : vector<8x32xf32>
    %790 = arith.addf %786, %789 : vector<8x32xf32>
    %791 = math.tanh %790 : vector<8x32xf32>
    %792 = arith.subf %764, %791 : vector<8x32xf32>
    %793 = arith.mulf %784, %792 : vector<8x32xf32>
    %794 = arith.addf %791, %793 : vector<8x32xf32>
    %795 = arith.truncf %794 : vector<8x32xf32> to vector<8x32xbf16>
    %c26 = arith.constant 26 : index
    %c0_143 = arith.constant 0 : index
    %c0_144 = arith.constant 0 : index
    %796 = vector.load %arg4[%c26, %c0_143, %c0_144] : memref<32x32x256xbf16, #tpu.memory_space<vmem>>, vector<1x32x256xbf16>
    %797 = vector.shape_cast %796 : vector<1x32x256xbf16> to vector<32x256xbf16>
    %cst_145 = arith.constant dense<0.000000e+00> : vector<8x256xf32>
    %798 = tpu.matmul %795, %797, %cst_145 {dimension_numbers = #tpu.dot_dimension_numbers<[1], [0], [0], [1], [0, 0, 1, 1], [], []>} : vector<8x32xbf16>, vector<32x256xbf16>, vector<8x256xf32> -> vector<8x256xf32>
    %799 = vector.extract_strided_slice %798 {offsets = [0, 128], sizes = [8, 96], strides = [1, 1]} : vector<8x256xf32> to vector<8x96xf32>
    %800 = vector.extract_strided_slice %798 {offsets = [0, 0], sizes = [8, 128], strides = [1, 1]} : vector<8x256xf32> to vector<8x128xf32>
    %c1_i32_146 = arith.constant 1 : i32
    %801 = tpu.dynamic_rotate %800 by %c1_i32_146 dim 0 : vector<8x128xf32>, i32 -> vector<8x128xf32>
    %802 = vector.extract_strided_slice %801 {offsets = [0, 0], sizes = [8, 96], strides = [1, 1]} : vector<8x128xf32> to vector<8x96xf32>
    %803 = arith.mulf %802, %14 : vector<8x96xf32>
    %804 = vector.extract_strided_slice %803 {offsets = [0, 32], sizes = [8, 64], strides = [1, 1]} : vector<8x96xf32> to vector<8x64xf32>
    %805 = vector.extract_strided_slice %799 {offsets = [0, 32], sizes = [8, 64], strides = [1, 1]} : vector<8x96xf32> to vector<8x64xf32>
    %806 = arith.addf %804, %805 : vector<8x64xf32>
    %807 = arith.addf %806, %9 : vector<8x64xf32>
    %808 = arith.negf %807 : vector<8x64xf32>
    %809 = math.exp %808 : vector<8x64xf32>
    %cst_147 = arith.constant 1.000000e+00 : f32
    %810 = vector.broadcast %cst_147 : f32 to vector<8x64xf32>
    %811 = arith.addf %810, %809 : vector<8x64xf32>
    %812 = arith.divf %810, %811 : vector<8x64xf32>
    %813 = vector.extract_strided_slice %812 {offsets = [0, 0], sizes = [8, 32], strides = [1, 1]} : vector<8x64xf32> to vector<8x32xf32>
    %814 = vector.extract_strided_slice %812 {offsets = [0, 32], sizes = [8, 32], strides = [1, 1]} : vector<8x64xf32> to vector<8x32xf32>
    %815 = vector.extract_strided_slice %803 {offsets = [0, 0], sizes = [8, 32], strides = [1, 1]} : vector<8x96xf32> to vector<8x32xf32>
    %816 = arith.addf %815, %7 : vector<8x32xf32>
    %817 = vector.extract_strided_slice %799 {offsets = [0, 0], sizes = [8, 32], strides = [1, 1]} : vector<8x96xf32> to vector<8x32xf32>
    %818 = arith.addf %817, %8 : vector<8x32xf32>
    %819 = arith.mulf %813, %818 : vector<8x32xf32>
    %820 = arith.addf %816, %819 : vector<8x32xf32>
    %821 = math.tanh %820 : vector<8x32xf32>
    %822 = arith.subf %794, %821 : vector<8x32xf32>
    %823 = arith.mulf %814, %822 : vector<8x32xf32>
    %824 = arith.addf %821, %823 : vector<8x32xf32>
    %825 = arith.truncf %824 : vector<8x32xf32> to vector<8x32xbf16>
    %c27 = arith.constant 27 : index
    %c0_148 = arith.constant 0 : index
    %c0_149 = arith.constant 0 : index
    %826 = vector.load %arg4[%c27, %c0_148, %c0_149] : memref<32x32x256xbf16, #tpu.memory_space<vmem>>, vector<1x32x256xbf16>
    %827 = vector.shape_cast %826 : vector<1x32x256xbf16> to vector<32x256xbf16>
    %cst_150 = arith.constant dense<0.000000e+00> : vector<8x256xf32>
    %828 = tpu.matmul %825, %827, %cst_150 {dimension_numbers = #tpu.dot_dimension_numbers<[1], [0], [0], [1], [0, 0, 1, 1], [], []>} : vector<8x32xbf16>, vector<32x256xbf16>, vector<8x256xf32> -> vector<8x256xf32>
    %829 = vector.extract_strided_slice %828 {offsets = [0, 128], sizes = [8, 96], strides = [1, 1]} : vector<8x256xf32> to vector<8x96xf32>
    %830 = vector.extract_strided_slice %828 {offsets = [0, 0], sizes = [8, 128], strides = [1, 1]} : vector<8x256xf32> to vector<8x128xf32>
    %c1_i32_151 = arith.constant 1 : i32
    %831 = tpu.dynamic_rotate %830 by %c1_i32_151 dim 0 : vector<8x128xf32>, i32 -> vector<8x128xf32>
    %832 = vector.extract_strided_slice %831 {offsets = [0, 0], sizes = [8, 96], strides = [1, 1]} : vector<8x128xf32> to vector<8x96xf32>
    %833 = arith.mulf %832, %14 : vector<8x96xf32>
    %834 = vector.extract_strided_slice %833 {offsets = [0, 32], sizes = [8, 64], strides = [1, 1]} : vector<8x96xf32> to vector<8x64xf32>
    %835 = vector.extract_strided_slice %829 {offsets = [0, 32], sizes = [8, 64], strides = [1, 1]} : vector<8x96xf32> to vector<8x64xf32>
    %836 = arith.addf %834, %835 : vector<8x64xf32>
    %837 = arith.addf %836, %9 : vector<8x64xf32>
    %838 = arith.negf %837 : vector<8x64xf32>
    %839 = math.exp %838 : vector<8x64xf32>
    %cst_152 = arith.constant 1.000000e+00 : f32
    %840 = vector.broadcast %cst_152 : f32 to vector<8x64xf32>
    %841 = arith.addf %840, %839 : vector<8x64xf32>
    %842 = arith.divf %840, %841 : vector<8x64xf32>
    %843 = vector.extract_strided_slice %842 {offsets = [0, 0], sizes = [8, 32], strides = [1, 1]} : vector<8x64xf32> to vector<8x32xf32>
    %844 = vector.extract_strided_slice %842 {offsets = [0, 32], sizes = [8, 32], strides = [1, 1]} : vector<8x64xf32> to vector<8x32xf32>
    %845 = vector.extract_strided_slice %833 {offsets = [0, 0], sizes = [8, 32], strides = [1, 1]} : vector<8x96xf32> to vector<8x32xf32>
    %846 = arith.addf %845, %7 : vector<8x32xf32>
    %847 = vector.extract_strided_slice %829 {offsets = [0, 0], sizes = [8, 32], strides = [1, 1]} : vector<8x96xf32> to vector<8x32xf32>
    %848 = arith.addf %847, %8 : vector<8x32xf32>
    %849 = arith.mulf %843, %848 : vector<8x32xf32>
    %850 = arith.addf %846, %849 : vector<8x32xf32>
    %851 = math.tanh %850 : vector<8x32xf32>
    %852 = arith.subf %824, %851 : vector<8x32xf32>
    %853 = arith.mulf %844, %852 : vector<8x32xf32>
    %854 = arith.addf %851, %853 : vector<8x32xf32>
    %855 = arith.truncf %854 : vector<8x32xf32> to vector<8x32xbf16>
    %c28 = arith.constant 28 : index
    %c0_153 = arith.constant 0 : index
    %c0_154 = arith.constant 0 : index
    %856 = vector.load %arg4[%c28, %c0_153, %c0_154] : memref<32x32x256xbf16, #tpu.memory_space<vmem>>, vector<1x32x256xbf16>
    %857 = vector.shape_cast %856 : vector<1x32x256xbf16> to vector<32x256xbf16>
    %cst_155 = arith.constant dense<0.000000e+00> : vector<8x256xf32>
    %858 = tpu.matmul %855, %857, %cst_155 {dimension_numbers = #tpu.dot_dimension_numbers<[1], [0], [0], [1], [0, 0, 1, 1], [], []>} : vector<8x32xbf16>, vector<32x256xbf16>, vector<8x256xf32> -> vector<8x256xf32>
    %859 = vector.extract_strided_slice %858 {offsets = [0, 128], sizes = [8, 96], strides = [1, 1]} : vector<8x256xf32> to vector<8x96xf32>
    %860 = vector.extract_strided_slice %858 {offsets = [0, 0], sizes = [8, 128], strides = [1, 1]} : vector<8x256xf32> to vector<8x128xf32>
    %c1_i32_156 = arith.constant 1 : i32
    %861 = tpu.dynamic_rotate %860 by %c1_i32_156 dim 0 : vector<8x128xf32>, i32 -> vector<8x128xf32>
    %862 = vector.extract_strided_slice %861 {offsets = [0, 0], sizes = [8, 96], strides = [1, 1]} : vector<8x128xf32> to vector<8x96xf32>
    %863 = arith.mulf %862, %14 : vector<8x96xf32>
    %864 = vector.extract_strided_slice %863 {offsets = [0, 32], sizes = [8, 64], strides = [1, 1]} : vector<8x96xf32> to vector<8x64xf32>
    %865 = vector.extract_strided_slice %859 {offsets = [0, 32], sizes = [8, 64], strides = [1, 1]} : vector<8x96xf32> to vector<8x64xf32>
    %866 = arith.addf %864, %865 : vector<8x64xf32>
    %867 = arith.addf %866, %9 : vector<8x64xf32>
    %868 = arith.negf %867 : vector<8x64xf32>
    %869 = math.exp %868 : vector<8x64xf32>
    %cst_157 = arith.constant 1.000000e+00 : f32
    %870 = vector.broadcast %cst_157 : f32 to vector<8x64xf32>
    %871 = arith.addf %870, %869 : vector<8x64xf32>
    %872 = arith.divf %870, %871 : vector<8x64xf32>
    %873 = vector.extract_strided_slice %872 {offsets = [0, 0], sizes = [8, 32], strides = [1, 1]} : vector<8x64xf32> to vector<8x32xf32>
    %874 = vector.extract_strided_slice %872 {offsets = [0, 32], sizes = [8, 32], strides = [1, 1]} : vector<8x64xf32> to vector<8x32xf32>
    %875 = vector.extract_strided_slice %863 {offsets = [0, 0], sizes = [8, 32], strides = [1, 1]} : vector<8x96xf32> to vector<8x32xf32>
    %876 = arith.addf %875, %7 : vector<8x32xf32>
    %877 = vector.extract_strided_slice %859 {offsets = [0, 0], sizes = [8, 32], strides = [1, 1]} : vector<8x96xf32> to vector<8x32xf32>
    %878 = arith.addf %877, %8 : vector<8x32xf32>
    %879 = arith.mulf %873, %878 : vector<8x32xf32>
    %880 = arith.addf %876, %879 : vector<8x32xf32>
    %881 = math.tanh %880 : vector<8x32xf32>
    %882 = arith.subf %854, %881 : vector<8x32xf32>
    %883 = arith.mulf %874, %882 : vector<8x32xf32>
    %884 = arith.addf %881, %883 : vector<8x32xf32>
    %885 = arith.truncf %884 : vector<8x32xf32> to vector<8x32xbf16>
    %c29 = arith.constant 29 : index
    %c0_158 = arith.constant 0 : index
    %c0_159 = arith.constant 0 : index
    %886 = vector.load %arg4[%c29, %c0_158, %c0_159] : memref<32x32x256xbf16, #tpu.memory_space<vmem>>, vector<1x32x256xbf16>
    %887 = vector.shape_cast %886 : vector<1x32x256xbf16> to vector<32x256xbf16>
    %cst_160 = arith.constant dense<0.000000e+00> : vector<8x256xf32>
    %888 = tpu.matmul %885, %887, %cst_160 {dimension_numbers = #tpu.dot_dimension_numbers<[1], [0], [0], [1], [0, 0, 1, 1], [], []>} : vector<8x32xbf16>, vector<32x256xbf16>, vector<8x256xf32> -> vector<8x256xf32>
    %889 = vector.extract_strided_slice %888 {offsets = [0, 128], sizes = [8, 96], strides = [1, 1]} : vector<8x256xf32> to vector<8x96xf32>
    %890 = vector.extract_strided_slice %888 {offsets = [0, 0], sizes = [8, 128], strides = [1, 1]} : vector<8x256xf32> to vector<8x128xf32>
    %c1_i32_161 = arith.constant 1 : i32
    %891 = tpu.dynamic_rotate %890 by %c1_i32_161 dim 0 : vector<8x128xf32>, i32 -> vector<8x128xf32>
    %892 = vector.extract_strided_slice %891 {offsets = [0, 0], sizes = [8, 96], strides = [1, 1]} : vector<8x128xf32> to vector<8x96xf32>
    %893 = arith.mulf %892, %14 : vector<8x96xf32>
    %894 = vector.extract_strided_slice %893 {offsets = [0, 32], sizes = [8, 64], strides = [1, 1]} : vector<8x96xf32> to vector<8x64xf32>
    %895 = vector.extract_strided_slice %889 {offsets = [0, 32], sizes = [8, 64], strides = [1, 1]} : vector<8x96xf32> to vector<8x64xf32>
    %896 = arith.addf %894, %895 : vector<8x64xf32>
    %897 = arith.addf %896, %9 : vector<8x64xf32>
    %898 = arith.negf %897 : vector<8x64xf32>
    %899 = math.exp %898 : vector<8x64xf32>
    %cst_162 = arith.constant 1.000000e+00 : f32
    %900 = vector.broadcast %cst_162 : f32 to vector<8x64xf32>
    %901 = arith.addf %900, %899 : vector<8x64xf32>
    %902 = arith.divf %900, %901 : vector<8x64xf32>
    %903 = vector.extract_strided_slice %902 {offsets = [0, 0], sizes = [8, 32], strides = [1, 1]} : vector<8x64xf32> to vector<8x32xf32>
    %904 = vector.extract_strided_slice %902 {offsets = [0, 32], sizes = [8, 32], strides = [1, 1]} : vector<8x64xf32> to vector<8x32xf32>
    %905 = vector.extract_strided_slice %893 {offsets = [0, 0], sizes = [8, 32], strides = [1, 1]} : vector<8x96xf32> to vector<8x32xf32>
    %906 = arith.addf %905, %7 : vector<8x32xf32>
    %907 = vector.extract_strided_slice %889 {offsets = [0, 0], sizes = [8, 32], strides = [1, 1]} : vector<8x96xf32> to vector<8x32xf32>
    %908 = arith.addf %907, %8 : vector<8x32xf32>
    %909 = arith.mulf %903, %908 : vector<8x32xf32>
    %910 = arith.addf %906, %909 : vector<8x32xf32>
    %911 = math.tanh %910 : vector<8x32xf32>
    %912 = arith.subf %884, %911 : vector<8x32xf32>
    %913 = arith.mulf %904, %912 : vector<8x32xf32>
    %914 = arith.addf %911, %913 : vector<8x32xf32>
    %915 = arith.truncf %914 : vector<8x32xf32> to vector<8x32xbf16>
    %c30 = arith.constant 30 : index
    %c0_163 = arith.constant 0 : index
    %c0_164 = arith.constant 0 : index
    %916 = vector.load %arg4[%c30, %c0_163, %c0_164] : memref<32x32x256xbf16, #tpu.memory_space<vmem>>, vector<1x32x256xbf16>
    %917 = vector.shape_cast %916 : vector<1x32x256xbf16> to vector<32x256xbf16>
    %cst_165 = arith.constant dense<0.000000e+00> : vector<8x256xf32>
    %918 = tpu.matmul %915, %917, %cst_165 {dimension_numbers = #tpu.dot_dimension_numbers<[1], [0], [0], [1], [0, 0, 1, 1], [], []>} : vector<8x32xbf16>, vector<32x256xbf16>, vector<8x256xf32> -> vector<8x256xf32>
    %919 = vector.extract_strided_slice %918 {offsets = [0, 128], sizes = [8, 96], strides = [1, 1]} : vector<8x256xf32> to vector<8x96xf32>
    %920 = vector.extract_strided_slice %918 {offsets = [0, 0], sizes = [8, 128], strides = [1, 1]} : vector<8x256xf32> to vector<8x128xf32>
    %c1_i32_166 = arith.constant 1 : i32
    %921 = tpu.dynamic_rotate %920 by %c1_i32_166 dim 0 : vector<8x128xf32>, i32 -> vector<8x128xf32>
    %922 = vector.extract_strided_slice %921 {offsets = [0, 0], sizes = [8, 96], strides = [1, 1]} : vector<8x128xf32> to vector<8x96xf32>
    %923 = arith.mulf %922, %14 : vector<8x96xf32>
    %924 = vector.extract_strided_slice %923 {offsets = [0, 32], sizes = [8, 64], strides = [1, 1]} : vector<8x96xf32> to vector<8x64xf32>
    %925 = vector.extract_strided_slice %919 {offsets = [0, 32], sizes = [8, 64], strides = [1, 1]} : vector<8x96xf32> to vector<8x64xf32>
    %926 = arith.addf %924, %925 : vector<8x64xf32>
    %927 = arith.addf %926, %9 : vector<8x64xf32>
    %928 = arith.negf %927 : vector<8x64xf32>
    %929 = math.exp %928 : vector<8x64xf32>
    %cst_167 = arith.constant 1.000000e+00 : f32
    %930 = vector.broadcast %cst_167 : f32 to vector<8x64xf32>
    %931 = arith.addf %930, %929 : vector<8x64xf32>
    %932 = arith.divf %930, %931 : vector<8x64xf32>
    %933 = vector.extract_strided_slice %932 {offsets = [0, 0], sizes = [8, 32], strides = [1, 1]} : vector<8x64xf32> to vector<8x32xf32>
    %934 = vector.extract_strided_slice %932 {offsets = [0, 32], sizes = [8, 32], strides = [1, 1]} : vector<8x64xf32> to vector<8x32xf32>
    %935 = vector.extract_strided_slice %923 {offsets = [0, 0], sizes = [8, 32], strides = [1, 1]} : vector<8x96xf32> to vector<8x32xf32>
    %936 = arith.addf %935, %7 : vector<8x32xf32>
    %937 = vector.extract_strided_slice %919 {offsets = [0, 0], sizes = [8, 32], strides = [1, 1]} : vector<8x96xf32> to vector<8x32xf32>
    %938 = arith.addf %937, %8 : vector<8x32xf32>
    %939 = arith.mulf %933, %938 : vector<8x32xf32>
    %940 = arith.addf %936, %939 : vector<8x32xf32>
    %941 = math.tanh %940 : vector<8x32xf32>
    %942 = arith.subf %914, %941 : vector<8x32xf32>
    %943 = arith.mulf %934, %942 : vector<8x32xf32>
    %944 = arith.addf %941, %943 : vector<8x32xf32>
    %945 = arith.truncf %944 : vector<8x32xf32> to vector<8x32xbf16>
    %c31 = arith.constant 31 : index
    %c0_168 = arith.constant 0 : index
    %c0_169 = arith.constant 0 : index
    %946 = vector.load %arg4[%c31, %c0_168, %c0_169] : memref<32x32x256xbf16, #tpu.memory_space<vmem>>, vector<1x32x256xbf16>
    %947 = vector.shape_cast %946 : vector<1x32x256xbf16> to vector<32x256xbf16>
    %cst_170 = arith.constant dense<0.000000e+00> : vector<8x256xf32>
    %948 = tpu.matmul %945, %947, %cst_170 {dimension_numbers = #tpu.dot_dimension_numbers<[1], [0], [0], [1], [0, 0, 1, 1], [], []>} : vector<8x32xbf16>, vector<32x256xbf16>, vector<8x256xf32> -> vector<8x256xf32>
    %949 = vector.extract_strided_slice %948 {offsets = [0, 128], sizes = [8, 96], strides = [1, 1]} : vector<8x256xf32> to vector<8x96xf32>
    %950 = vector.extract_strided_slice %948 {offsets = [0, 0], sizes = [8, 128], strides = [1, 1]} : vector<8x256xf32> to vector<8x128xf32>
    %c1_i32_171 = arith.constant 1 : i32
    %951 = tpu.dynamic_rotate %950 by %c1_i32_171 dim 0 : vector<8x128xf32>, i32 -> vector<8x128xf32>
    %952 = vector.extract_strided_slice %951 {offsets = [0, 0], sizes = [8, 96], strides = [1, 1]} : vector<8x128xf32> to vector<8x96xf32>
    %953 = arith.mulf %952, %14 : vector<8x96xf32>
    %954 = vector.extract_strided_slice %953 {offsets = [0, 32], sizes = [8, 64], strides = [1, 1]} : vector<8x96xf32> to vector<8x64xf32>
    %955 = vector.extract_strided_slice %949 {offsets = [0, 32], sizes = [8, 64], strides = [1, 1]} : vector<8x96xf32> to vector<8x64xf32>
    %956 = arith.addf %954, %955 : vector<8x64xf32>
    %957 = arith.addf %956, %9 : vector<8x64xf32>
    %958 = arith.negf %957 : vector<8x64xf32>
    %959 = math.exp %958 : vector<8x64xf32>
    %cst_172 = arith.constant 1.000000e+00 : f32
    %960 = vector.broadcast %cst_172 : f32 to vector<8x64xf32>
    %961 = arith.addf %960, %959 : vector<8x64xf32>
    %962 = arith.divf %960, %961 : vector<8x64xf32>
    %963 = vector.extract_strided_slice %962 {offsets = [0, 0], sizes = [8, 32], strides = [1, 1]} : vector<8x64xf32> to vector<8x32xf32>
    %964 = vector.extract_strided_slice %962 {offsets = [0, 32], sizes = [8, 32], strides = [1, 1]} : vector<8x64xf32> to vector<8x32xf32>
    %965 = vector.extract_strided_slice %953 {offsets = [0, 0], sizes = [8, 32], strides = [1, 1]} : vector<8x96xf32> to vector<8x32xf32>
    %966 = arith.addf %965, %7 : vector<8x32xf32>
    %967 = vector.extract_strided_slice %949 {offsets = [0, 0], sizes = [8, 32], strides = [1, 1]} : vector<8x96xf32> to vector<8x32xf32>
    %968 = arith.addf %967, %8 : vector<8x32xf32>
    %969 = arith.mulf %963, %968 : vector<8x32xf32>
    %970 = arith.addf %966, %969 : vector<8x32xf32>
    %971 = math.tanh %970 : vector<8x32xf32>
    %972 = arith.subf %944, %971 : vector<8x32xf32>
    %973 = arith.mulf %964, %972 : vector<8x32xf32>
    %974 = arith.addf %971, %973 : vector<8x32xf32>
    %cst_173 = arith.constant 0.000000e+00 : f32
    %975 = vector.broadcast %cst_173 : f32 to vector<8x32xf32>
    %976 = arith.maximumf %974, %975 : vector<8x32xf32>
    %977 = arith.truncf %976 : vector<8x32xf32> to vector<8x32xbf16>
    %c0_174 = arith.constant 0 : index
    %c0_175 = arith.constant 0 : index
    %978 = vector.load %arg8[%c0_174, %c0_175] : memref<32x7xbf16, #tpu.memory_space<vmem>>, vector<32x7xbf16>
    %cst_176 = arith.constant dense<0.000000e+00> : vector<8x7xf32>
    %979 = tpu.matmul %977, %978, %cst_176 {dimension_numbers = #tpu.dot_dimension_numbers<[1], [0], [0], [1], [0, 0, 1, 1], [], []>} : vector<8x32xbf16>, vector<32x7xbf16>, vector<8x7xf32> -> vector<8x7xf32>
    %c0_177 = arith.constant 0 : index
    %c0_178 = arith.constant 0 : index
    %980 = vector.load %arg9[%c0_177, %c0_178] : memref<8x7xf32, #tpu.memory_space<vmem>>, vector<8x7xf32>
    %981 = arith.addf %979, %980 : vector<8x7xf32>
    %c0_179 = arith.constant 0 : index
    %c0_180 = arith.constant 0 : index
    %982 = vector.load %arg10[%c0_179, %c0_180] : memref<8x7xf32, #tpu.memory_space<vmem>>, vector<8x7xf32>
    tpu.vector_store %arg10[%c0_179, %c0_180], %981 {strides = array<i32>} : memref<8x7xf32, #tpu.memory_space<vmem>>, vector<8x7xf32>,
    return
  }
}

</mosaic_0001>

<bundles_post_ra>
// kernel: tpu_custom_call.1
= control target key start
LH: loop header
LB: loop body
LE: loop exit
PB: predicated region body
PF: predicated region fallthrough
CT: control target
= control target key end

     0   :  { %15 = vsyncpa [#allocation3], 0  ;;  %s5925_s0 = inlined_call_operand.vmem [shape: bf16[8,1152], index: 0, kind: input, shape index: {}]   ;;  %s5926_s1 = inlined_call_operand.vmem [shape: f32[8,8], index: 1, kind: input, shape index: {}]   ;;  %s5927_s2 = inlined_call_operand.vmem [shape: bf16[1152,32], index: 2, kind: input, shape index: {}]   ;;  %s5928_s3 = inlined_call_operand.vmem [shape: f32[8,32], index: 3, kind: input, shape index: {}]   ;;  %s5929_s4 = inlined_call_operand.hbm [shape: bf16[32,32,256], index: 4, kind: input, shape index: {}]   ;;  %s5930_s5 = inlined_call_operand.vmem [shape: f32[8,32], index: 5, kind: input, shape index: {}]   ;;  %s5931_s6 = inlined_call_operand.vmem [shape: f32[8,32], index: 6, kind: input, shape index: {}]   ;;  %s5932_s7 = inlined_call_operand.vmem [shape: f32[8,64], index: 7, kind: input, shape index: {}]   ;;  %s5933_s8 = inlined_call_operand.vmem [shape: bf16[32,7], index: 8, kind: input, shape index: {}]   ;;  %s5934_s9 = inlined_call_operand.vmem [shape: f32[8,7], index: 9, kind: input, shape index: {}]   ;;  %s5935_s10 = inlined_call_operand.hbm [shape: f32[8,7], index: 10, kind: output, shape index: {}]  }
   0x1   :  { %16 = vsyncpa [#allocation4], 0  ;;  %s5219_s12 = smov [#allocation2]   ;;  %s5171_s16 = scalar_lea.hbm %s5929_s4, 16384 }
   0x2   :  { %s30_s13 = sshll.u32 %s5219_s12, 4  ;;  %p5172_p0 = scmp.ne.s32.totalorder %s5929_s4, %s5171_s16  ;;  %s31_s13 = int_to_ptr.vmem [resolvable:$true] %s30_s13 }
   0x3   :  { %p5175_p1 = scmp.lt.u32.totalorder %s5171_s16, %s5929_s4 }
   0x5   :  { %p5177_p2 = pnand %p5175_p1, %p5172_p0 }
   0x7   :  { %5180 = shalt.err (!%p5177_p2)
}
   0x8   :  { %s5181_s21 = scalar_lea.vmem %s31_s13, 16384  ;;  %p5186_p4 = scmp.lt.s32.totalorder %s31_s13, %s31_s13 }
   0x9   :  { %p5182_p3 = scmp.ne.s32.totalorder %s31_s13, %s5181_s21  ;;  %p5187_p5 = scmp.lt.s32.totalorder %s5181_s21, %s5181_s21 }
   0xb   :  { %p5188_p6 = por %p5187_p5, %p5186_p4 }
   0xd   :  { %p5189_p7 = pnand %p5188_p6, %p5182_p3 }
   0xf   :  { %5192 = shalt.err (!%p5189_p7)
}
  0x10   :  { %s5220_s22 = smov 128   ;;  %s5221_s23 = smov 8  }
  0x11   :  { %36 = dma.hbm_to_vmem [thread:$0]  %s5929_s4, 16384, %s31_s13, [#allocation3], %s5220_s22, %s5220_s22, %s5221_s23  }
  0x12   :  { %5215 = dma.done.wait [#allocation3], 16384  }
  0x13   :  { %5216 = vsyncadd [#allocation3], 4294950912  ;;  %v4700_v0 = vld [vmem:[%s5927_s2 + $0x40] sm:$0xff]   ;;  %v4704_v4 = vld [vmem:[%s5927_s2 + $0x48] sm:$0xff]   ;;  %vm5223_vm0 = vmmov 0   ;;  %vm899_vm1 = vcmask 261120  }
  0x14   :  { %v4701_v1 = vld [vmem:[%s5927_s2] sm:$0xff]   ;;  %4562 = vmatprep.subr.bf16.mxu0 %v4700_v0  ;;  %v4705_v5 = vld [vmem:[%s5927_s2 + $0x8] sm:$0xff]   ;;  %v4708_v8 = vld [vmem:[%s5927_s2 + $0x50] sm:$0xff]   ;;  %s5226_s28 = smov 96   ;;  %s5227_s11 = smov 64   ;;  %vm4268_vm3 = vcmask 56320  }
  0x15   :  { %v4702_v2 = vld [vmem:[%s5927_s2 + $0xc0] sm:$0xff]   ;;  %4563 = vmatpush3.bf16.msra.mxu0 %v4701_v1  ;;  %v4706_v6 = vld [vmem:[%s5927_s2 + $0xc8] sm:$0xff]   ;;  %v4709_v9 = vld [vmem:[%s5927_s2 + $0x10] sm:$0xff]   ;;  %s5228_s23 = smov [#allocation5]  }
  0x16   :  { %v4703_v3 = vld [vmem:[%s5927_s2 + $0x80] sm:$0xff]   ;;  %4584 = vmatprep.subr.bf16.mxu1 %v4702_v2  ;;  %4564 = vmatprep.subr.bf16.mxu0 %v4704_v4  ;;  %v4707_v7 = vld [vmem:[%s5927_s2 + $0x88] sm:$0xff]   ;;  %v4710_v10 = vld [vmem:[%s5927_s2 + $0xd0] sm:$0xff]   ;;  %s4276_s24 = sshll.u32 %s5228_s23, 4  ;;  %s4277_s24 = int_to_ptr.vmem [resolvable:$true] %s4276_s24 }
  0x17   :  { %4585 = vmatpush3.bf16.msra.mxu1 %v4703_v3  ;;  %v4711_v11 = vld [vmem:[%s5927_s2 + $0x90] sm:$0xff]   ;;  %v4712_v12 = vld [vmem:[%s5927_s2 + $0x58] sm:$0xff]   ;;  %v4716_v16 = vld [vmem:[%s5927_s2 + $0x60] sm:$0xff]   ;;  %p5198_p9 = scmp.lt.s32.totalorder %s4277_s24, %s4277_s24 }
  0x18   :  { %4586 = vmatprep.subr.bf16.mxu1 %v4706_v6  ;;  %v4713_v13 = vld [vmem:[%s5927_s2 + $0x18] sm:$0xff]   ;;  %v4717_v17 = vld [vmem:[%s5927_s2 + $0x20] sm:$0xff]   ;;  %v4720_v20 = vld [vmem:[%s5927_s2 + $0x68] sm:$0xff]  }
  0x19   :  { %4565 = vmatpush3.bf16.msra.mxu0 %v4705_v5  ;;  %v4714_v14 = vld [vmem:[%s5927_s2 + $0xd8] sm:$0xff]   ;;  %v4718_v18 = vld [vmem:[%s5927_s2 + $0xe0] sm:$0xff]   ;;  %v4721_v21 = vld [vmem:[%s5927_s2 + $0x28] sm:$0xff]  }
  0x1a   :  { %4566 = vmatprep.subr.bf16.mxu0 %v4708_v8  ;;  %v4715_v15 = vld [vmem:[%s5927_s2 + $0x98] sm:$0xff]   ;;  %v4719_v19 = vld [vmem:[%s5927_s2 + $0xa0] sm:$0xff]   ;;  %v4722_v22 = vld [vmem:[%s5927_s2 + $0xe8] sm:$0xff]  }
  0x1b   :  { %4587 = vmatpush3.bf16.msra.mxu1 %v4707_v7  ;;  %v4723_v23 = vld [vmem:[%s5927_s2 + $0xa8] sm:$0xff]   ;;  %v4724_v24 = vld [vmem:[%s5927_s2 + $0x70] sm:$0xff]   ;;  %v4728_v28 = vld [vmem:[%s5927_s2 + $0x78] sm:$0xff]  }
  0x1c   :  { %4588 = vmatprep.subr.bf16.mxu1 %v4710_v10  ;;  %v4725_v25 = vld [vmem:[%s5927_s2 + $0x30] sm:$0xff]   ;;  %v4729_v29 = vld [vmem:[%s5927_s2 + $0x38] sm:$0xff]   ;;  %v51_v31 = vld [vmem:[%s5925_s0] sm:$0xff] }
  0x1d   :  { %4567 = vmatpush3.bf16.msra.mxu0 %v4709_v9  ;;  %v4726_v26 = vld [vmem:[%s5927_s2 + $0xf0] sm:$0xff]   ;;  %v4730_v30 = vld [vmem:[%s5927_s2 + $0xf8] sm:$0xff]   ;;  %v4285_v32 = vcombine.low %v51_v31, %v51_v31  ;;  %v4286_v33 = vcombine.high %v51_v31, %v51_v31  ;;  %v4734_v35 = vld [vmem:[%s5927_s2 + $0x140] sm:$0xff]   ;;  %v5222_v9 = vmov 0.0  }
  0x1e   :  { %4568 = vmatprep.subr.bf16.mxu0 %v4712_v12  ;;  %v4727_v27 = vld [vmem:[%s5927_s2 + $0xb0] sm:$0xff]   ;;  %v4733_v34 = vld [vmem:[%s5927_s2 + $0xb8] sm:$0xff]   ;;  %v52_v36 = vld [vmem:[%s5925_s0 + $0x8] sm:$0xff] }
  0x1f   :  { %4589 = vmatpush3.bf16.msra.mxu1 %v4711_v11  ;;  %697 = vmatprep.mubr.bf16.mxu0 %v4286_v33  ;;  %v4287_v37 = vcombine.low %v52_v36, %v52_v36  ;;  %v4288_v38 = vcombine.high %v52_v36, %v52_v36  ;;  %v4737_v39 = vld [vmem:[%s5927_s2 + $0x100] sm:$0xff]   ;;  %v4740_v42 = vld [vmem:[%s5927_s2 + $0x148] sm:$0xff]   ;;  %v4744_v46 = vld [vmem:[%s5927_s2 + $0x150] sm:$0xff]  }
  0x20   :  { %4590 = vmatprep.subr.bf16.mxu1 %v4714_v14  ;;  %v4738_v40 = vld [vmem:[%s5927_s2 + $0x1c0] sm:$0xff]   ;;  %v4741_v43 = vld [vmem:[%s5927_s2 + $0x108] sm:$0xff]   ;;  %v4745_v47 = vld [vmem:[%s5927_s2 + $0x110] sm:$0xff]  }
  0x21   :  { %4569 = vmatpush3.bf16.msra.mxu0 %v4713_v13  ;;  %737 = vmatprep.mubr.bf16.mxu1 %v4288_v38  ;;  %v4739_v41 = vld [vmem:[%s5927_s2 + $0x180] sm:$0xff]   ;;  %v4742_v44 = vld [vmem:[%s5927_s2 + $0x1c8] sm:$0xff]   ;;  %v4746_v48 = vld [vmem:[%s5927_s2 + $0x1d0] sm:$0xff]  }
  0x22   :  { %4570 = vmatprep.subr.bf16.mxu0 %v4716_v16  ;;  %v4743_v45 = vld [vmem:[%s5927_s2 + $0x188] sm:$0xff]   ;;  %v4747_v49 = vld [vmem:[%s5927_s2 + $0x190] sm:$0xff]   ;;  %v4748_v50 = vld [vmem:[%s5927_s2 + $0x158] sm:$0xff]  }
  0x23   :  { %4591 = vmatpush3.bf16.msra.mxu1 %v4715_v15  ;;  %v4749_v51 = vld [vmem:[%s5927_s2 + $0x118] sm:$0xff]   ;;  %v4752_v54 = vld [vmem:[%s5927_s2 + $0x160] sm:$0xff]   ;;  %v4756_v58 = vld [vmem:[%s5927_s2 + $0x168] sm:$0xff]  }
  0x24   :  { %4592 = vmatprep.subr.bf16.mxu1 %v4718_v18  ;;  %v4750_v52 = vld [vmem:[%s5927_s2 + $0x1d8] sm:$0xff]   ;;  %v4753_v55 = vld [vmem:[%s5927_s2 + $0x120] sm:$0xff]   ;;  %v4757_v59 = vld [vmem:[%s5927_s2 + $0x128] sm:$0xff]  }
  0x25   :  { %4571 = vmatpush3.bf16.msra.mxu0 %v4717_v17  ;;  %v4751_v53 = vld [vmem:[%s5927_s2 + $0x198] sm:$0xff]   ;;  %v4754_v56 = vld [vmem:[%s5927_s2 + $0x1e0] sm:$0xff]   ;;  %v4758_v60 = vld [vmem:[%s5927_s2 + $0x1e8] sm:$0xff]  }
  0x26   :  { %4572 = vmatprep.subr.bf16.mxu0 %v4720_v20  ;;  %v4755_v57 = vld [vmem:[%s5927_s2 + $0x1a0] sm:$0xff]   ;;  %v4759_v61 = vld [vmem:[%s5927_s2 + $0x1a8] sm:$0xff]   ;;  %v4760_v62 = vld [vmem:[%s5927_s2 + $0x170] sm:$0xff]  }
  0x27   :  { %4593 = vmatpush3.bf16.msra.mxu1 %v4719_v19  ;;  %v4761_v63 = vld [vmem:[%s5927_s2 + $0x130] sm:$0xff]   ;;  %v4764_v2 = vld [vmem:[%s5927_s2 + $0x178] sm:$0xff]   ;;  %v4772_v13 = vld [vmem:[%s5927_s2 + $0x200] sm:$0xff]  }
  0x28   :  { %4594 = vmatprep.subr.bf16.mxu1 %v4722_v22  ;;  %v4762_v0 = vld [vmem:[%s5927_s2 + $0x1f0] sm:$0xff]   ;;  %v4765_v3 = vld [vmem:[%s5927_s2 + $0x138] sm:$0xff]   ;;  %v4773_v14 = vld [vmem:[%s5927_s2 + $0x208] sm:$0xff]  }
  0x29   :  { %4573 = vmatpush3.bf16.msra.mxu0 %v4721_v21  ;;  %v4763_v1 = vld [vmem:[%s5927_s2 + $0x1b0] sm:$0xff]   ;;  %v4766_v4 = vld [vmem:[%s5927_s2 + $0x1f8] sm:$0xff]   ;;  %v4776_v17 = vld [vmem:[%s5927_s2 + $0x220] sm:$0xff]  }
  0x2a   :  { %4574 = vmatprep.subr.bf16.mxu0 %v4724_v24  ;;  %v53_v5 = vld [vmem:[%s5925_s0 + $0x10] sm:$0xff]  ;;  %v4769_v8 = vld [vmem:[%s5927_s2 + $0x1b8] sm:$0xff]   ;;  %v4777_v18 = vld [vmem:[%s5927_s2 + $0x228] sm:$0xff]  }
  0x2b   :  { %4595 = vmatpush3.bf16.msra.mxu1 %v4723_v23  ;;  %v4289_v6 = vcombine.low %v53_v5, %v53_v5  ;;  %v4290_v7 = vcombine.high %v53_v5, %v53_v5  ;;  %v54_v10 = vld [vmem:[%s5925_s0 + $0x18] sm:$0xff]  ;;  %v4774_v15 = vld [vmem:[%s5927_s2 + $0x210] sm:$0xff]   ;;  %v4780_v21 = vld [vmem:[%s5925_s0 + $0x20] ss:$0 sps:$4 sm:$0xff]   ;;  %s5225_s0 = smov 32  }
  0x2c   :  { %4596 = vmatprep.subr.bf16.mxu1 %v4726_v26  ;;  %v4291_v11 = vcombine.low %v54_v10, %v54_v10  ;;  %v4292_v12 = vcombine.high %v54_v10, %v54_v10  ;;  %v4775_v16 = vld [vmem:[%s5927_s2 + $0x218] sm:$0xff]   ;;  %v4778_v19 = vld [vmem:[%s5927_s2 + $0x230] sm:$0xff]   ;;  %v4781_v22 = vld [vmem:[#allocation2] ss:$8 sps:$4 sm:$0xff]   ;;  %v5224_v26 = vmov 0  }
  0x2d   :  { %4575 = vmatpush3.bf16.msra.mxu0 %v4725_v25  ;;  %v4779_v20 = vld [vmem:[%s5927_s2 + $0x238] sm:$0xff]   ;;  %v4783_v23 = vld [vmem:[#allocation2 + $0x4] ss:$8 sps:$4 sm:$0xff]  }
  0x2e   :  { %4576 = vmatprep.subr.bf16.mxu0 %v4728_v28  ;;  %v4786_v24 = vld [vmem:[#allocation2 + $0x14] ss:$8 sps:$4 sm:$0xff]   ;;  %v4784_v25 = vld [vmem:[#allocation2 + $0x10] ss:$8 sps:$4 sm:$0xff]  }
  0x2f   :  { %4597 = vmatpush3.bf16.msra.mxu1 %v4727_v27  ;;  %v868_v27 = vld [vmem:[%s5932_s7] sm:$0xff] }
  0x30   :  { %4598 = vmatprep.subr.bf16.mxu1 %v4730_v30  ;;  %948 = vrot.lane.b32.xlu0 %v868_v27, %s5225_s0 }
  0x31   :  { %4577 = vmatpush3.bf16.msra.mxu0 %v4729_v29  ;;  %v200_v29 = vld [vmem:[%s5928_s3] sm:$0xff] }
  0x32   :  { %4606 = vmatprep.subr.bf16.mxu0 %v4734_v35 }
  0x33   :  { %4599 = vmatpush3.bf16.msra.mxu1 %v4733_v34 }
  0x34   :  { %698 = vmatmul.mubr.bf16.vlgmr.msra.gmra.mrb[0].mxu0 %v4285_v32  ;;  %4628 = vmatprep.subr.bf16.mxu1 %v4738_v40 }
  0x35   :  { %4607 = vmatpush3.bf16.msra.mxu0 %v4737_v39  ;;  %777 = vmatprep.mubr.bf16.mxu0 %v4290_v7 }
  0x36   :  { %738 = vmatmul.mubr.bf16.vlgmr.msra.gmra.mrb[0].mxu1 %v4287_v37  ;;  %4608 = vmatprep.subr.bf16.mxu0 %v4740_v42 }
  0x37   :  { %4629 = vmatpush3.bf16.msra.mxu1 %v4739_v41  ;;  %817 = vmatprep.mubr.bf16.mxu1 %v4292_v12 }
  0x38   :  { %4630 = vmatprep.subr.bf16.mxu1 %v4742_v44 }
  0x39   :  { %4609 = vmatpush3.bf16.msra.mxu0 %v4741_v43 }
  0x3a   :  { %4610 = vmatprep.subr.bf16.mxu0 %v4744_v46 }
  0x3b   :  { %4631 = vmatpush3.bf16.msra.mxu1 %v4743_v45 }
  0x3c   :  { %4632 = vmatprep.subr.bf16.mxu1 %v4746_v48 }
  0x3d   :  { %4611 = vmatpush3.bf16.msra.mxu0 %v4745_v47 }
  0x3e   :  { %4612 = vmatprep.subr.bf16.mxu0 %v4748_v50 }
  0x3f   :  { %4633 = vmatpush3.bf16.msra.mxu1 %v4747_v49 }
  0x40   :  { %4634 = vmatprep.subr.bf16.mxu1 %v4750_v52 }
  0x41   :  { %4613 = vmatpush3.bf16.msra.mxu0 %v4749_v51 }
  0x42   :  { %4614 = vmatprep.subr.bf16.mxu0 %v4752_v54 }
  0x43   :  { %4635 = vmatpush3.bf16.msra.mxu1 %v4751_v53 }
  0x44   :  { %4636 = vmatprep.subr.bf16.mxu1 %v4754_v56 }
  0x45   :  { %4615 = vmatpush3.bf16.msra.mxu0 %v4753_v55 }
  0x46   :  { %4616 = vmatprep.subr.bf16.mxu0 %v4756_v58 }
  0x47   :  { %4637 = vmatpush3.bf16.msra.mxu1 %v4755_v57 }
  0x48   :  { %4638 = vmatprep.subr.bf16.mxu1 %v4758_v60  ;;  %v869_v60 = vlaneseq }
  0x49   :  { %4617 = vmatpush3.bf16.msra.mxu0 %v4757_v59 }
  0x4a   :  { %4618 = vmatprep.subr.bf16.mxu0 %v4760_v62  ;;  %v5551_v62 = vld [vmem:[%s5931_s6] sm:$0xff] }
  0x4b   :  { %4639 = vmatpush3.bf16.msra.mxu1 %v4759_v61  ;;  %v870_v61 = vshrl.u32 %v869_v60, 7 }
  0x4c   :  { %4640 = vmatprep.subr.bf16.mxu1 %v4762_v0 }
  0x4d   :  { %4619 = vmatpush3.bf16.msra.mxu0 %v4761_v63  ;;  %vm871_vm2 = vcmp.ge.s32.totalorder %v870_v61, 1 }
  0x4e   :  { %4620 = vmatprep.subr.bf16.mxu0 %v4764_v2  ;;  %v5554_v63 = vsel %vm871_vm2, 1.0, %v5222_v9 }
  0x4f   :  { %4641 = vmatpush3.bf16.msra.mxu1 %v4763_v1 }
  0x50   :  { %4642 = vmatprep.subr.bf16.mxu1 %v4766_v4 }
  0x51   :  { %4621 = vmatpush3.bf16.msra.mxu0 %v4765_v3 }
  0x52   :  { %4662 = vmatprep.subr.bf16.mxu0 %v5222_v9 }
  0x53   :  { %4643 = vmatpush3.bf16.msra.mxu1 %v4769_v8 }
  0x54   :  { %778 = vmatmul.mubr.bf16.vlgmr.msra.gmra.mrb[4].mxu0 %v4289_v6  ;;  %903 = vmatprep.subr.bf16.mxu1 %v4783_v23  ;;  %v4792_v23 = vld [vmem:[#allocation2 + $0x34] ss:$8 sps:$4 sm:$0xff]  }
  0x55   :  { %4663 = vmatpush3.bf16.msra.mxu0 %v4772_v13  ;;  %4678 = vmatprep.mubr.msk.bf16.mxu0 %vm5223_vm0, %v5222_v9 }
  0x56   :  { %818 = vmatmul.mubr.bf16.vlgmr.msra.gmra.mrb[4].mxu1 %v4291_v11  ;;  %4664 = vmatprep.subr.bf16.mxu0 %v5222_v9 }
  0x57   :  { %904 = vmatpush1.bf16.msra.mxu1 %v4781_v22  ;;  %935 = vmatprep.mubr.bf16.mxu1 %v5224_v26  ;;  %v4789_v22 = vld [vmem:[#allocation2 + $0x24] ss:$8 sps:$4 sm:$0xff]  }
  0x58   :  { %905 = vmatprep.subr.bf16.mxu1 %v4786_v24  ;;  %v4790_v24 = vld [vmem:[#allocation2 + $0x30] ss:$8 sps:$4 sm:$0xff]  }
  0x59   :  { %4665 = vmatpush3.bf16.msra.mxu0 %v4773_v14 }
  0x5a   :  { %4666 = vmatprep.subr.bf16.mxu0 %v5222_v9 }
  0x5b   :  { %906 = vmatpush1.bf16.msra.mxu1 %v4784_v25 }
  0x5c   :  { %1011 = vmatprep.subr.bf16.mxu1 %v4789_v22  ;;  %v4801_v22 = vld [vmem:[#allocation2 + $0x64] ss:$8 sps:$4 sm:$0xff]  }
  0x5d   :  { %4667 = vmatpush3.bf16.msra.mxu0 %v4774_v15 }
  0x5e   :  { %4668 = vmatprep.subr.bf16.mxu0 %v5222_v9 }
  0x61   :  { %4669 = vmatpush3.bf16.msra.mxu0 %v4775_v16 }
  0x62   :  { %4670 = vmatprep.subr.bf16.mxu0 %v5222_v9 }
  0x65   :  { %4671 = vmatpush3.bf16.msra.mxu0 %v4776_v17  ;;  %v5566_v17 = vld [vmem:[%s5930_s5] sm:$0xff] }
  0x66   :  { %4672 = vmatprep.subr.bf16.mxu0 %v5222_v9 }
  0x69   :  { %4673 = vmatpush3.bf16.msra.mxu0 %v4777_v18 }
  0x6a   :  { %4674 = vmatprep.subr.bf16.mxu0 %v5222_v9 }
  0x6d   :  { %4675 = vmatpush3.bf16.msra.mxu0 %v4778_v19 }
  0x6e   :  { %4676 = vmatprep.subr.bf16.mxu0 %v5222_v9 }
  0x71   :  { %4677 = vmatpush3.bf16.msra.mxu0 %v4779_v20 }
  0x74   :  { %4679 = vmatmul.mubr.bf16.vlgmr.msra.gmra.mrb[8].mxu0 %v4780_v21  ;;  %v4787_v21 = vld [vmem:[#allocation2 + $0x20] ss:$8 sps:$4 sm:$0xff]  }
  0x75   :  { %1355 = vmatprep.mubr.bf16.mxu0 %v5224_v26 }
  0xa2   :  { %v5559_v8 = vpop.permute.xlu0 %948 }
 0x107   :  { %v4578_v28 = vpop.f32.mrb[0].mxu0 }
 0x108   :  { %v4579_v30 = vpop.f32.mrb[1].mxu0 }
 0x109   :  { %v4580_v31 = vadd.f32 %v4579_v30, %v4578_v28  ;;  %v4581_v32 = vpop.f32.mrb[2].mxu0  ;;  %v4600_v33 = vpop.f32.mrb[0].mxu1 }
 0x10a   :  { %v4582_v34 = vpop.f32.mrb[3].mxu0  ;;  %v4601_v35 = vpop.f32.mrb[1].mxu1 }
 0x10b   :  { %v700_v36 = vadd.f32 %v4580_v31, %v200_v29  ;;  %v4602_v37 = vadd.f32 %v4601_v35, %v4600_v33  ;;  %v4603_v38 = vpop.f32.mrb[2].mxu1 }
 0x10c   :  { %v4604_v39 = vpop.f32.mrb[3].mxu1 }
 0x10d   :  { %v740_v40 = vadd.f32 %v4602_v37, %v700_v36 }
 0x127   :  { %v4622_v41 = vpop.f32.mrb[4].mxu0 }
 0x128   :  { %v4623_v42 = vpop.f32.mrb[5].mxu0 }
 0x129   :  { %v4624_v43 = vadd.f32 %v4623_v42, %v4622_v41  ;;  %v4625_v44 = vpop.f32.mrb[6].mxu0  ;;  %v4644_v45 = vpop.f32.mrb[4].mxu1 }
 0x12a   :  { %v4626_v46 = vpop.f32.mrb[7].mxu0  ;;  %v4645_v47 = vpop.f32.mrb[5].mxu1 }
 0x12b   :  { %v780_v48 = vadd.f32 %v4624_v43, %v740_v40  ;;  %v4646_v49 = vadd.f32 %v4645_v47, %v4644_v45  ;;  %v4647_v50 = vpop.f32.mrb[6].mxu1 }
 0x12c   :  { %v4648_v51 = vpop.f32.mrb[7].mxu1 }
 0x12d   :  { %v820_v52 = vadd.f32 %v4646_v49, %v780_v48  ;;  %v4793_v51 = vld [vmem:[#allocation2 + $0x40] ss:$8 sps:$4 sm:$0xff]  }
 0x147   :  { %v859_v53 = vpop.f32.mrb[8].mxu0 }
 0x148   :  { %v860_v54 = vadd.f32 %v859_v53, %v820_v52  ;;  %v4680_v55 = vpop.f32.mrb[9].mxu0  ;;  %v4795_v52 = vld [vmem:[#allocation2 + $0x44] ss:$8 sps:$4 sm:$0xff]   ;;  %v4798_v53 = vld [vmem:[#allocation2 + $0x54] ss:$8 sps:$4 sm:$0xff]  }
 0x149   :  { %v862_v56 = vpop.f32.mrb[10].mxu0 }
 0x14a   :  { %v865_v57 = vmax.f32 %v860_v54, 0.0  ;;  %v4681_v58 = vpop.f32.mrb[11].mxu0  ;;  %v4796_v54 = vld [vmem:[#allocation2 + $0x50] ss:$8 sps:$4 sm:$0xff]  }
 0x14c   :  { %v874_v59 = vpack.c.bf16 %v865_v57, %v865_v57 }
 0x14e   :  { %4371 = vmatmul.mubr.msk.bf16.vlgmr.msra.gmra.mrb[8].mxu1 %vm899_vm1, %v874_v59 }
 0x14f   :  { %1043 = vmatprep.mubr.bf16.mxu1 %v5224_v26  ;;  %1012 = vmatpush1.bf16.msra.mxu1 %v4787_v21  ;;  %v4799_v21 = vld [vmem:[#allocation2 + $0x60] ss:$8 sps:$4 sm:$0xff]  }
 0x150   :  { %1013 = vmatprep.subr.bf16.mxu1 %v4792_v23  ;;  %v4804_v23 = vld [vmem:[#allocation2 + $0x74] ss:$8 sps:$4 sm:$0xff]  }
 0x153   :  { %1014 = vmatpush1.bf16.msra.mxu1 %v4790_v24  ;;  %v4802_v24 = vld [vmem:[#allocation2 + $0x70] ss:$8 sps:$4 sm:$0xff]  }
 0x154   :  { %1115 = vmatprep.subr.bf16.mxu1 %v4795_v52  ;;  %v4807_v52 = vld [vmem:[#allocation2 + $0x84] ss:$8 sps:$4 sm:$0xff]  }
 0x155   :  { %1323 = vmatprep.subr.bf16.mxu0 %v4807_v52  ;;  %v4819_v52 = vld [vmem:[#allocation2 + $0xc4] ss:$8 sps:$4 sm:$0xff]  }
 0x221   :  { %v937_v0 = vpop.f32.mrb[8].mxu1 }
 0x222   :  { %v944_v1 = vrot.slane %v937_v0, 7  ;;  %v939_v2 = vpop.f32.mrb[9].mxu1 }
 0x223   :  { %v959_v3 = vadd.f32 %v939_v2, %v5551_v62  ;;  %v941_v4 = vpop.f32.mrb[10].mxu1 }
 0x224   :  { %v945_v5 = vmul.f32 %v5554_v63, %v944_v1  ;;  %v942_v6 = vpop.f32.mrb[11].mxu1 }
 0x225   :  { %961 = vrot.lane.b32.xlu0 %v959_v3, %s5225_s0 }
 0x226   :  { %v946_v7 = vadd.f32 %v945_v5, %v939_v2  ;;  %v958_v18 = vadd.f32 %v945_v5, %v5566_v17 }
 0x228   :  { %v951_v10 = vadd.f32 %v5559_v8, %v946_v7 }
 0x22a   :  { %v4372_v11 = vmul.f32 -1.442695, %v951_v10 }
 0x22c   :  { %4975 = vpow2.f32 %v4372_v11 }
 0x236   :  { %v4976_v12 = vpop.eup %4975 }
 0x237   :  { %v955_v13 = vadd.f32 1.0, %v4976_v12 }
 0x239   :  { %4977 = vrcp.f32 %v955_v13 }
 0x243   :  { %v4978_v14 = vpop.eup %4977 }
 0x297   :  { %v962_v15 = vpop.permute.xlu0 %961 }
 0x298   :  { %v964_v16 = vmul.f32 %v4978_v14, %v962_v15 }
 0x29a   :  { %966 = vrot.lane.b32.xlu1 %v964_v16, %s5226_s28 }
 0x30c   :  { %v967_v19 = vpop.permute.xlu1 %966 }
 0x30d   :  { %v969_v20 = vadd.f32 %v967_v19, %v958_v18 }
 0x30f   :  { %4979 = vtanh.f32 %v969_v20 }
 0x319   :  { %v4980_v25 = vpop.eup %4979 }
 0x31a   :  { %v971_v27 = vsub.f32 %v865_v57, %v4980_v25 }
 0x31c   :  { %973 = vrot.lane.b32.xlu1 %v971_v27, %s5227_s11 }
 0x38e   :  { %v974_v28 = vpop.permute.xlu1 %973 }
 0x38f   :  { %v976_v29 = vmul.f32 %v4978_v14, %v974_v28 }
 0x391   :  { %978 = vrot.lane.b32.xlu0 %v976_v29, %s5227_s11 }
 0x403   :  { %v979_v30 = vpop.permute.xlu0 %978 }
 0x404   :  { %v981_v31 = vadd.f32 %v4980_v25, %v979_v30 }
 0x406   :  { %v982_v32 = vpack.c.bf16 %v981_v31, %v981_v31 }
 0x408   :  { %4377 = vmatmul.mubr.msk.bf16.vlgmr.msra.gmra.mrb[12].mxu1 %vm899_vm1, %v982_v32 }
 0x409   :  { %1147 = vmatprep.mubr.bf16.mxu1 %v5224_v26  ;;  %1116 = vmatpush1.bf16.msra.mxu1 %v4793_v51  ;;  %v4805_v51 = vld [vmem:[#allocation2 + $0x80] ss:$8 sps:$4 sm:$0xff]  }
 0x40a   :  { %1117 = vmatprep.subr.bf16.mxu1 %v4798_v53  ;;  %v4810_v53 = vld [vmem:[#allocation2 + $0x94] ss:$8 sps:$4 sm:$0xff]   ;;  %1324 = vmatpush1.bf16.msra.mxu0 %v4805_v51  ;;  %v4817_v51 = vld [vmem:[#allocation2 + $0xc0] ss:$8 sps:$4 sm:$0xff]  }
 0x40b   :  { %1325 = vmatprep.subr.bf16.mxu0 %v4810_v53  ;;  %v4822_v53 = vld [vmem:[#allocation2 + $0xd4] ss:$8 sps:$4 sm:$0xff]  }
 0x40d   :  { %1118 = vmatpush1.bf16.msra.mxu1 %v4796_v54  ;;  %v4808_v54 = vld [vmem:[#allocation2 + $0x90] ss:$8 sps:$4 sm:$0xff]  }
 0x40e   :  { %1219 = vmatprep.subr.bf16.mxu1 %v4801_v22  ;;  %1326 = vmatpush1.bf16.msra.mxu0 %v4808_v54  ;;  %v4813_v22 = vld [vmem:[#allocation2 + $0xa4] ss:$8 sps:$4 sm:$0xff]   ;;  %v4820_v54 = vld [vmem:[#allocation2 + $0xd0] ss:$8 sps:$4 sm:$0xff]  }
 0x40f   :  { %1531 = vmatprep.subr.bf16.mxu0 %v4819_v52  ;;  %v4831_v52 = vld [vmem:[#allocation2 + $0x104] ss:$8 sps:$4 sm:$0xff]  }
 0x4db   :  { %v1045_v33 = vpop.f32.mrb[12].mxu1 }
 0x4dc   :  { %v1052_v34 = vrot.slane %v1045_v33, 7  ;;  %v1047_v35 = vpop.f32.mrb[13].mxu1 }
 0x4dd   :  { %v1063_v36 = vadd.f32 %v1047_v35, %v5551_v62  ;;  %v1049_v37 = vpop.f32.mrb[14].mxu1 }
 0x4de   :  { %v1053_v38 = vmul.f32 %v5554_v63, %v1052_v34  ;;  %v1050_v39 = vpop.f32.mrb[15].mxu1 }
 0x4df   :  { %1065 = vrot.lane.b32.xlu1 %v1063_v36, %s5225_s0 }
 0x4e0   :  { %v1054_v40 = vadd.f32 %v1053_v38, %v1047_v35  ;;  %v1062_v48 = vadd.f32 %v1053_v38, %v5566_v17 }
 0x4e2   :  { %v1055_v41 = vadd.f32 %v1054_v40, %v5559_v8 }
 0x4e4   :  { %v4378_v42 = vmul.f32 -1.442695, %v1055_v41 }
 0x4e6   :  { %4981 = vpow2.f32 %v4378_v42 }
 0x4f0   :  { %v4982_v43 = vpop.eup %4981 }
 0x4f1   :  { %v1059_v44 = vadd.f32 1.0, %v4982_v43 }
 0x4f3   :  { %4983 = vrcp.f32 %v1059_v44 }
 0x4fd   :  { %v4984_v45 = vpop.eup %4983 }
 0x551   :  { %v1066_v46 = vpop.permute.xlu1 %1065 }
 0x552   :  { %v1068_v47 = vmul.f32 %v4984_v45, %v1066_v46 }
 0x554   :  { %1070 = vrot.lane.b32.xlu0 %v1068_v47, %s5226_s28 }
 0x5c6   :  { %v1071_v49 = vpop.permute.xlu0 %1070 }
 0x5c7   :  { %v1073_v50 = vadd.f32 %v1071_v49, %v1062_v48 }
 0x5c9   :  { %4985 = vtanh.f32 %v1073_v50 }
 0x5d3   :  { %v4986_v55 = vpop.eup %4985 }
 0x5d4   :  { %v1075_v56 = vsub.f32 %v981_v31, %v4986_v55 }
 0x5d6   :  { %1077 = vrot.lane.b32.xlu1 %v1075_v56, %s5227_s11 }
 0x648   :  { %v1078_v57 = vpop.permute.xlu1 %1077 }
 0x649   :  { %v1080_v58 = vmul.f32 %v4984_v45, %v1078_v57 }
 0x64b   :  { %1082 = vrot.lane.b32.xlu0 %v1080_v58, %s5227_s11 }
 0x6bd   :  { %v1083_v59 = vpop.permute.xlu0 %1082 }
 0x6be   :  { %v1085_v60 = vadd.f32 %v4986_v55, %v1083_v59 }
 0x6c0   :  { %v1086_v61 = vpack.c.bf16 %v1085_v60, %v1085_v60 }
 0x6c2   :  { %4383 = vmatmul.mubr.msk.bf16.vlgmr.msra.gmra.mrb[16].mxu1 %vm899_vm1, %v1086_v61 }
 0x6c3   :  { %1251 = vmatprep.mubr.bf16.mxu1 %v5224_v26  ;;  %1220 = vmatpush1.bf16.msra.mxu1 %v4799_v21  ;;  %v4811_v21 = vld [vmem:[#allocation2 + $0xa0] ss:$8 sps:$4 sm:$0xff]  }
 0x6c4   :  { %1221 = vmatprep.subr.bf16.mxu1 %v4804_v23  ;;  %v4816_v23 = vld [vmem:[#allocation2 + $0xb4] ss:$8 sps:$4 sm:$0xff]  }
 0x6c7   :  { %1222 = vmatpush1.bf16.msra.mxu1 %v4802_v24  ;;  %v4814_v24 = vld [vmem:[#allocation2 + $0xb0] ss:$8 sps:$4 sm:$0xff]  }
 0x6c8   :  { %1427 = vmatprep.subr.bf16.mxu1 %v4813_v22  ;;  %v4825_v22 = vld [vmem:[#allocation2 + $0xe4] ss:$8 sps:$4 sm:$0xff]  }
 0x795   :  { %v1149_v0 = vpop.f32.mrb[16].mxu1 }
 0x796   :  { %v1156_v1 = vrot.slane %v1149_v0, 7  ;;  %v1151_v2 = vpop.f32.mrb[17].mxu1 }
 0x797   :  { %v1167_v3 = vadd.f32 %v1151_v2, %v5551_v62  ;;  %v1153_v4 = vpop.f32.mrb[18].mxu1 }
 0x798   :  { %v1157_v5 = vmul.f32 %v5554_v63, %v1156_v1  ;;  %v1154_v6 = vpop.f32.mrb[19].mxu1 }
 0x799   :  { %1169 = vrot.lane.b32.xlu1 %v1167_v3, %s5225_s0 }
 0x79a   :  { %v1158_v7 = vadd.f32 %v1157_v5, %v1151_v2  ;;  %v1166_v18 = vadd.f32 %v1157_v5, %v5566_v17 }
 0x79c   :  { %v1159_v10 = vadd.f32 %v1158_v7, %v5559_v8 }
 0x79e   :  { %v4384_v11 = vmul.f32 -1.442695, %v1159_v10 }
 0x7a0   :  { %4987 = vpow2.f32 %v4384_v11 }
 0x7aa   :  { %v4988_v12 = vpop.eup %4987 }
 0x7ab   :  { %v1163_v13 = vadd.f32 1.0, %v4988_v12 }
 0x7ad   :  { %4989 = vrcp.f32 %v1163_v13 }
 0x7b7   :  { %v4990_v14 = vpop.eup %4989 }
 0x80b   :  { %v1170_v15 = vpop.permute.xlu1 %1169 }
 0x80c   :  { %v1172_v16 = vmul.f32 %v4990_v14, %v1170_v15 }
 0x80e   :  { %1174 = vrot.lane.b32.xlu0 %v1172_v16, %s5226_s28 }
 0x880   :  { %v1175_v19 = vpop.permute.xlu0 %1174 }
 0x881   :  { %v1177_v20 = vadd.f32 %v1175_v19, %v1166_v18 }
 0x883   :  { %4991 = vtanh.f32 %v1177_v20 }
 0x88d   :  { %v4992_v25 = vpop.eup %4991 }
 0x88e   :  { %v1179_v27 = vsub.f32 %v1085_v60, %v4992_v25 }
 0x890   :  { %1181 = vrot.lane.b32.xlu1 %v1179_v27, %s5227_s11 }
 0x902   :  { %v1182_v28 = vpop.permute.xlu1 %1181 }
 0x903   :  { %v1184_v29 = vmul.f32 %v4990_v14, %v1182_v28 }
 0x905   :  { %1186 = vrot.lane.b32.xlu0 %v1184_v29, %s5227_s11 }
 0x977   :  { %v1187_v30 = vpop.permute.xlu0 %1186 }
 0x978   :  { %v1189_v31 = vadd.f32 %v4992_v25, %v1187_v30 }
 0x97a   :  { %v1190_v32 = vpack.c.bf16 %v1189_v31, %v1189_v31 }
 0x97c   :  { %4389 = vmatmul.mubr.msk.bf16.vlgmr.msra.gmra.mrb[20].mxu1 %vm899_vm1, %v1190_v32 }
 0x97d   :  { %1459 = vmatprep.mubr.bf16.mxu1 %v5224_v26  ;;  %1428 = vmatpush1.bf16.msra.mxu1 %v4811_v21  ;;  %v4823_v21 = vld [vmem:[#allocation2 + $0xe0] ss:$8 sps:$4 sm:$0xff]  }
 0x97e   :  { %1429 = vmatprep.subr.bf16.mxu1 %v4816_v23  ;;  %v4828_v23 = vld [vmem:[#allocation2 + $0xf4] ss:$8 sps:$4 sm:$0xff]  }
 0x981   :  { %1430 = vmatpush1.bf16.msra.mxu1 %v4814_v24  ;;  %v4826_v24 = vld [vmem:[#allocation2 + $0xf0] ss:$8 sps:$4 sm:$0xff]  }
 0x982   :  { %1635 = vmatprep.subr.bf16.mxu1 %v4825_v22  ;;  %v4837_v22 = vld [vmem:[#allocation2 + $0x124] ss:$8 sps:$4 sm:$0xff]  }
 0xa4f   :  { %v1253_v33 = vpop.f32.mrb[20].mxu1 }
 0xa50   :  { %v1260_v34 = vrot.slane %v1253_v33, 7  ;;  %v1255_v35 = vpop.f32.mrb[21].mxu1 }
 0xa51   :  { %v1271_v36 = vadd.f32 %v1255_v35, %v5551_v62  ;;  %v1257_v37 = vpop.f32.mrb[22].mxu1 }
 0xa52   :  { %v1261_v38 = vmul.f32 %v5554_v63, %v1260_v34  ;;  %v1258_v39 = vpop.f32.mrb[23].mxu1 }
 0xa53   :  { %1273 = vrot.lane.b32.xlu1 %v1271_v36, %s5225_s0 }
 0xa54   :  { %v1262_v40 = vadd.f32 %v1261_v38, %v1255_v35  ;;  %v1270_v48 = vadd.f32 %v1261_v38, %v5566_v17 }
 0xa56   :  { %v1263_v41 = vadd.f32 %v1262_v40, %v5559_v8 }
 0xa58   :  { %v4390_v42 = vmul.f32 -1.442695, %v1263_v41 }
 0xa5a   :  { %4993 = vpow2.f32 %v4390_v42 }
 0xa64   :  { %v4994_v43 = vpop.eup %4993 }
 0xa65   :  { %v1267_v44 = vadd.f32 1.0, %v4994_v43 }
 0xa67   :  { %4995 = vrcp.f32 %v1267_v44 }
 0xa71   :  { %v4996_v45 = vpop.eup %4995 }
 0xac5   :  { %v1274_v46 = vpop.permute.xlu1 %1273 }
 0xac6   :  { %v1276_v47 = vmul.f32 %v4996_v45, %v1274_v46 }
 0xac8   :  { %1278 = vrot.lane.b32.xlu0 %v1276_v47, %s5226_s28 }
 0xb3a   :  { %v1279_v49 = vpop.permute.xlu0 %1278 }
 0xb3b   :  { %v1281_v50 = vadd.f32 %v1279_v49, %v1270_v48 }
 0xb3d   :  { %4997 = vtanh.f32 %v1281_v50 }
 0xb47   :  { %v4998_v55 = vpop.eup %4997 }
 0xb48   :  { %v1283_v56 = vsub.f32 %v1189_v31, %v4998_v55 }
 0xb4a   :  { %1285 = vrot.lane.b32.xlu1 %v1283_v56, %s5227_s11 }
 0xbbc   :  { %v1286_v57 = vpop.permute.xlu1 %1285 }
 0xbbd   :  { %v1288_v58 = vmul.f32 %v4996_v45, %v1286_v57 }
 0xbbf   :  { %1290 = vrot.lane.b32.xlu0 %v1288_v58, %s5227_s11 }
 0xc31   :  { %v1291_v59 = vpop.permute.xlu0 %1290 }
 0xc32   :  { %v1293_v60 = vadd.f32 %v4998_v55, %v1291_v59 }
 0xc34   :  { %v1294_v61 = vpack.c.bf16 %v1293_v60, %v1293_v60 }
 0xc36   :  { %4395 = vmatmul.mubr.msk.bf16.vlgmr.msra.gmra.mrb[12].mxu0 %vm899_vm1, %v1294_v61 }
 0xc37   :  { %1563 = vmatprep.mubr.bf16.mxu0 %v5224_v26  ;;  %1532 = vmatpush1.bf16.msra.mxu0 %v4817_v51  ;;  %v4829_v51 = vld [vmem:[#allocation2 + $0x100] ss:$8 sps:$4 sm:$0xff]  }
 0xc38   :  { %1533 = vmatprep.subr.bf16.mxu0 %v4822_v53  ;;  %v4834_v53 = vld [vmem:[#allocation2 + $0x114] ss:$8 sps:$4 sm:$0xff]  }
 0xc3b   :  { %1534 = vmatpush1.bf16.msra.mxu0 %v4820_v54  ;;  %v4832_v54 = vld [vmem:[#allocation2 + $0x110] ss:$8 sps:$4 sm:$0xff]  }
 0xc3c   :  { %1739 = vmatprep.subr.bf16.mxu0 %v4831_v52  ;;  %v4843_v52 = vld [vmem:[#allocation2 + $0x144] ss:$8 sps:$4 sm:$0xff]  }
 0xd09   :  { %v1357_v0 = vpop.f32.mrb[12].mxu0 }
 0xd0a   :  { %v1364_v1 = vrot.slane %v1357_v0, 7  ;;  %v1359_v2 = vpop.f32.mrb[13].mxu0 }
 0xd0b   :  { %v1375_v3 = vadd.f32 %v1359_v2, %v5551_v62  ;;  %v1361_v4 = vpop.f32.mrb[14].mxu0 }
 0xd0c   :  { %v1365_v5 = vmul.f32 %v5554_v63, %v1364_v1  ;;  %v1362_v6 = vpop.f32.mrb[15].mxu0 }
 0xd0d   :  { %1377 = vrot.lane.b32.xlu1 %v1375_v3, %s5225_s0 }
 0xd0e   :  { %v1366_v7 = vadd.f32 %v1365_v5, %v1359_v2  ;;  %v1374_v18 = vadd.f32 %v1365_v5, %v5566_v17 }
 0xd10   :  { %v1367_v10 = vadd.f32 %v1366_v7, %v5559_v8 }
 0xd12   :  { %v4396_v11 = vmul.f32 -1.442695, %v1367_v10 }
 0xd14   :  { %4999 = vpow2.f32 %v4396_v11 }
 0xd1e   :  { %v5000_v12 = vpop.eup %4999 }
 0xd1f   :  { %v1371_v13 = vadd.f32 1.0, %v5000_v12 }
 0xd21   :  { %5001 = vrcp.f32 %v1371_v13 }
 0xd2b   :  { %v5002_v14 = vpop.eup %5001 }
 0xd7f   :  { %v1378_v15 = vpop.permute.xlu1 %1377 }
 0xd80   :  { %v1380_v16 = vmul.f32 %v5002_v14, %v1378_v15 }
 0xd82   :  { %1382 = vrot.lane.b32.xlu0 %v1380_v16, %s5226_s28 }
 0xdf4   :  { %v1383_v19 = vpop.permute.xlu0 %1382 }
 0xdf5   :  { %v1385_v20 = vadd.f32 %v1383_v19, %v1374_v18 }
 0xdf7   :  { %5003 = vtanh.f32 %v1385_v20 }
 0xe01   :  { %v5004_v25 = vpop.eup %5003 }
 0xe02   :  { %v1387_v27 = vsub.f32 %v1293_v60, %v5004_v25 }
 0xe04   :  { %1389 = vrot.lane.b32.xlu1 %v1387_v27, %s5227_s11 }
 0xe76   :  { %v1390_v28 = vpop.permute.xlu1 %1389 }
 0xe77   :  { %v1392_v29 = vmul.f32 %v5002_v14, %v1390_v28 }
 0xe79   :  { %1394 = vrot.lane.b32.xlu0 %v1392_v29, %s5227_s11 }
 0xeeb   :  { %v1395_v30 = vpop.permute.xlu0 %1394 }
 0xeec   :  { %v1397_v31 = vadd.f32 %v5004_v25, %v1395_v30 }
 0xeee   :  { %v1398_v32 = vpack.c.bf16 %v1397_v31, %v1397_v31 }
 0xef0   :  { %4401 = vmatmul.mubr.msk.bf16.vlgmr.msra.gmra.mrb[24].mxu1 %vm899_vm1, %v1398_v32 }
 0xef1   :  { %1667 = vmatprep.mubr.bf16.mxu1 %v5224_v26  ;;  %1636 = vmatpush1.bf16.msra.mxu1 %v4823_v21  ;;  %v4835_v21 = vld [vmem:[#allocation2 + $0x120] ss:$8 sps:$4 sm:$0xff]  }
 0xef2   :  { %1637 = vmatprep.subr.bf16.mxu1 %v4828_v23  ;;  %v4840_v23 = vld [vmem:[#allocation2 + $0x134] ss:$8 sps:$4 sm:$0xff]  }
 0xef5   :  { %1638 = vmatpush1.bf16.msra.mxu1 %v4826_v24  ;;  %v4838_v24 = vld [vmem:[#allocation2 + $0x130] ss:$8 sps:$4 sm:$0xff]  }
 0xef6   :  { %1843 = vmatprep.subr.bf16.mxu1 %v4837_v22  ;;  %v4849_v22 = vld [vmem:[#allocation2 + $0x164] ss:$8 sps:$4 sm:$0xff]  }
 0xfc3   :  { %v1461_v33 = vpop.f32.mrb[24].mxu1 }
 0xfc4   :  { %v1468_v34 = vrot.slane %v1461_v33, 7  ;;  %v1463_v35 = vpop.f32.mrb[25].mxu1 }
 0xfc5   :  { %v1479_v36 = vadd.f32 %v1463_v35, %v5551_v62  ;;  %v1465_v37 = vpop.f32.mrb[26].mxu1 }
 0xfc6   :  { %v1469_v38 = vmul.f32 %v5554_v63, %v1468_v34  ;;  %v1466_v39 = vpop.f32.mrb[27].mxu1 }
 0xfc7   :  { %1481 = vrot.lane.b32.xlu1 %v1479_v36, %s5225_s0 }
 0xfc8   :  { %v1470_v40 = vadd.f32 %v1469_v38, %v1463_v35  ;;  %v1478_v48 = vadd.f32 %v1469_v38, %v5566_v17 }
 0xfca   :  { %v1471_v41 = vadd.f32 %v1470_v40, %v5559_v8 }
 0xfcc   :  { %v4402_v42 = vmul.f32 -1.442695, %v1471_v41 }
 0xfce   :  { %5005 = vpow2.f32 %v4402_v42 }
 0xfd8   :  { %v5006_v43 = vpop.eup %5005 }
 0xfd9   :  { %v1475_v44 = vadd.f32 1.0, %v5006_v43 }
 0xfdb   :  { %5007 = vrcp.f32 %v1475_v44 }
 0xfe5   :  { %v5008_v45 = vpop.eup %5007 }
0x1039   :  { %v1482_v46 = vpop.permute.xlu1 %1481 }
0x103a   :  { %v1484_v47 = vmul.f32 %v5008_v45, %v1482_v46 }
0x103c   :  { %1486 = vrot.lane.b32.xlu0 %v1484_v47, %s5226_s28 }
0x10ae   :  { %v1487_v49 = vpop.permute.xlu0 %1486 }
0x10af   :  { %v1489_v50 = vadd.f32 %v1487_v49, %v1478_v48 }
0x10b1   :  { %5009 = vtanh.f32 %v1489_v50 }
0x10bb   :  { %v5010_v55 = vpop.eup %5009 }
0x10bc   :  { %v1491_v56 = vsub.f32 %v1397_v31, %v5010_v55 }
0x10be   :  { %1493 = vrot.lane.b32.xlu1 %v1491_v56, %s5227_s11 }
0x1130   :  { %v1494_v57 = vpop.permute.xlu1 %1493 }
0x1131   :  { %v1496_v58 = vmul.f32 %v5008_v45, %v1494_v57 }
0x1133   :  { %1498 = vrot.lane.b32.xlu0 %v1496_v58, %s5227_s11 }
0x11a5   :  { %v1499_v59 = vpop.permute.xlu0 %1498 }
0x11a6   :  { %v1501_v60 = vadd.f32 %v5010_v55, %v1499_v59 }
0x11a8   :  { %v1502_v61 = vpack.c.bf16 %v1501_v60, %v1501_v60 }
0x11aa   :  { %4407 = vmatmul.mubr.msk.bf16.vlgmr.msra.gmra.mrb[16].mxu0 %vm899_vm1, %v1502_v61 }
0x11ab   :  { %1771 = vmatprep.mubr.bf16.mxu0 %v5224_v26  ;;  %1740 = vmatpush1.bf16.msra.mxu0 %v4829_v51  ;;  %v4841_v51 = vld [vmem:[#allocation2 + $0x140] ss:$8 sps:$4 sm:$0xff]  }
0x11ac   :  { %1741 = vmatprep.subr.bf16.mxu0 %v4834_v53  ;;  %v4846_v53 = vld [vmem:[#allocation2 + $0x154] ss:$8 sps:$4 sm:$0xff]  }
0x11af   :  { %1742 = vmatpush1.bf16.msra.mxu0 %v4832_v54  ;;  %v4844_v54 = vld [vmem:[#allocation2 + $0x150] ss:$8 sps:$4 sm:$0xff]  }
0x11b0   :  { %1947 = vmatprep.subr.bf16.mxu0 %v4843_v52  ;;  %v4858_v52 = vld [vmem:[#allocation2 + $0x194] ss:$8 sps:$4 sm:$0xff]  }
0x127d   :  { %v1565_v0 = vpop.f32.mrb[16].mxu0 }
0x127e   :  { %v1572_v1 = vrot.slane %v1565_v0, 7  ;;  %v1567_v2 = vpop.f32.mrb[17].mxu0 }
0x127f   :  { %v1583_v3 = vadd.f32 %v1567_v2, %v5551_v62  ;;  %v1569_v4 = vpop.f32.mrb[18].mxu0 }
0x1280   :  { %v1573_v5 = vmul.f32 %v5554_v63, %v1572_v1  ;;  %v1570_v6 = vpop.f32.mrb[19].mxu0 }
0x1281   :  { %1585 = vrot.lane.b32.xlu1 %v1583_v3, %s5225_s0 }
0x1282   :  { %v1574_v7 = vadd.f32 %v1573_v5, %v1567_v2  ;;  %v1582_v18 = vadd.f32 %v1573_v5, %v5566_v17 }
0x1284   :  { %v1575_v10 = vadd.f32 %v1574_v7, %v5559_v8 }
0x1286   :  { %v4408_v11 = vmul.f32 -1.442695, %v1575_v10 }
0x1288   :  { %5011 = vpow2.f32 %v4408_v11 }
0x1292   :  { %v5012_v12 = vpop.eup %5011 }
0x1293   :  { %v1579_v13 = vadd.f32 1.0, %v5012_v12 }
0x1295   :  { %5013 = vrcp.f32 %v1579_v13 }
0x129f   :  { %v5014_v14 = vpop.eup %5013 }
0x12f3   :  { %v1586_v15 = vpop.permute.xlu1 %1585 }
0x12f4   :  { %v1588_v16 = vmul.f32 %v5014_v14, %v1586_v15 }
0x12f6   :  { %1590 = vrot.lane.b32.xlu0 %v1588_v16, %s5226_s28 }
0x1368   :  { %v1591_v19 = vpop.permute.xlu0 %1590 }
0x1369   :  { %v1593_v20 = vadd.f32 %v1591_v19, %v1582_v18 }
0x136b   :  { %5015 = vtanh.f32 %v1593_v20 }
0x1375   :  { %v5016_v25 = vpop.eup %5015 }
0x1376   :  { %v1595_v27 = vsub.f32 %v1501_v60, %v5016_v25 }
0x1378   :  { %1597 = vrot.lane.b32.xlu1 %v1595_v27, %s5227_s11 }
0x13ea   :  { %v1598_v28 = vpop.permute.xlu1 %1597 }
0x13eb   :  { %v1600_v29 = vmul.f32 %v5014_v14, %v1598_v28 }
0x13ed   :  { %1602 = vrot.lane.b32.xlu0 %v1600_v29, %s5227_s11 }
0x145f   :  { %v1603_v30 = vpop.permute.xlu0 %1602 }
0x1460   :  { %v1605_v31 = vadd.f32 %v5016_v25, %v1603_v30 }
0x1462   :  { %v1606_v32 = vpack.c.bf16 %v1605_v31, %v1605_v31 }
0x1464   :  { %4413 = vmatmul.mubr.msk.bf16.vlgmr.msra.gmra.mrb[28].mxu1 %vm899_vm1, %v1606_v32 }
0x1465   :  { %1875 = vmatprep.mubr.bf16.mxu1 %v5224_v26  ;;  %1844 = vmatpush1.bf16.msra.mxu1 %v4835_v21  ;;  %v4847_v21 = vld [vmem:[#allocation2 + $0x160] ss:$8 sps:$4 sm:$0xff]  }
0x1466   :  { %1845 = vmatprep.subr.bf16.mxu1 %v4840_v23  ;;  %v4852_v23 = vld [vmem:[#allocation2 + $0x174] ss:$8 sps:$4 sm:$0xff]  }
0x1469   :  { %1846 = vmatpush1.bf16.msra.mxu1 %v4838_v24  ;;  %v4850_v24 = vld [vmem:[#allocation2 + $0x170] ss:$8 sps:$4 sm:$0xff]  }
0x146a   :  { %2051 = vmatprep.subr.bf16.mxu1 %v4849_v22  ;;  %v4861_v22 = vld [vmem:[#allocation2 + $0x1a4] ss:$8 sps:$4 sm:$0xff]  }
0x1537   :  { %v1669_v33 = vpop.f32.mrb[28].mxu1 }
0x1538   :  { %v1676_v34 = vrot.slane %v1669_v33, 7  ;;  %v1671_v35 = vpop.f32.mrb[29].mxu1 }
0x1539   :  { %v1687_v36 = vadd.f32 %v1671_v35, %v5551_v62  ;;  %v1673_v37 = vpop.f32.mrb[30].mxu1 }
0x153a   :  { %v1677_v38 = vmul.f32 %v5554_v63, %v1676_v34  ;;  %v1674_v39 = vpop.f32.mrb[31].mxu1 }
0x153b   :  { %1689 = vrot.lane.b32.xlu1 %v1687_v36, %s5225_s0 }
0x153c   :  { %v1678_v40 = vadd.f32 %v1677_v38, %v1671_v35  ;;  %v1686_v48 = vadd.f32 %v1677_v38, %v5566_v17 }
0x153e   :  { %v1679_v41 = vadd.f32 %v1678_v40, %v5559_v8 }
0x1540   :  { %v4414_v42 = vmul.f32 -1.442695, %v1679_v41 }
0x1542   :  { %5017 = vpow2.f32 %v4414_v42 }
0x154c   :  { %v5018_v43 = vpop.eup %5017 }
0x154d   :  { %v1683_v44 = vadd.f32 1.0, %v5018_v43 }
0x154f   :  { %5019 = vrcp.f32 %v1683_v44 }
0x1559   :  { %v5020_v45 = vpop.eup %5019 }
0x15ad   :  { %v1690_v46 = vpop.permute.xlu1 %1689 }
0x15ae   :  { %v1692_v47 = vmul.f32 %v5020_v45, %v1690_v46 }
0x15b0   :  { %1694 = vrot.lane.b32.xlu0 %v1692_v47, %s5226_s28 }
0x1622   :  { %v1695_v49 = vpop.permute.xlu0 %1694 }
0x1623   :  { %v1697_v50 = vadd.f32 %v1695_v49, %v1686_v48 }
0x1625   :  { %5021 = vtanh.f32 %v1697_v50 }
0x162f   :  { %v5022_v55 = vpop.eup %5021 }
0x1630   :  { %v1699_v56 = vsub.f32 %v1605_v31, %v5022_v55 }
0x1632   :  { %1701 = vrot.lane.b32.xlu1 %v1699_v56, %s5227_s11 }
0x16a4   :  { %v1702_v57 = vpop.permute.xlu1 %1701 }
0x16a5   :  { %v1704_v58 = vmul.f32 %v5020_v45, %v1702_v57 }
0x16a7   :  { %1706 = vrot.lane.b32.xlu0 %v1704_v58, %s5227_s11 }
0x1719   :  { %v1707_v59 = vpop.permute.xlu0 %1706 }
0x171a   :  { %v1709_v60 = vadd.f32 %v5022_v55, %v1707_v59 }
0x171c   :  { %v1710_v61 = vpack.c.bf16 %v1709_v60, %v1709_v60 }
0x171e   :  { %4419 = vmatmul.mubr.msk.bf16.vlgmr.msra.gmra.mrb[20].mxu0 %vm899_vm1, %v1710_v61 }
0x171f   :  { %1979 = vmatprep.mubr.bf16.mxu0 %v5224_v26  ;;  %1948 = vmatpush1.bf16.msra.mxu0 %v4841_v51  ;;  %v4855_v51 = vld [vmem:[#allocation2 + $0x184] ss:$8 sps:$4 sm:$0xff]  }
0x1720   :  { %1949 = vmatprep.subr.bf16.mxu0 %v4846_v53  ;;  %v4856_v53 = vld [vmem:[#allocation2 + $0x190] ss:$8 sps:$4 sm:$0xff]  }
0x1723   :  { %1950 = vmatpush1.bf16.msra.mxu0 %v4844_v54 }
0x1724   :  { %2155 = vmatprep.subr.bf16.mxu0 %v4855_v51  ;;  %v4867_v51 = vld [vmem:[#allocation2 + $0x1c4] ss:$8 sps:$4 sm:$0xff]  }
0x17f1   :  { %v1773_v0 = vpop.f32.mrb[20].mxu0 }
0x17f2   :  { %v1780_v1 = vrot.slane %v1773_v0, 7  ;;  %v1775_v2 = vpop.f32.mrb[21].mxu0 }
0x17f3   :  { %v1791_v3 = vadd.f32 %v1775_v2, %v5551_v62  ;;  %v1777_v4 = vpop.f32.mrb[22].mxu0 }
0x17f4   :  { %v1781_v5 = vmul.f32 %v5554_v63, %v1780_v1  ;;  %v1778_v6 = vpop.f32.mrb[23].mxu0 }
0x17f5   :  { %1793 = vrot.lane.b32.xlu1 %v1791_v3, %s5225_s0 }
0x17f6   :  { %v1782_v7 = vadd.f32 %v1781_v5, %v1775_v2  ;;  %v1790_v18 = vadd.f32 %v1781_v5, %v5566_v17 }
0x17f8   :  { %v1783_v10 = vadd.f32 %v1782_v7, %v5559_v8 }
0x17fa   :  { %v4420_v11 = vmul.f32 -1.442695, %v1783_v10 }
0x17fc   :  { %5023 = vpow2.f32 %v4420_v11 }
0x1806   :  { %v5024_v12 = vpop.eup %5023 }
0x1807   :  { %v1787_v13 = vadd.f32 1.0, %v5024_v12 }
0x1809   :  { %5025 = vrcp.f32 %v1787_v13 }
0x1813   :  { %v5026_v14 = vpop.eup %5025 }
0x1867   :  { %v1794_v15 = vpop.permute.xlu1 %1793 }
0x1868   :  { %v1796_v16 = vmul.f32 %v5026_v14, %v1794_v15 }
0x186a   :  { %1798 = vrot.lane.b32.xlu0 %v1796_v16, %s5226_s28 }
0x18dc   :  { %v1799_v19 = vpop.permute.xlu0 %1798 }
0x18dd   :  { %v1801_v20 = vadd.f32 %v1799_v19, %v1790_v18 }
0x18df   :  { %5027 = vtanh.f32 %v1801_v20 }
0x18e9   :  { %v5028_v25 = vpop.eup %5027 }
0x18ea   :  { %v1803_v27 = vsub.f32 %v1709_v60, %v5028_v25 }
0x18ec   :  { %1805 = vrot.lane.b32.xlu1 %v1803_v27, %s5227_s11 }
0x195e   :  { %v1806_v28 = vpop.permute.xlu1 %1805 }
0x195f   :  { %v1808_v29 = vmul.f32 %v5026_v14, %v1806_v28 }
0x1961   :  { %1810 = vrot.lane.b32.xlu0 %v1808_v29, %s5227_s11 }
0x19d3   :  { %v1811_v30 = vpop.permute.xlu0 %1810 }
0x19d4   :  { %v1813_v31 = vadd.f32 %v5028_v25, %v1811_v30 }
0x19d6   :  { %v1814_v32 = vpack.c.bf16 %v1813_v31, %v1813_v31 }
0x19d8   :  { %4425 = vmatmul.mubr.msk.bf16.vlgmr.msra.gmra.mrb[32].mxu1 %vm899_vm1, %v1814_v32 }
0x19d9   :  { %2083 = vmatprep.mubr.bf16.mxu1 %v5224_v26  ;;  %2052 = vmatpush1.bf16.msra.mxu1 %v4847_v21  ;;  %v4859_v21 = vld [vmem:[#allocation2 + $0x1a0] ss:$8 sps:$4 sm:$0xff]  }
0x19da   :  { %2053 = vmatprep.subr.bf16.mxu1 %v4852_v23  ;;  %v4864_v23 = vld [vmem:[#allocation2 + $0x1b4] ss:$8 sps:$4 sm:$0xff]  }
0x19dd   :  { %2054 = vmatpush1.bf16.msra.mxu1 %v4850_v24  ;;  %v4862_v24 = vld [vmem:[#allocation2 + $0x1b0] ss:$8 sps:$4 sm:$0xff]  }
0x19de   :  { %2259 = vmatprep.subr.bf16.mxu1 %v4861_v22  ;;  %v4873_v22 = vld [vmem:[#allocation2 + $0x1e4] ss:$8 sps:$4 sm:$0xff]  }
0x1aab   :  { %v1877_v33 = vpop.f32.mrb[32].mxu1 }
0x1aac   :  { %v1884_v34 = vrot.slane %v1877_v33, 7  ;;  %v1879_v35 = vpop.f32.mrb[33].mxu1 }
0x1aad   :  { %v1895_v36 = vadd.f32 %v1879_v35, %v5551_v62  ;;  %v1881_v37 = vpop.f32.mrb[34].mxu1 }
0x1aae   :  { %v1885_v38 = vmul.f32 %v5554_v63, %v1884_v34  ;;  %v1882_v39 = vpop.f32.mrb[35].mxu1 }
0x1aaf   :  { %1897 = vrot.lane.b32.xlu1 %v1895_v36, %s5225_s0 }
0x1ab0   :  { %v1886_v40 = vadd.f32 %v1885_v38, %v1879_v35  ;;  %v1894_v48 = vadd.f32 %v1885_v38, %v5566_v17 }
0x1ab2   :  { %v1887_v41 = vadd.f32 %v1886_v40, %v5559_v8 }
0x1ab4   :  { %v4426_v42 = vmul.f32 -1.442695, %v1887_v41 }
0x1ab6   :  { %5029 = vpow2.f32 %v4426_v42 }
0x1ac0   :  { %v5030_v43 = vpop.eup %5029 }
0x1ac1   :  { %v1891_v44 = vadd.f32 1.0, %v5030_v43 }
0x1ac3   :  { %5031 = vrcp.f32 %v1891_v44 }
0x1acd   :  { %v5032_v45 = vpop.eup %5031 }
0x1b21   :  { %v1898_v46 = vpop.permute.xlu1 %1897 }
0x1b22   :  { %v1900_v47 = vmul.f32 %v5032_v45, %v1898_v46 }
0x1b24   :  { %1902 = vrot.lane.b32.xlu0 %v1900_v47, %s5226_s28 }
0x1b96   :  { %v1903_v49 = vpop.permute.xlu0 %1902 }
0x1b97   :  { %v1905_v50 = vadd.f32 %v1903_v49, %v1894_v48 }
0x1b99   :  { %5033 = vtanh.f32 %v1905_v50  ;;  %v4853_v50 = vld [vmem:[#allocation2 + $0x180] ss:$8 sps:$4 sm:$0xff]  }
0x1ba3   :  { %v5034_v55 = vpop.eup %5033 }
0x1ba4   :  { %v1907_v56 = vsub.f32 %v1813_v31, %v5034_v55 }
0x1ba6   :  { %1909 = vrot.lane.b32.xlu1 %v1907_v56, %s5227_s11 }
0x1c18   :  { %v1910_v57 = vpop.permute.xlu1 %1909 }
0x1c19   :  { %v1912_v58 = vmul.f32 %v5032_v45, %v1910_v57 }
0x1c1b   :  { %1914 = vrot.lane.b32.xlu0 %v1912_v58, %s5227_s11 }
0x1c8d   :  { %v1915_v59 = vpop.permute.xlu0 %1914 }
0x1c8e   :  { %v1917_v60 = vadd.f32 %v5034_v55, %v1915_v59 }
0x1c90   :  { %v1918_v61 = vpack.c.bf16 %v1917_v60, %v1917_v60 }
0x1c92   :  { %4431 = vmatmul.mubr.msk.bf16.vlgmr.msra.gmra.mrb[24].mxu0 %vm899_vm1, %v1918_v61 }
0x1c93   :  { %2187 = vmatprep.mubr.bf16.mxu0 %v5224_v26  ;;  %2156 = vmatpush1.bf16.msra.mxu0 %v4853_v50  ;;  %v4865_v50 = vld [vmem:[#allocation2 + $0x1c0] ss:$8 sps:$4 sm:$0xff]  }
0x1c94   :  { %2157 = vmatprep.subr.bf16.mxu0 %v4858_v52  ;;  %v4870_v52 = vld [vmem:[#allocation2 + $0x1d4] ss:$8 sps:$4 sm:$0xff]  }
0x1c97   :  { %2158 = vmatpush1.bf16.msra.mxu0 %v4856_v53  ;;  %v4868_v53 = vld [vmem:[#allocation2 + $0x1d0] ss:$8 sps:$4 sm:$0xff]  }
0x1c98   :  { %2363 = vmatprep.subr.bf16.mxu0 %v4867_v51  ;;  %v4879_v51 = vld [vmem:[#allocation2 + $0x204] ss:$8 sps:$4 sm:$0xff]  }
0x1d65   :  { %v1981_v0 = vpop.f32.mrb[24].mxu0 }
0x1d66   :  { %v1988_v1 = vrot.slane %v1981_v0, 7  ;;  %v1983_v2 = vpop.f32.mrb[25].mxu0 }
0x1d67   :  { %v1999_v3 = vadd.f32 %v1983_v2, %v5551_v62  ;;  %v1985_v4 = vpop.f32.mrb[26].mxu0 }
0x1d68   :  { %v1989_v5 = vmul.f32 %v5554_v63, %v1988_v1  ;;  %v1986_v6 = vpop.f32.mrb[27].mxu0 }
0x1d69   :  { %2001 = vrot.lane.b32.xlu1 %v1999_v3, %s5225_s0 }
0x1d6a   :  { %v1990_v7 = vadd.f32 %v1989_v5, %v1983_v2  ;;  %v1998_v18 = vadd.f32 %v1989_v5, %v5566_v17  ;;  %v5686_v2 = vld [vmem:[%s5931_s6] sm:$0xff] }
0x1d6c   :  { %v1991_v10 = vadd.f32 %v1990_v7, %v5559_v8 }
0x1d6e   :  { %v4432_v11 = vmul.f32 -1.442695, %v1991_v10 }
0x1d70   :  { %5035 = vpow2.f32 %v4432_v11 }
0x1d7a   :  { %v5036_v12 = vpop.eup %5035 }
0x1d7b   :  { %v1995_v13 = vadd.f32 1.0, %v5036_v12 }
0x1d7d   :  { %5037 = vrcp.f32 %v1995_v13 }
0x1d87   :  { %v5038_v14 = vpop.eup %5037 }
0x1ddb   :  { %v2002_v15 = vpop.permute.xlu1 %2001 }
0x1ddc   :  { %v2004_v16 = vmul.f32 %v5038_v14, %v2002_v15 }
0x1dde   :  { %2006 = vrot.lane.b32.xlu0 %v2004_v16, %s5226_s28 }
0x1e50   :  { %v2007_v19 = vpop.permute.xlu0 %2006 }
0x1e51   :  { %v2009_v20 = vadd.f32 %v2007_v19, %v1998_v18 }
0x1e53   :  { %5039 = vtanh.f32 %v2009_v20 }
0x1e5d   :  { %v5040_v25 = vpop.eup %5039 }
0x1e5e   :  { %v2011_v27 = vsub.f32 %v1917_v60, %v5040_v25 }
0x1e60   :  { %2013 = vrot.lane.b32.xlu1 %v2011_v27, %s5227_s11 }
0x1ed2   :  { %v2014_v28 = vpop.permute.xlu1 %2013 }
0x1ed3   :  { %v2016_v29 = vmul.f32 %v5038_v14, %v2014_v28 }
0x1ed5   :  { %2018 = vrot.lane.b32.xlu0 %v2016_v29, %s5227_s11 }
0x1f47   :  { %v2019_v30 = vpop.permute.xlu0 %2018 }
0x1f48   :  { %v2021_v31 = vadd.f32 %v5040_v25, %v2019_v30 }
0x1f4a   :  { %v2022_v32 = vpack.c.bf16 %v2021_v31, %v2021_v31 }
0x1f4c   :  { %4437 = vmatmul.mubr.msk.bf16.vlgmr.msra.gmra.mrb[36].mxu1 %vm899_vm1, %v2022_v32 }
0x1f4d   :  { %2291 = vmatprep.mubr.bf16.mxu1 %v5224_v26  ;;  %2260 = vmatpush1.bf16.msra.mxu1 %v4859_v21  ;;  %v4871_v21 = vld [vmem:[#allocation2 + $0x1e0] ss:$8 sps:$4 sm:$0xff]  }
0x1f4e   :  { %2261 = vmatprep.subr.bf16.mxu1 %v4864_v23  ;;  %v4876_v23 = vld [vmem:[#allocation2 + $0x1f4] ss:$8 sps:$4 sm:$0xff]  }
0x1f51   :  { %2262 = vmatpush1.bf16.msra.mxu1 %v4862_v24  ;;  %v4874_v24 = vld [vmem:[#allocation2 + $0x1f0] ss:$8 sps:$4 sm:$0xff]  }
0x1f52   :  { %2467 = vmatprep.subr.bf16.mxu1 %v4873_v22  ;;  %v4885_v22 = vld [vmem:[#allocation2 + $0x224] ss:$8 sps:$4 sm:$0xff]  }
0x201f   :  { %v2085_v33 = vpop.f32.mrb[36].mxu1 }
0x2020   :  { %v2092_v34 = vrot.slane %v2085_v33, 7  ;;  %v2087_v35 = vpop.f32.mrb[37].mxu1 }
0x2021   :  { %v2103_v36 = vadd.f32 %v2087_v35, %v5551_v62  ;;  %v2089_v37 = vpop.f32.mrb[38].mxu1 }
0x2022   :  { %v2093_v38 = vmul.f32 %v5554_v63, %v2092_v34  ;;  %v2090_v39 = vpop.f32.mrb[39].mxu1 }
0x2023   :  { %2105 = vrot.lane.b32.xlu1 %v2103_v36, %s5225_s0 }
0x2024   :  { %v2094_v40 = vadd.f32 %v2093_v38, %v2087_v35  ;;  %v2102_v62 = vadd.f32 %v2093_v38, %v5566_v17 }
0x2026   :  { %v2095_v41 = vadd.f32 %v2094_v40, %v5559_v8 }
0x2028   :  { %v4438_v42 = vmul.f32 -1.442695, %v2095_v41 }
0x202a   :  { %5041 = vpow2.f32 %v4438_v42 }
0x2034   :  { %v5042_v43 = vpop.eup %5041 }
0x2035   :  { %v2099_v44 = vadd.f32 1.0, %v5042_v43 }
0x2037   :  { %5043 = vrcp.f32 %v2099_v44 }
0x2041   :  { %v5044_v45 = vpop.eup %5043 }
0x2095   :  { %v2106_v46 = vpop.permute.xlu1 %2105 }
0x2096   :  { %v2108_v47 = vmul.f32 %v5044_v45, %v2106_v46 }
0x2098   :  { %2110 = vrot.lane.b32.xlu0 %v2108_v47, %s5226_s28  ;;  %v5706_v47 = vld [vmem:[%s5930_s5] sm:$0xff] }
0x210a   :  { %v2111_v48 = vpop.permute.xlu0 %2110 }
0x210b   :  { %v2113_v49 = vadd.f32 %v2111_v48, %v2102_v62 }
0x210d   :  { %5045 = vtanh.f32 %v2113_v49 }
0x2117   :  { %v5046_v54 = vpop.eup %5045 }
0x2118   :  { %v2115_v55 = vsub.f32 %v2021_v31, %v5046_v54 }
0x211a   :  { %2117 = vrot.lane.b32.xlu1 %v2115_v55, %s5227_s11 }
0x218c   :  { %v2118_v56 = vpop.permute.xlu1 %2117 }
0x218d   :  { %v2120_v57 = vmul.f32 %v5044_v45, %v2118_v56 }
0x218f   :  { %2122 = vrot.lane.b32.xlu0 %v2120_v57, %s5227_s11 }
0x2201   :  { %v2123_v58 = vpop.permute.xlu0 %2122 }
0x2202   :  { %v2125_v59 = vadd.f32 %v5046_v54, %v2123_v58 }
0x2204   :  { %v2126_v60 = vpack.c.bf16 %v2125_v59, %v2125_v59 }
0x2206   :  { %4443 = vmatmul.mubr.msk.bf16.vlgmr.msra.gmra.mrb[28].mxu0 %vm899_vm1, %v2126_v60 }
0x2207   :  { %2395 = vmatprep.mubr.bf16.mxu0 %v5224_v26  ;;  %2364 = vmatpush1.bf16.msra.mxu0 %v4865_v50  ;;  %v4877_v50 = vld [vmem:[#allocation2 + $0x200] ss:$8 sps:$4 sm:$0xff]  }
0x2208   :  { %2365 = vmatprep.subr.bf16.mxu0 %v4870_v52  ;;  %v4882_v52 = vld [vmem:[#allocation2 + $0x214] ss:$8 sps:$4 sm:$0xff]  }
0x220b   :  { %2366 = vmatpush1.bf16.msra.mxu0 %v4868_v53  ;;  %v4880_v53 = vld [vmem:[#allocation2 + $0x210] ss:$8 sps:$4 sm:$0xff]  }
0x220c   :  { %2571 = vmatprep.subr.bf16.mxu0 %v4879_v51  ;;  %v4891_v51 = vld [vmem:[#allocation2 + $0x244] ss:$8 sps:$4 sm:$0xff]  }
0x22d9   :  { %v2189_v61 = vpop.f32.mrb[28].mxu0 }
0x22da   :  { %v2196_v0 = vrot.slane %v2189_v61, 7  ;;  %v2191_v1 = vpop.f32.mrb[29].mxu0 }
0x22db   :  { %v2207_v3 = vadd.f32 %v5686_v2, %v2191_v1  ;;  %v2193_v4 = vpop.f32.mrb[30].mxu0 }
0x22dc   :  { %v2197_v5 = vmul.f32 %v5554_v63, %v2196_v0  ;;  %v2194_v6 = vpop.f32.mrb[31].mxu0 }
0x22dd   :  { %2209 = vrot.lane.b32.xlu1 %v2207_v3, %s5225_s0 }
0x22de   :  { %v2198_v7 = vadd.f32 %v2197_v5, %v2191_v1  ;;  %v2206_v18 = vadd.f32 %v2197_v5, %v5566_v17 }
0x22e0   :  { %v2199_v10 = vadd.f32 %v2198_v7, %v5559_v8 }
0x22e2   :  { %v4444_v11 = vmul.f32 -1.442695, %v2199_v10 }
0x22e4   :  { %5047 = vpow2.f32 %v4444_v11 }
0x22ee   :  { %v5048_v12 = vpop.eup %5047 }
0x22ef   :  { %v2203_v13 = vadd.f32 1.0, %v5048_v12 }
0x22f1   :  { %5049 = vrcp.f32 %v2203_v13 }
0x22fb   :  { %v5050_v14 = vpop.eup %5049 }
0x234f   :  { %v2210_v15 = vpop.permute.xlu1 %2209 }
0x2350   :  { %v2212_v16 = vmul.f32 %v5050_v14, %v2210_v15 }
0x2352   :  { %2214 = vrot.lane.b32.xlu0 %v2212_v16, %s5226_s28 }
0x23c4   :  { %v2215_v19 = vpop.permute.xlu0 %2214 }
0x23c5   :  { %v2217_v20 = vadd.f32 %v2215_v19, %v2206_v18 }
0x23c7   :  { %5051 = vtanh.f32 %v2217_v20 }
0x23d1   :  { %v5052_v25 = vpop.eup %5051 }
0x23d2   :  { %v2219_v27 = vsub.f32 %v2125_v59, %v5052_v25 }
0x23d4   :  { %2221 = vrot.lane.b32.xlu1 %v2219_v27, %s5227_s11 }
0x2446   :  { %v2222_v28 = vpop.permute.xlu1 %2221 }
0x2447   :  { %v2224_v29 = vmul.f32 %v5050_v14, %v2222_v28 }
0x2449   :  { %2226 = vrot.lane.b32.xlu0 %v2224_v29, %s5227_s11 }
0x24bb   :  { %v2227_v17 = vpop.permute.xlu0 %2226 }
0x24bc   :  { %v2229_v30 = vadd.f32 %v5052_v25, %v2227_v17 }
0x24be   :  { %v2230_v31 = vpack.c.bf16 %v2229_v30, %v2229_v30 }
0x24c0   :  { %4449 = vmatmul.mubr.msk.bf16.vlgmr.msra.gmra.mrb[40].mxu1 %vm899_vm1, %v2230_v31 }
0x24c1   :  { %2499 = vmatprep.mubr.bf16.mxu1 %v5224_v26  ;;  %2468 = vmatpush1.bf16.msra.mxu1 %v4871_v21  ;;  %v4883_v21 = vld [vmem:[#allocation2 + $0x220] ss:$8 sps:$4 sm:$0xff]  }
0x24c2   :  { %2469 = vmatprep.subr.bf16.mxu1 %v4876_v23  ;;  %v4888_v23 = vld [vmem:[#allocation2 + $0x234] ss:$8 sps:$4 sm:$0xff]  }
0x24c5   :  { %2470 = vmatpush1.bf16.msra.mxu1 %v4874_v24  ;;  %v4886_v24 = vld [vmem:[#allocation2 + $0x230] ss:$8 sps:$4 sm:$0xff]  }
0x24c6   :  { %2675 = vmatprep.subr.bf16.mxu1 %v4885_v22  ;;  %v4897_v22 = vld [vmem:[#allocation2 + $0x264] ss:$8 sps:$4 sm:$0xff]  }
0x2593   :  { %v2293_v32 = vpop.f32.mrb[40].mxu1 }
0x2594   :  { %v2300_v33 = vrot.slane %v2293_v32, 7  ;;  %v2295_v34 = vpop.f32.mrb[41].mxu1 }
0x2595   :  { %v2311_v35 = vadd.f32 %v5686_v2, %v2295_v34  ;;  %v2297_v36 = vpop.f32.mrb[42].mxu1 }
0x2596   :  { %v2301_v37 = vmul.f32 %v5554_v63, %v2300_v33  ;;  %v2298_v38 = vpop.f32.mrb[43].mxu1 }
0x2597   :  { %2313 = vrot.lane.b32.xlu1 %v2311_v35, %s5225_s0 }
0x2598   :  { %v2302_v39 = vadd.f32 %v2301_v37, %v2295_v34  ;;  %v2310_v62 = vadd.f32 %v5706_v47, %v2301_v37 }
0x259a   :  { %v2303_v40 = vadd.f32 %v2302_v39, %v5559_v8 }
0x259c   :  { %v4450_v41 = vmul.f32 -1.442695, %v2303_v40 }
0x259e   :  { %5053 = vpow2.f32 %v4450_v41 }
0x25a8   :  { %v5054_v42 = vpop.eup %5053 }
0x25a9   :  { %v2307_v43 = vadd.f32 1.0, %v5054_v42 }
0x25ab   :  { %5055 = vrcp.f32 %v2307_v43 }
0x25b5   :  { %v5056_v44 = vpop.eup %5055 }
0x2609   :  { %v2314_v45 = vpop.permute.xlu1 %2313 }
0x260a   :  { %v2316_v46 = vmul.f32 %v5056_v44, %v2314_v45 }
0x260c   :  { %2318 = vrot.lane.b32.xlu0 %v2316_v46, %s5226_s28 }
0x267e   :  { %v2319_v48 = vpop.permute.xlu0 %2318 }
0x267f   :  { %v2321_v49 = vadd.f32 %v2319_v48, %v2310_v62 }
0x2681   :  { %5057 = vtanh.f32 %v2321_v49 }
0x268b   :  { %v5058_v54 = vpop.eup %5057 }
0x268c   :  { %v2323_v55 = vsub.f32 %v2229_v30, %v5058_v54 }
0x268e   :  { %2325 = vrot.lane.b32.xlu1 %v2323_v55, %s5227_s11 }
0x2700   :  { %v2326_v56 = vpop.permute.xlu1 %2325 }
0x2701   :  { %v2328_v57 = vmul.f32 %v5056_v44, %v2326_v56 }
0x2703   :  { %2330 = vrot.lane.b32.xlu0 %v2328_v57, %s5227_s11 }
0x2775   :  { %v2331_v58 = vpop.permute.xlu0 %2330 }
0x2776   :  { %v2333_v59 = vadd.f32 %v5058_v54, %v2331_v58 }
0x2778   :  { %v2334_v60 = vpack.c.bf16 %v2333_v59, %v2333_v59 }
0x277a   :  { %4455 = vmatmul.mubr.msk.bf16.vlgmr.msra.gmra.mrb[32].mxu0 %vm899_vm1, %v2334_v60 }
0x277b   :  { %2603 = vmatprep.mubr.bf16.mxu0 %v5224_v26  ;;  %2572 = vmatpush1.bf16.msra.mxu0 %v4877_v50  ;;  %v4889_v50 = vld [vmem:[#allocation2 + $0x240] ss:$8 sps:$4 sm:$0xff]  }
0x277c   :  { %2573 = vmatprep.subr.bf16.mxu0 %v4882_v52  ;;  %v4894_v52 = vld [vmem:[#allocation2 + $0x254] ss:$8 sps:$4 sm:$0xff]  }
0x277f   :  { %2574 = vmatpush1.bf16.msra.mxu0 %v4880_v53  ;;  %v4892_v53 = vld [vmem:[#allocation2 + $0x250] ss:$8 sps:$4 sm:$0xff]  }
0x2780   :  { %2779 = vmatprep.subr.bf16.mxu0 %v4891_v51  ;;  %v4903_v51 = vld [vmem:[#allocation2 + $0x284] ss:$8 sps:$4 sm:$0xff]  }
0x284d   :  { %v2397_v61 = vpop.f32.mrb[32].mxu0 }
0x284e   :  { %v2404_v0 = vrot.slane %v2397_v61, 7  ;;  %v2399_v1 = vpop.f32.mrb[33].mxu0 }
0x284f   :  { %v2415_v3 = vadd.f32 %v5686_v2, %v2399_v1  ;;  %v2401_v4 = vpop.f32.mrb[34].mxu0 }
0x2850   :  { %v2405_v5 = vmul.f32 %v5554_v63, %v2404_v0  ;;  %v2402_v6 = vpop.f32.mrb[35].mxu0 }
0x2851   :  { %2417 = vrot.lane.b32.xlu1 %v2415_v3, %s5225_s0 }
0x2852   :  { %v2406_v7 = vadd.f32 %v2405_v5, %v2399_v1  ;;  %v2414_v18 = vadd.f32 %v5706_v47, %v2405_v5 }
0x2854   :  { %v2407_v10 = vadd.f32 %v2406_v7, %v5559_v8 }
0x2856   :  { %v4456_v11 = vmul.f32 -1.442695, %v2407_v10 }
0x2858   :  { %5059 = vpow2.f32 %v4456_v11 }
0x2862   :  { %v5060_v12 = vpop.eup %5059 }
0x2863   :  { %v2411_v13 = vadd.f32 1.0, %v5060_v12 }
0x2865   :  { %5061 = vrcp.f32 %v2411_v13 }
0x286f   :  { %v5062_v14 = vpop.eup %5061 }
0x28c3   :  { %v2418_v15 = vpop.permute.xlu1 %2417 }
0x28c4   :  { %v2420_v16 = vmul.f32 %v5062_v14, %v2418_v15 }
0x28c6   :  { %2422 = vrot.lane.b32.xlu0 %v2420_v16, %s5226_s28 }
0x2938   :  { %v2423_v19 = vpop.permute.xlu0 %2422 }
0x2939   :  { %v2425_v20 = vadd.f32 %v2423_v19, %v2414_v18 }
0x293b   :  { %5063 = vtanh.f32 %v2425_v20 }
0x2945   :  { %v5064_v25 = vpop.eup %5063 }
0x2946   :  { %v2427_v27 = vsub.f32 %v2333_v59, %v5064_v25 }
0x2948   :  { %2429 = vrot.lane.b32.xlu1 %v2427_v27, %s5227_s11 }
0x29ba   :  { %v2430_v28 = vpop.permute.xlu1 %2429 }
0x29bb   :  { %v2432_v29 = vmul.f32 %v5062_v14, %v2430_v28 }
0x29bd   :  { %2434 = vrot.lane.b32.xlu0 %v2432_v29, %s5227_s11 }
0x2a2f   :  { %v2435_v17 = vpop.permute.xlu0 %2434 }
0x2a30   :  { %v2437_v30 = vadd.f32 %v5064_v25, %v2435_v17 }
0x2a32   :  { %v2438_v31 = vpack.c.bf16 %v2437_v30, %v2437_v30 }
0x2a34   :  { %4461 = vmatmul.mubr.msk.bf16.vlgmr.msra.gmra.mrb[44].mxu1 %vm899_vm1, %v2438_v31 }
0x2a35   :  { %2707 = vmatprep.mubr.bf16.mxu1 %v5224_v26  ;;  %2676 = vmatpush1.bf16.msra.mxu1 %v4883_v21  ;;  %v4895_v21 = vld [vmem:[#allocation2 + $0x260] ss:$8 sps:$4 sm:$0xff]  }
0x2a36   :  { %2677 = vmatprep.subr.bf16.mxu1 %v4888_v23  ;;  %v4900_v23 = vld [vmem:[#allocation2 + $0x274] ss:$8 sps:$4 sm:$0xff]  }
0x2a39   :  { %2678 = vmatpush1.bf16.msra.mxu1 %v4886_v24  ;;  %v4898_v24 = vld [vmem:[#allocation2 + $0x270] ss:$8 sps:$4 sm:$0xff]  }
0x2a3a   :  { %2883 = vmatprep.subr.bf16.mxu1 %v4897_v22  ;;  %v4909_v22 = vld [vmem:[#allocation2 + $0x2a4] ss:$8 sps:$4 sm:$0xff]  }
0x2b07   :  { %v2501_v32 = vpop.f32.mrb[44].mxu1 }
0x2b08   :  { %v2508_v33 = vrot.slane %v2501_v32, 7  ;;  %v2503_v34 = vpop.f32.mrb[45].mxu1 }
0x2b09   :  { %v2519_v35 = vadd.f32 %v5686_v2, %v2503_v34  ;;  %v2505_v36 = vpop.f32.mrb[46].mxu1 }
0x2b0a   :  { %v2509_v37 = vmul.f32 %v5554_v63, %v2508_v33  ;;  %v2506_v38 = vpop.f32.mrb[47].mxu1 }
0x2b0b   :  { %2521 = vrot.lane.b32.xlu1 %v2519_v35, %s5225_s0 }
0x2b0c   :  { %v2510_v39 = vadd.f32 %v2509_v37, %v2503_v34  ;;  %v2518_v62 = vadd.f32 %v5706_v47, %v2509_v37 }
0x2b0e   :  { %v2511_v40 = vadd.f32 %v2510_v39, %v5559_v8 }
0x2b10   :  { %v4462_v41 = vmul.f32 -1.442695, %v2511_v40 }
0x2b12   :  { %5065 = vpow2.f32 %v4462_v41 }
0x2b1c   :  { %v5066_v42 = vpop.eup %5065 }
0x2b1d   :  { %v2515_v43 = vadd.f32 1.0, %v5066_v42 }
0x2b1f   :  { %5067 = vrcp.f32 %v2515_v43 }
0x2b29   :  { %v5068_v44 = vpop.eup %5067 }
0x2b7d   :  { %v2522_v45 = vpop.permute.xlu1 %2521 }
0x2b7e   :  { %v2524_v46 = vmul.f32 %v5068_v44, %v2522_v45 }
0x2b80   :  { %2526 = vrot.lane.b32.xlu0 %v2524_v46, %s5226_s28 }
0x2bf2   :  { %v2527_v48 = vpop.permute.xlu0 %2526 }
0x2bf3   :  { %v2529_v49 = vadd.f32 %v2527_v48, %v2518_v62 }
0x2bf5   :  { %5069 = vtanh.f32 %v2529_v49 }
0x2bff   :  { %v5070_v54 = vpop.eup %5069 }
0x2c00   :  { %v2531_v55 = vsub.f32 %v2437_v30, %v5070_v54 }
0x2c02   :  { %2533 = vrot.lane.b32.xlu1 %v2531_v55, %s5227_s11 }
0x2c74   :  { %v2534_v56 = vpop.permute.xlu1 %2533 }
0x2c75   :  { %v2536_v57 = vmul.f32 %v5068_v44, %v2534_v56 }
0x2c77   :  { %2538 = vrot.lane.b32.xlu0 %v2536_v57, %s5227_s11 }
0x2ce9   :  { %v2539_v58 = vpop.permute.xlu0 %2538 }
0x2cea   :  { %v2541_v59 = vadd.f32 %v5070_v54, %v2539_v58 }
0x2cec   :  { %v2542_v60 = vpack.c.bf16 %v2541_v59, %v2541_v59 }
0x2cee   :  { %4467 = vmatmul.mubr.msk.bf16.vlgmr.msra.gmra.mrb[36].mxu0 %vm899_vm1, %v2542_v60 }
0x2cef   :  { %2811 = vmatprep.mubr.bf16.mxu0 %v5224_v26  ;;  %2780 = vmatpush1.bf16.msra.mxu0 %v4889_v50  ;;  %v4901_v50 = vld [vmem:[#allocation2 + $0x280] ss:$8 sps:$4 sm:$0xff]  }
0x2cf0   :  { %2781 = vmatprep.subr.bf16.mxu0 %v4894_v52  ;;  %v4906_v52 = vld [vmem:[#allocation2 + $0x294] ss:$8 sps:$4 sm:$0xff]  }
0x2cf3   :  { %2782 = vmatpush1.bf16.msra.mxu0 %v4892_v53  ;;  %v4904_v53 = vld [vmem:[#allocation2 + $0x290] ss:$8 sps:$4 sm:$0xff]  }
0x2cf4   :  { %2987 = vmatprep.subr.bf16.mxu0 %v4903_v51  ;;  %v4915_v51 = vld [vmem:[#allocation2 + $0x2c4] ss:$8 sps:$4 sm:$0xff]  }
0x2dc1   :  { %v2605_v61 = vpop.f32.mrb[36].mxu0 }
0x2dc2   :  { %v2612_v0 = vrot.slane %v2605_v61, 7  ;;  %v2607_v1 = vpop.f32.mrb[37].mxu0 }
0x2dc3   :  { %v2623_v3 = vadd.f32 %v5686_v2, %v2607_v1  ;;  %v2609_v4 = vpop.f32.mrb[38].mxu0 }
0x2dc4   :  { %v2613_v5 = vmul.f32 %v5554_v63, %v2612_v0  ;;  %v2610_v6 = vpop.f32.mrb[39].mxu0 }
0x2dc5   :  { %2625 = vrot.lane.b32.xlu1 %v2623_v3, %s5225_s0 }
0x2dc6   :  { %v2614_v7 = vadd.f32 %v2613_v5, %v2607_v1  ;;  %v2622_v18 = vadd.f32 %v5706_v47, %v2613_v5 }
0x2dc8   :  { %v2615_v10 = vadd.f32 %v2614_v7, %v5559_v8 }
0x2dca   :  { %v4468_v11 = vmul.f32 -1.442695, %v2615_v10 }
0x2dcc   :  { %5071 = vpow2.f32 %v4468_v11 }
0x2dd6   :  { %v5072_v12 = vpop.eup %5071 }
0x2dd7   :  { %v2619_v13 = vadd.f32 1.0, %v5072_v12 }
0x2dd9   :  { %5073 = vrcp.f32 %v2619_v13 }
0x2de3   :  { %v5074_v14 = vpop.eup %5073 }
0x2e37   :  { %v2626_v15 = vpop.permute.xlu1 %2625 }
0x2e38   :  { %v2628_v16 = vmul.f32 %v5074_v14, %v2626_v15 }
0x2e3a   :  { %2630 = vrot.lane.b32.xlu0 %v2628_v16, %s5226_s28 }
0x2eac   :  { %v2631_v19 = vpop.permute.xlu0 %2630 }
0x2ead   :  { %v2633_v20 = vadd.f32 %v2631_v19, %v2622_v18 }
0x2eaf   :  { %5075 = vtanh.f32 %v2633_v20 }
0x2eb9   :  { %v5076_v25 = vpop.eup %5075 }
0x2eba   :  { %v2635_v27 = vsub.f32 %v2541_v59, %v5076_v25 }
0x2ebc   :  { %2637 = vrot.lane.b32.xlu1 %v2635_v27, %s5227_s11 }
0x2f2e   :  { %v2638_v28 = vpop.permute.xlu1 %2637 }
0x2f2f   :  { %v2640_v29 = vmul.f32 %v5074_v14, %v2638_v28 }
0x2f31   :  { %2642 = vrot.lane.b32.xlu0 %v2640_v29, %s5227_s11 }
0x2fa3   :  { %v2643_v17 = vpop.permute.xlu0 %2642 }
0x2fa4   :  { %v2645_v30 = vadd.f32 %v5076_v25, %v2643_v17 }
0x2fa6   :  { %v2646_v31 = vpack.c.bf16 %v2645_v30, %v2645_v30 }
0x2fa8   :  { %4473 = vmatmul.mubr.msk.bf16.vlgmr.msra.gmra.mrb[48].mxu1 %vm899_vm1, %v2646_v31 }
0x2fa9   :  { %2915 = vmatprep.mubr.bf16.mxu1 %v5224_v26  ;;  %2884 = vmatpush1.bf16.msra.mxu1 %v4895_v21  ;;  %v4907_v21 = vld [vmem:[#allocation2 + $0x2a0] ss:$8 sps:$4 sm:$0xff]  }
0x2faa   :  { %2885 = vmatprep.subr.bf16.mxu1 %v4900_v23  ;;  %v4912_v23 = vld [vmem:[#allocation2 + $0x2b4] ss:$8 sps:$4 sm:$0xff]  }
0x2fad   :  { %2886 = vmatpush1.bf16.msra.mxu1 %v4898_v24  ;;  %v4910_v24 = vld [vmem:[#allocation2 + $0x2b0] ss:$8 sps:$4 sm:$0xff]  }
0x2fae   :  { %3091 = vmatprep.subr.bf16.mxu1 %v4909_v22  ;;  %v4921_v22 = vld [vmem:[#allocation2 + $0x2e4] ss:$8 sps:$4 sm:$0xff]  }
0x307b   :  { %v2709_v32 = vpop.f32.mrb[48].mxu1 }
0x307c   :  { %v2716_v33 = vrot.slane %v2709_v32, 7  ;;  %v2711_v34 = vpop.f32.mrb[49].mxu1 }
0x307d   :  { %v2727_v35 = vadd.f32 %v5686_v2, %v2711_v34  ;;  %v2713_v36 = vpop.f32.mrb[50].mxu1 }
0x307e   :  { %v2717_v37 = vmul.f32 %v5554_v63, %v2716_v33  ;;  %v2714_v38 = vpop.f32.mrb[51].mxu1 }
0x307f   :  { %2729 = vrot.lane.b32.xlu1 %v2727_v35, %s5225_s0 }
0x3080   :  { %v2718_v39 = vadd.f32 %v2717_v37, %v2711_v34  ;;  %v2726_v62 = vadd.f32 %v5706_v47, %v2717_v37 }
0x3082   :  { %v2719_v40 = vadd.f32 %v2718_v39, %v5559_v8 }
0x3084   :  { %v4474_v41 = vmul.f32 -1.442695, %v2719_v40 }
0x3086   :  { %5077 = vpow2.f32 %v4474_v41 }
0x3090   :  { %v5078_v42 = vpop.eup %5077 }
0x3091   :  { %v2723_v43 = vadd.f32 1.0, %v5078_v42 }
0x3093   :  { %5079 = vrcp.f32 %v2723_v43 }
0x309d   :  { %v5080_v44 = vpop.eup %5079 }
0x30f1   :  { %v2730_v45 = vpop.permute.xlu1 %2729 }
0x30f2   :  { %v2732_v46 = vmul.f32 %v5080_v44, %v2730_v45 }
0x30f4   :  { %2734 = vrot.lane.b32.xlu0 %v2732_v46, %s5226_s28 }
0x3166   :  { %v2735_v48 = vpop.permute.xlu0 %2734 }
0x3167   :  { %v2737_v49 = vadd.f32 %v2735_v48, %v2726_v62 }
0x3169   :  { %5081 = vtanh.f32 %v2737_v49 }
0x3173   :  { %v5082_v54 = vpop.eup %5081 }
0x3174   :  { %v2739_v55 = vsub.f32 %v2645_v30, %v5082_v54 }
0x3176   :  { %2741 = vrot.lane.b32.xlu1 %v2739_v55, %s5227_s11 }
0x31e8   :  { %v2742_v56 = vpop.permute.xlu1 %2741 }
0x31e9   :  { %v2744_v57 = vmul.f32 %v5080_v44, %v2742_v56 }
0x31eb   :  { %2746 = vrot.lane.b32.xlu0 %v2744_v57, %s5227_s11 }
0x325d   :  { %v2747_v58 = vpop.permute.xlu0 %2746 }
0x325e   :  { %v2749_v59 = vadd.f32 %v5082_v54, %v2747_v58 }
0x3260   :  { %v2750_v60 = vpack.c.bf16 %v2749_v59, %v2749_v59 }
0x3262   :  { %4479 = vmatmul.mubr.msk.bf16.vlgmr.msra.gmra.mrb[40].mxu0 %vm899_vm1, %v2750_v60 }
0x3263   :  { %3019 = vmatprep.mubr.bf16.mxu0 %v5224_v26  ;;  %2988 = vmatpush1.bf16.msra.mxu0 %v4901_v50  ;;  %v4913_v50 = vld [vmem:[#allocation2 + $0x2c0] ss:$8 sps:$4 sm:$0xff]  }
0x3264   :  { %2989 = vmatprep.subr.bf16.mxu0 %v4906_v52  ;;  %v4918_v52 = vld [vmem:[#allocation2 + $0x2d4] ss:$8 sps:$4 sm:$0xff]  }
0x3267   :  { %2990 = vmatpush1.bf16.msra.mxu0 %v4904_v53  ;;  %v4916_v53 = vld [vmem:[#allocation2 + $0x2d0] ss:$8 sps:$4 sm:$0xff]  }
0x3268   :  { %3195 = vmatprep.subr.bf16.mxu0 %v4915_v51  ;;  %v4927_v51 = vld [vmem:[#allocation2 + $0x304] ss:$8 sps:$4 sm:$0xff]  }
0x3335   :  { %v2813_v61 = vpop.f32.mrb[40].mxu0 }
0x3336   :  { %v2820_v0 = vrot.slane %v2813_v61, 7  ;;  %v2815_v1 = vpop.f32.mrb[41].mxu0 }
0x3337   :  { %v2831_v3 = vadd.f32 %v5686_v2, %v2815_v1  ;;  %v2817_v4 = vpop.f32.mrb[42].mxu0 }
0x3338   :  { %v2821_v5 = vmul.f32 %v5554_v63, %v2820_v0  ;;  %v2818_v6 = vpop.f32.mrb[43].mxu0 }
0x3339   :  { %2833 = vrot.lane.b32.xlu1 %v2831_v3, %s5225_s0 }
0x333a   :  { %v2822_v7 = vadd.f32 %v2821_v5, %v2815_v1  ;;  %v2830_v18 = vadd.f32 %v5706_v47, %v2821_v5 }
0x333c   :  { %v2823_v10 = vadd.f32 %v2822_v7, %v5559_v8 }
0x333e   :  { %v4480_v11 = vmul.f32 -1.442695, %v2823_v10 }
0x3340   :  { %5083 = vpow2.f32 %v4480_v11 }
0x334a   :  { %v5084_v12 = vpop.eup %5083 }
0x334b   :  { %v2827_v13 = vadd.f32 1.0, %v5084_v12 }
0x334d   :  { %5085 = vrcp.f32 %v2827_v13 }
0x3357   :  { %v5086_v14 = vpop.eup %5085 }
0x33ab   :  { %v2834_v15 = vpop.permute.xlu1 %2833 }
0x33ac   :  { %v2836_v16 = vmul.f32 %v5086_v14, %v2834_v15 }
0x33ae   :  { %2838 = vrot.lane.b32.xlu0 %v2836_v16, %s5226_s28 }
0x3420   :  { %v2839_v19 = vpop.permute.xlu0 %2838 }
0x3421   :  { %v2841_v20 = vadd.f32 %v2839_v19, %v2830_v18 }
0x3423   :  { %5087 = vtanh.f32 %v2841_v20 }
0x342d   :  { %v5088_v25 = vpop.eup %5087 }
0x342e   :  { %v2843_v27 = vsub.f32 %v2749_v59, %v5088_v25 }
0x3430   :  { %2845 = vrot.lane.b32.xlu1 %v2843_v27, %s5227_s11 }
0x34a2   :  { %v2846_v28 = vpop.permute.xlu1 %2845 }
0x34a3   :  { %v2848_v29 = vmul.f32 %v5086_v14, %v2846_v28 }
0x34a5   :  { %2850 = vrot.lane.b32.xlu0 %v2848_v29, %s5227_s11 }
0x3517   :  { %v2851_v17 = vpop.permute.xlu0 %2850 }
0x3518   :  { %v2853_v30 = vadd.f32 %v5088_v25, %v2851_v17 }
0x351a   :  { %v2854_v31 = vpack.c.bf16 %v2853_v30, %v2853_v30 }
0x351c   :  { %4485 = vmatmul.mubr.msk.bf16.vlgmr.msra.gmra.mrb[52].mxu1 %vm899_vm1, %v2854_v31 }
0x351d   :  { %3123 = vmatprep.mubr.bf16.mxu1 %v5224_v26  ;;  %3092 = vmatpush1.bf16.msra.mxu1 %v4907_v21  ;;  %v4919_v21 = vld [vmem:[#allocation2 + $0x2e0] ss:$8 sps:$4 sm:$0xff]  }
0x351e   :  { %3093 = vmatprep.subr.bf16.mxu1 %v4912_v23  ;;  %v4924_v23 = vld [vmem:[#allocation2 + $0x2f4] ss:$8 sps:$4 sm:$0xff]  }
0x3521   :  { %3094 = vmatpush1.bf16.msra.mxu1 %v4910_v24  ;;  %v4922_v24 = vld [vmem:[#allocation2 + $0x2f0] ss:$8 sps:$4 sm:$0xff]  }
0x3522   :  { %3299 = vmatprep.subr.bf16.mxu1 %v4921_v22  ;;  %v4936_v22 = vld [vmem:[#allocation2 + $0x334] ss:$8 sps:$4 sm:$0xff]  }
0x35ef   :  { %v2917_v32 = vpop.f32.mrb[52].mxu1 }
0x35f0   :  { %v2924_v33 = vrot.slane %v2917_v32, 7  ;;  %v2919_v34 = vpop.f32.mrb[53].mxu1 }
0x35f1   :  { %v2935_v35 = vadd.f32 %v5686_v2, %v2919_v34  ;;  %v2921_v36 = vpop.f32.mrb[54].mxu1 }
0x35f2   :  { %v2925_v37 = vmul.f32 %v5554_v63, %v2924_v33  ;;  %v2922_v38 = vpop.f32.mrb[55].mxu1 }
0x35f3   :  { %2937 = vrot.lane.b32.xlu1 %v2935_v35, %s5225_s0 }
0x35f4   :  { %v2926_v39 = vadd.f32 %v2925_v37, %v2919_v34  ;;  %v2934_v62 = vadd.f32 %v5706_v47, %v2925_v37 }
0x35f6   :  { %v2927_v40 = vadd.f32 %v2926_v39, %v5559_v8 }
0x35f8   :  { %v4486_v41 = vmul.f32 -1.442695, %v2927_v40 }
0x35fa   :  { %5089 = vpow2.f32 %v4486_v41 }
0x3604   :  { %v5090_v42 = vpop.eup %5089 }
0x3605   :  { %v2931_v43 = vadd.f32 1.0, %v5090_v42 }
0x3607   :  { %5091 = vrcp.f32 %v2931_v43 }
0x3611   :  { %v5092_v44 = vpop.eup %5091 }
0x3665   :  { %v2938_v45 = vpop.permute.xlu1 %2937 }
0x3666   :  { %v2940_v46 = vmul.f32 %v5092_v44, %v2938_v45 }
0x3668   :  { %2942 = vrot.lane.b32.xlu0 %v2940_v46, %s5226_s28 }
0x36da   :  { %v2943_v48 = vpop.permute.xlu0 %2942 }
0x36db   :  { %v2945_v49 = vadd.f32 %v2943_v48, %v2934_v62 }
0x36dd   :  { %5093 = vtanh.f32 %v2945_v49 }
0x36e7   :  { %v5094_v54 = vpop.eup %5093 }
0x36e8   :  { %v2947_v55 = vsub.f32 %v2853_v30, %v5094_v54 }
0x36ea   :  { %2949 = vrot.lane.b32.xlu1 %v2947_v55, %s5227_s11 }
0x375c   :  { %v2950_v56 = vpop.permute.xlu1 %2949 }
0x375d   :  { %v2952_v57 = vmul.f32 %v5092_v44, %v2950_v56 }
0x375f   :  { %2954 = vrot.lane.b32.xlu0 %v2952_v57, %s5227_s11 }
0x37d1   :  { %v2955_v58 = vpop.permute.xlu0 %2954 }
0x37d2   :  { %v2957_v59 = vadd.f32 %v5094_v54, %v2955_v58 }
0x37d4   :  { %v2958_v60 = vpack.c.bf16 %v2957_v59, %v2957_v59 }
0x37d6   :  { %4491 = vmatmul.mubr.msk.bf16.vlgmr.msra.gmra.mrb[44].mxu0 %vm899_vm1, %v2958_v60 }
0x37d7   :  { %3227 = vmatprep.mubr.bf16.mxu0 %v5224_v26  ;;  %3196 = vmatpush1.bf16.msra.mxu0 %v4913_v50  ;;  %v4925_v50 = vld [vmem:[#allocation2 + $0x300] ss:$8 sps:$4 sm:$0xff]  }
0x37d8   :  { %3197 = vmatprep.subr.bf16.mxu0 %v4918_v52  ;;  %v4930_v52 = vld [vmem:[#allocation2 + $0x314] ss:$8 sps:$4 sm:$0xff]  }
0x37db   :  { %3198 = vmatpush1.bf16.msra.mxu0 %v4916_v53  ;;  %v4928_v53 = vld [vmem:[#allocation2 + $0x310] ss:$8 sps:$4 sm:$0xff]  }
0x37dc   :  { %3403 = vmatprep.subr.bf16.mxu0 %v4927_v51  ;;  %v4939_v51 = vld [vmem:[#allocation2 + $0x344] ss:$8 sps:$4 sm:$0xff]  }
0x38a9   :  { %v3021_v61 = vpop.f32.mrb[44].mxu0 }
0x38aa   :  { %v3028_v0 = vrot.slane %v3021_v61, 7  ;;  %v3023_v1 = vpop.f32.mrb[45].mxu0 }
0x38ab   :  { %v3039_v3 = vadd.f32 %v5686_v2, %v3023_v1  ;;  %v3025_v4 = vpop.f32.mrb[46].mxu0 }
0x38ac   :  { %v3029_v5 = vmul.f32 %v5554_v63, %v3028_v0  ;;  %v3026_v6 = vpop.f32.mrb[47].mxu0 }
0x38ad   :  { %3041 = vrot.lane.b32.xlu1 %v3039_v3, %s5225_s0 }
0x38ae   :  { %v3030_v7 = vadd.f32 %v3029_v5, %v3023_v1  ;;  %v3038_v18 = vadd.f32 %v5706_v47, %v3029_v5 }
0x38b0   :  { %v3031_v10 = vadd.f32 %v3030_v7, %v5559_v8 }
0x38b2   :  { %v4492_v11 = vmul.f32 -1.442695, %v3031_v10 }
0x38b4   :  { %5095 = vpow2.f32 %v4492_v11 }
0x38be   :  { %v5096_v12 = vpop.eup %5095 }
0x38bf   :  { %v3035_v13 = vadd.f32 1.0, %v5096_v12 }
0x38c1   :  { %5097 = vrcp.f32 %v3035_v13 }
0x38cb   :  { %v5098_v14 = vpop.eup %5097 }
0x391f   :  { %v3042_v15 = vpop.permute.xlu1 %3041 }
0x3920   :  { %v3044_v16 = vmul.f32 %v5098_v14, %v3042_v15 }
0x3922   :  { %3046 = vrot.lane.b32.xlu0 %v3044_v16, %s5226_s28 }
0x3994   :  { %v3047_v19 = vpop.permute.xlu0 %3046 }
0x3995   :  { %v3049_v20 = vadd.f32 %v3047_v19, %v3038_v18 }
0x3997   :  { %5099 = vtanh.f32 %v3049_v20 }
0x39a1   :  { %v5100_v25 = vpop.eup %5099 }
0x39a2   :  { %v3051_v27 = vsub.f32 %v2957_v59, %v5100_v25 }
0x39a4   :  { %3053 = vrot.lane.b32.xlu1 %v3051_v27, %s5227_s11 }
0x3a16   :  { %v3054_v28 = vpop.permute.xlu1 %3053 }
0x3a17   :  { %v3056_v29 = vmul.f32 %v5098_v14, %v3054_v28 }
0x3a19   :  { %3058 = vrot.lane.b32.xlu0 %v3056_v29, %s5227_s11 }
0x3a8b   :  { %v3059_v17 = vpop.permute.xlu0 %3058 }
0x3a8c   :  { %v3061_v30 = vadd.f32 %v5100_v25, %v3059_v17 }
0x3a8e   :  { %v3062_v31 = vpack.c.bf16 %v3061_v30, %v3061_v30 }
0x3a90   :  { %4497 = vmatmul.mubr.msk.bf16.vlgmr.msra.gmra.mrb[56].mxu1 %vm899_vm1, %v3062_v31 }
0x3a91   :  { %3331 = vmatprep.mubr.bf16.mxu1 %v5224_v26  ;;  %3300 = vmatpush1.bf16.msra.mxu1 %v4919_v21  ;;  %v4933_v21 = vld [vmem:[#allocation2 + $0x324] ss:$8 sps:$4 sm:$0xff]  }
0x3a92   :  { %3301 = vmatprep.subr.bf16.mxu1 %v4924_v23  ;;  %v4934_v23 = vld [vmem:[#allocation2 + $0x330] ss:$8 sps:$4 sm:$0xff]  }
0x3a95   :  { %3302 = vmatpush1.bf16.msra.mxu1 %v4922_v24 }
0x3a96   :  { %3507 = vmatprep.subr.bf16.mxu1 %v4933_v21  ;;  %v4945_v21 = vld [vmem:[#allocation2 + $0x364] ss:$8 sps:$4 sm:$0xff]  }
0x3b63   :  { %v3125_v32 = vpop.f32.mrb[56].mxu1 }
0x3b64   :  { %v3132_v33 = vrot.slane %v3125_v32, 7  ;;  %v3127_v34 = vpop.f32.mrb[57].mxu1 }
0x3b65   :  { %v3143_v35 = vadd.f32 %v5686_v2, %v3127_v34  ;;  %v3129_v36 = vpop.f32.mrb[58].mxu1 }
0x3b66   :  { %v3133_v37 = vmul.f32 %v5554_v63, %v3132_v33  ;;  %v3130_v38 = vpop.f32.mrb[59].mxu1 }
0x3b67   :  { %3145 = vrot.lane.b32.xlu1 %v3143_v35, %s5225_s0 }
0x3b68   :  { %v3134_v39 = vadd.f32 %v3133_v37, %v3127_v34  ;;  %v3142_v62 = vadd.f32 %v5706_v47, %v3133_v37 }
0x3b6a   :  { %v3135_v40 = vadd.f32 %v3134_v39, %v5559_v8 }
0x3b6c   :  { %v4498_v41 = vmul.f32 -1.442695, %v3135_v40 }
0x3b6e   :  { %5101 = vpow2.f32 %v4498_v41 }
0x3b78   :  { %v5102_v42 = vpop.eup %5101 }
0x3b79   :  { %v3139_v43 = vadd.f32 1.0, %v5102_v42 }
0x3b7b   :  { %5103 = vrcp.f32 %v3139_v43 }
0x3b85   :  { %v5104_v44 = vpop.eup %5103 }
0x3bd9   :  { %v3146_v45 = vpop.permute.xlu1 %3145 }
0x3bda   :  { %v3148_v46 = vmul.f32 %v5104_v44, %v3146_v45 }
0x3bdc   :  { %3150 = vrot.lane.b32.xlu0 %v3148_v46, %s5226_s28 }
0x3c4e   :  { %v3151_v48 = vpop.permute.xlu0 %3150 }
0x3c4f   :  { %v3153_v49 = vadd.f32 %v3151_v48, %v3142_v62 }
0x3c51   :  { %5105 = vtanh.f32 %v3153_v49 }
0x3c5b   :  { %v5106_v54 = vpop.eup %5105 }
0x3c5c   :  { %v3155_v55 = vsub.f32 %v3061_v30, %v5106_v54 }
0x3c5e   :  { %3157 = vrot.lane.b32.xlu1 %v3155_v55, %s5227_s11 }
0x3cd0   :  { %v3158_v56 = vpop.permute.xlu1 %3157 }
0x3cd1   :  { %v3160_v57 = vmul.f32 %v5104_v44, %v3158_v56 }
0x3cd3   :  { %3162 = vrot.lane.b32.xlu0 %v3160_v57, %s5227_s11 }
0x3d45   :  { %v3163_v58 = vpop.permute.xlu0 %3162 }
0x3d46   :  { %v3165_v59 = vadd.f32 %v5106_v54, %v3163_v58 }
0x3d48   :  { %v3166_v60 = vpack.c.bf16 %v3165_v59, %v3165_v59 }
0x3d4a   :  { %4503 = vmatmul.mubr.msk.bf16.vlgmr.msra.gmra.mrb[48].mxu0 %vm899_vm1, %v3166_v60 }
0x3d4b   :  { %3435 = vmatprep.mubr.bf16.mxu0 %v5224_v26  ;;  %3404 = vmatpush1.bf16.msra.mxu0 %v4925_v50  ;;  %v4937_v50 = vld [vmem:[#allocation2 + $0x340] ss:$8 sps:$4 sm:$0xff]  }
0x3d4c   :  { %3405 = vmatprep.subr.bf16.mxu0 %v4930_v52  ;;  %v4942_v52 = vld [vmem:[#allocation2 + $0x354] ss:$8 sps:$4 sm:$0xff]  }
0x3d4f   :  { %3406 = vmatpush1.bf16.msra.mxu0 %v4928_v53  ;;  %v4940_v53 = vld [vmem:[#allocation2 + $0x350] ss:$8 sps:$4 sm:$0xff]  }
0x3d50   :  { %3611 = vmatprep.subr.bf16.mxu0 %v4939_v51  ;;  %v4951_v51 = vld [vmem:[#allocation2 + $0x384] ss:$8 sps:$4 sm:$0xff]  }
0x3e1d   :  { %v3229_v61 = vpop.f32.mrb[48].mxu0 }
0x3e1e   :  { %v3236_v0 = vrot.slane %v3229_v61, 7  ;;  %v3231_v1 = vpop.f32.mrb[49].mxu0 }
0x3e1f   :  { %v3247_v3 = vadd.f32 %v5686_v2, %v3231_v1  ;;  %v3233_v4 = vpop.f32.mrb[50].mxu0 }
0x3e20   :  { %v3237_v5 = vmul.f32 %v5554_v63, %v3236_v0  ;;  %v3234_v6 = vpop.f32.mrb[51].mxu0 }
0x3e21   :  { %3249 = vrot.lane.b32.xlu1 %v3247_v3, %s5225_s0 }
0x3e22   :  { %v3238_v7 = vadd.f32 %v3237_v5, %v3231_v1  ;;  %v3246_v18 = vadd.f32 %v5706_v47, %v3237_v5 }
0x3e24   :  { %v3239_v10 = vadd.f32 %v3238_v7, %v5559_v8 }
0x3e26   :  { %v4504_v11 = vmul.f32 -1.442695, %v3239_v10 }
0x3e28   :  { %5107 = vpow2.f32 %v4504_v11 }
0x3e32   :  { %v5108_v12 = vpop.eup %5107 }
0x3e33   :  { %v3243_v13 = vadd.f32 1.0, %v5108_v12 }
0x3e35   :  { %5109 = vrcp.f32 %v3243_v13 }
0x3e3f   :  { %v5110_v14 = vpop.eup %5109 }
0x3e93   :  { %v3250_v15 = vpop.permute.xlu1 %3249 }
0x3e94   :  { %v3252_v16 = vmul.f32 %v5110_v14, %v3250_v15 }
0x3e96   :  { %3254 = vrot.lane.b32.xlu0 %v3252_v16, %s5226_s28 }
0x3f08   :  { %v3255_v19 = vpop.permute.xlu0 %3254 }
0x3f09   :  { %v3257_v20 = vadd.f32 %v3255_v19, %v3246_v18 }
0x3f0b   :  { %5111 = vtanh.f32 %v3257_v20  ;;  %v4931_v20 = vld [vmem:[#allocation2 + $0x320] ss:$8 sps:$4 sm:$0xff]  }
0x3f15   :  { %v5112_v25 = vpop.eup %5111 }
0x3f16   :  { %v3259_v27 = vsub.f32 %v3165_v59, %v5112_v25 }
0x3f18   :  { %3261 = vrot.lane.b32.xlu1 %v3259_v27, %s5227_s11 }
0x3f8a   :  { %v3262_v28 = vpop.permute.xlu1 %3261 }
0x3f8b   :  { %v3264_v29 = vmul.f32 %v5110_v14, %v3262_v28 }
0x3f8d   :  { %3266 = vrot.lane.b32.xlu0 %v3264_v29, %s5227_s11 }
0x3fff   :  { %v3267_v17 = vpop.permute.xlu0 %3266 }
0x4000   :  { %v3269_v30 = vadd.f32 %v5112_v25, %v3267_v17 }
0x4002   :  { %v3270_v31 = vpack.c.bf16 %v3269_v30, %v3269_v30 }
0x4004   :  { %4509 = vmatmul.mubr.msk.bf16.vlgmr.msra.gmra.mrb[60].mxu1 %vm899_vm1, %v3270_v31 }
0x4005   :  { %3539 = vmatprep.mubr.bf16.mxu1 %v5224_v26  ;;  %3508 = vmatpush1.bf16.msra.mxu1 %v4931_v20  ;;  %v4943_v20 = vld [vmem:[#allocation2 + $0x360] ss:$8 sps:$4 sm:$0xff]  }
0x4006   :  { %3509 = vmatprep.subr.bf16.mxu1 %v4936_v22  ;;  %v4948_v22 = vld [vmem:[#allocation2 + $0x374] ss:$8 sps:$4 sm:$0xff]  }
0x4009   :  { %3510 = vmatpush1.bf16.msra.mxu1 %v4934_v23  ;;  %v4946_v23 = vld [vmem:[#allocation2 + $0x370] ss:$8 sps:$4 sm:$0xff]  }
0x400a   :  { %3715 = vmatprep.subr.bf16.mxu1 %v4945_v21  ;;  %v4957_v21 = vld [vmem:[#allocation2 + $0x3a4] ss:$8 sps:$4 sm:$0xff]  }
0x40d7   :  { %v3333_v32 = vpop.f32.mrb[60].mxu1 }
0x40d8   :  { %v3340_v33 = vrot.slane %v3333_v32, 7  ;;  %v3335_v34 = vpop.f32.mrb[61].mxu1 }
0x40d9   :  { %v3351_v35 = vadd.f32 %v5686_v2, %v3335_v34  ;;  %v3337_v36 = vpop.f32.mrb[62].mxu1 }
0x40da   :  { %v3341_v37 = vmul.f32 %v5554_v63, %v3340_v33  ;;  %v3338_v38 = vpop.f32.mrb[63].mxu1 }
0x40db   :  { %3353 = vrot.lane.b32.xlu1 %v3351_v35, %s5225_s0 }
0x40dc   :  { %v3342_v39 = vadd.f32 %v3341_v37, %v3335_v34  ;;  %v3350_v62 = vadd.f32 %v5706_v47, %v3341_v37  ;;  %v5826_v34 = vld [vmem:[%s5931_s6] sm:$0xff] }
0x40de   :  { %v3343_v40 = vadd.f32 %v3342_v39, %v5559_v8 }
0x40e0   :  { %v4510_v41 = vmul.f32 -1.442695, %v3343_v40 }
0x40e2   :  { %5113 = vpow2.f32 %v4510_v41 }
0x40ec   :  { %v5114_v42 = vpop.eup %5113 }
0x40ed   :  { %v3347_v43 = vadd.f32 1.0, %v5114_v42 }
0x40ef   :  { %5115 = vrcp.f32 %v3347_v43 }
0x40f9   :  { %v5116_v44 = vpop.eup %5115 }
0x414d   :  { %v3354_v45 = vpop.permute.xlu1 %3353 }
0x414e   :  { %v3356_v46 = vmul.f32 %v5116_v44, %v3354_v45 }
0x4150   :  { %3358 = vrot.lane.b32.xlu0 %v3356_v46, %s5226_s28 }
0x41c2   :  { %v3359_v48 = vpop.permute.xlu0 %3358 }
0x41c3   :  { %v3361_v49 = vadd.f32 %v3359_v48, %v3350_v62 }
0x41c5   :  { %5117 = vtanh.f32 %v3361_v49 }
0x41cf   :  { %v5118_v54 = vpop.eup %5117 }
0x41d0   :  { %v3363_v55 = vsub.f32 %v3269_v30, %v5118_v54 }
0x41d2   :  { %3365 = vrot.lane.b32.xlu1 %v3363_v55, %s5227_s11 }
0x4244   :  { %v3366_v56 = vpop.permute.xlu1 %3365 }
0x4245   :  { %v3368_v57 = vmul.f32 %v5116_v44, %v3366_v56 }
0x4247   :  { %3370 = vrot.lane.b32.xlu0 %v3368_v57, %s5227_s11 }
0x42b9   :  { %v3371_v58 = vpop.permute.xlu0 %3370 }
0x42ba   :  { %v3373_v59 = vadd.f32 %v5118_v54, %v3371_v58 }
0x42bc   :  { %v3374_v60 = vpack.c.bf16 %v3373_v59, %v3373_v59 }
0x42be   :  { %4515 = vmatmul.mubr.msk.bf16.vlgmr.msra.gmra.mrb[52].mxu0 %vm899_vm1, %v3374_v60 }
0x42bf   :  { %3643 = vmatprep.mubr.bf16.mxu0 %v5224_v26  ;;  %3612 = vmatpush1.bf16.msra.mxu0 %v4937_v50  ;;  %v4949_v50 = vld [vmem:[#allocation2 + $0x380] ss:$8 sps:$4 sm:$0xff]  }
0x42c0   :  { %3613 = vmatprep.subr.bf16.mxu0 %v4942_v52  ;;  %v4954_v52 = vld [vmem:[#allocation2 + $0x394] ss:$8 sps:$4 sm:$0xff]  }
0x42c3   :  { %3614 = vmatpush1.bf16.msra.mxu0 %v4940_v53  ;;  %v4952_v53 = vld [vmem:[#allocation2 + $0x390] ss:$8 sps:$4 sm:$0xff]  }
0x42c4   :  { %3819 = vmatprep.subr.bf16.mxu0 %v4951_v51  ;;  %v4966_v51 = vld [vmem:[#allocation2 + $0x3d4] ss:$8 sps:$4 sm:$0xff]  }
0x4391   :  { %v3437_v61 = vpop.f32.mrb[52].mxu0 }
0x4392   :  { %v3444_v0 = vrot.slane %v3437_v61, 7  ;;  %v3439_v1 = vpop.f32.mrb[53].mxu0 }
0x4393   :  { %v3455_v3 = vadd.f32 %v5686_v2, %v3439_v1  ;;  %v3441_v4 = vpop.f32.mrb[54].mxu0 }
0x4394   :  { %v3445_v5 = vmul.f32 %v5554_v63, %v3444_v0  ;;  %v3442_v6 = vpop.f32.mrb[55].mxu0 }
0x4395   :  { %3457 = vrot.lane.b32.xlu1 %v3455_v3, %s5225_s0 }
0x4396   :  { %v3446_v7 = vadd.f32 %v3445_v5, %v3439_v1  ;;  %v3454_v2 = vadd.f32 %v5706_v47, %v3445_v5 }
0x4398   :  { %v3447_v10 = vadd.f32 %v3446_v7, %v5559_v8 }
0x439a   :  { %v4516_v11 = vmul.f32 -1.442695, %v3447_v10 }
0x439c   :  { %5119 = vpow2.f32 %v4516_v11 }
0x43a6   :  { %v5120_v12 = vpop.eup %5119 }
0x43a7   :  { %v3451_v13 = vadd.f32 1.0, %v5120_v12 }
0x43a9   :  { %5121 = vrcp.f32 %v3451_v13 }
0x43b3   :  { %v5122_v14 = vpop.eup %5121 }
0x4407   :  { %v3458_v15 = vpop.permute.xlu1 %3457 }
0x4408   :  { %v3460_v16 = vmul.f32 %v5122_v14, %v3458_v15 }
0x440a   :  { %3462 = vrot.lane.b32.xlu0 %v3460_v16, %s5226_s28  ;;  %v5846_v16 = vld [vmem:[%s5930_s5] sm:$0xff] }
0x447c   :  { %v3463_v18 = vpop.permute.xlu0 %3462 }
0x447d   :  { %v3465_v19 = vadd.f32 %v3463_v18, %v3454_v2 }
0x447f   :  { %5123 = vtanh.f32 %v3465_v19 }
0x4489   :  { %v5124_v24 = vpop.eup %5123 }
0x448a   :  { %v3467_v25 = vsub.f32 %v3373_v59, %v5124_v24 }
0x448c   :  { %3469 = vrot.lane.b32.xlu1 %v3467_v25, %s5227_s11 }
0x44fe   :  { %v3470_v27 = vpop.permute.xlu1 %3469 }
0x44ff   :  { %v3472_v28 = vmul.f32 %v5122_v14, %v3470_v27 }
0x4501   :  { %3474 = vrot.lane.b32.xlu0 %v3472_v28, %s5227_s11 }
0x4573   :  { %v3475_v29 = vpop.permute.xlu0 %3474 }
0x4574   :  { %v3477_v17 = vadd.f32 %v5124_v24, %v3475_v29 }
0x4576   :  { %v3478_v30 = vpack.c.bf16 %v3477_v17, %v3477_v17 }
0x4578   :  { %4521 = vmatmul.mubr.msk.bf16.vlgmr.msra.gmra.mrb[64].mxu1 %vm899_vm1, %v3478_v30 }
0x4579   :  { %3747 = vmatprep.mubr.bf16.mxu1 %v5224_v26  ;;  %3716 = vmatpush1.bf16.msra.mxu1 %v4943_v20  ;;  %v4955_v20 = vld [vmem:[#allocation2 + $0x3a0] ss:$8 sps:$4 sm:$0xff]  }
0x457a   :  { %3717 = vmatprep.subr.bf16.mxu1 %v4948_v22  ;;  %v4960_v22 = vld [vmem:[#allocation2 + $0x3b4] ss:$8 sps:$4 sm:$0xff]  }
0x457d   :  { %3718 = vmatpush1.bf16.msra.mxu1 %v4946_v23  ;;  %v4958_v23 = vld [vmem:[#allocation2 + $0x3b0] ss:$8 sps:$4 sm:$0xff]  }
0x457e   :  { %3923 = vmatprep.subr.bf16.mxu1 %v4957_v21  ;;  %v4972_v21 = vld [vmem:[#allocation2 + $0x3f4] ss:$8 sps:$4 sm:$0xff]  }
0x464b   :  { %v3541_v31 = vpop.f32.mrb[64].mxu1 }
0x464c   :  { %v3548_v32 = vrot.slane %v3541_v31, 7  ;;  %v3543_v33 = vpop.f32.mrb[65].mxu1 }
0x464d   :  { %v3559_v35 = vadd.f32 %v5826_v34, %v3543_v33  ;;  %v3545_v36 = vpop.f32.mrb[66].mxu1 }
0x464e   :  { %v3549_v37 = vmul.f32 %v5554_v63, %v3548_v32  ;;  %v3546_v38 = vpop.f32.mrb[67].mxu1 }
0x464f   :  { %3561 = vrot.lane.b32.xlu1 %v3559_v35, %s5225_s0 }
0x4650   :  { %v3550_v39 = vadd.f32 %v3549_v37, %v3543_v33  ;;  %v3558_v62 = vadd.f32 %v5706_v47, %v3549_v37 }
0x4652   :  { %v3551_v40 = vadd.f32 %v3550_v39, %v5559_v8 }
0x4654   :  { %v4522_v41 = vmul.f32 -1.442695, %v3551_v40 }
0x4656   :  { %5125 = vpow2.f32 %v4522_v41 }
0x4660   :  { %v5126_v42 = vpop.eup %5125 }
0x4661   :  { %v3555_v43 = vadd.f32 1.0, %v5126_v42 }
0x4663   :  { %5127 = vrcp.f32 %v3555_v43 }
0x466d   :  { %v5128_v44 = vpop.eup %5127 }
0x46c1   :  { %v3562_v45 = vpop.permute.xlu1 %3561 }
0x46c2   :  { %v3564_v46 = vmul.f32 %v5128_v44, %v3562_v45 }
0x46c4   :  { %3566 = vrot.lane.b32.xlu0 %v3564_v46, %s5226_s28 }
0x4736   :  { %v3567_v48 = vpop.permute.xlu0 %3566 }
0x4737   :  { %v3569_v49 = vadd.f32 %v3567_v48, %v3558_v62 }
0x4739   :  { %5129 = vtanh.f32 %v3569_v49 }
0x4743   :  { %v5130_v54 = vpop.eup %5129 }
0x4744   :  { %v3571_v55 = vsub.f32 %v3477_v17, %v5130_v54 }
0x4746   :  { %3573 = vrot.lane.b32.xlu1 %v3571_v55, %s5227_s11 }
0x47b8   :  { %v3574_v56 = vpop.permute.xlu1 %3573 }
0x47b9   :  { %v3576_v57 = vmul.f32 %v5128_v44, %v3574_v56 }
0x47bb   :  { %3578 = vrot.lane.b32.xlu0 %v3576_v57, %s5227_s11 }
0x482d   :  { %v3579_v47 = vpop.permute.xlu0 %3578 }
0x482e   :  { %v3581_v58 = vadd.f32 %v5130_v54, %v3579_v47 }
0x4830   :  { %v3582_v59 = vpack.c.bf16 %v3581_v58, %v3581_v58 }
0x4832   :  { %4527 = vmatmul.mubr.msk.bf16.vlgmr.msra.gmra.mrb[56].mxu0 %vm899_vm1, %v3582_v59 }
0x4833   :  { %3851 = vmatprep.mubr.bf16.mxu0 %v5224_v26  ;;  %3820 = vmatpush1.bf16.msra.mxu0 %v4949_v50  ;;  %v4963_v50 = vld [vmem:[#allocation2 + $0x3c4] ss:$8 sps:$4 sm:$0xff]  }
0x4834   :  { %3821 = vmatprep.subr.bf16.mxu0 %v4954_v52  ;;  %v4964_v52 = vld [vmem:[#allocation2 + $0x3d0] ss:$8 sps:$4 sm:$0xff]  }
0x4837   :  { %3822 = vmatpush1.bf16.msra.mxu0 %v4952_v53 }
0x4838   :  { %4027 = vmatprep.subr.bf16.mxu0 %v4963_v50 }
0x4905   :  { %v3645_v60 = vpop.f32.mrb[56].mxu0 }
0x4906   :  { %v3652_v61 = vrot.slane %v3645_v60, 7  ;;  %v3647_v0 = vpop.f32.mrb[57].mxu0 }
0x4907   :  { %v3663_v1 = vadd.f32 %v5826_v34, %v3647_v0  ;;  %v3649_v3 = vpop.f32.mrb[58].mxu0 }
0x4908   :  { %v3653_v4 = vmul.f32 %v5554_v63, %v3652_v61  ;;  %v3650_v5 = vpop.f32.mrb[59].mxu0 }
0x4909   :  { %3665 = vrot.lane.b32.xlu1 %v3663_v1, %s5225_s0 }
0x490a   :  { %v3654_v6 = vadd.f32 %v3653_v4, %v3647_v0  ;;  %v3662_v2 = vadd.f32 %v5846_v16, %v3653_v4 }
0x490c   :  { %v3655_v7 = vadd.f32 %v3654_v6, %v5559_v8 }
0x490e   :  { %v4528_v10 = vmul.f32 -1.442695, %v3655_v7 }
0x4910   :  { %5131 = vpow2.f32 %v4528_v10 }
0x491a   :  { %v5132_v11 = vpop.eup %5131 }
0x491b   :  { %v3659_v12 = vadd.f32 1.0, %v5132_v11 }
0x491d   :  { %5133 = vrcp.f32 %v3659_v12 }
0x4927   :  { %v5134_v13 = vpop.eup %5133 }
0x497b   :  { %v3666_v14 = vpop.permute.xlu1 %3665 }
0x497c   :  { %v3668_v15 = vmul.f32 %v5134_v13, %v3666_v14 }
0x497e   :  { %3670 = vrot.lane.b32.xlu0 %v3668_v15, %s5226_s28 }
0x49f0   :  { %v3671_v18 = vpop.permute.xlu0 %3670 }
0x49f1   :  { %v3673_v19 = vadd.f32 %v3671_v18, %v3662_v2 }
0x49f3   :  { %5135 = vtanh.f32 %v3673_v19 }
0x49fd   :  { %v5136_v24 = vpop.eup %5135 }
0x49fe   :  { %v3675_v25 = vsub.f32 %v3581_v58, %v5136_v24 }
0x4a00   :  { %3677 = vrot.lane.b32.xlu1 %v3675_v25, %s5227_s11 }
0x4a72   :  { %v3678_v27 = vpop.permute.xlu1 %3677 }
0x4a73   :  { %v3680_v28 = vmul.f32 %v5134_v13, %v3678_v27 }
0x4a75   :  { %3682 = vrot.lane.b32.xlu0 %v3680_v28, %s5227_s11 }
0x4ae7   :  { %v3683_v29 = vpop.permute.xlu0 %3682 }
0x4ae8   :  { %v3685_v17 = vadd.f32 %v5136_v24, %v3683_v29 }
0x4aea   :  { %v3686_v30 = vpack.c.bf16 %v3685_v17, %v3685_v17 }
0x4aec   :  { %4533 = vmatmul.mubr.msk.bf16.vlgmr.msra.gmra.mrb[68].mxu1 %vm899_vm1, %v3686_v30 }
0x4aed   :  { %3955 = vmatprep.mubr.bf16.mxu1 %v5224_v26  ;;  %3924 = vmatpush1.bf16.msra.mxu1 %v4955_v20  ;;  %v4969_v20 = vld [vmem:[#allocation2 + $0x3e4] ss:$8 sps:$4 sm:$0xff]  }
0x4aee   :  { %3925 = vmatprep.subr.bf16.mxu1 %v4960_v22  ;;  %v4970_v22 = vld [vmem:[#allocation2 + $0x3f0] ss:$8 sps:$4 sm:$0xff]  }
0x4af1   :  { %3926 = vmatpush1.bf16.msra.mxu1 %v4958_v23 }
0x4af2   :  { %4131 = vmatprep.subr.bf16.mxu1 %v4969_v20 }
0x4bbf   :  { %v3749_v31 = vpop.f32.mrb[68].mxu1 }
0x4bc0   :  { %v3756_v32 = vrot.slane %v3749_v31, 7  ;;  %v3751_v33 = vpop.f32.mrb[69].mxu1 }
0x4bc1   :  { %v3767_v35 = vadd.f32 %v5826_v34, %v3751_v33  ;;  %v3753_v36 = vpop.f32.mrb[70].mxu1 }
0x4bc2   :  { %v3757_v37 = vmul.f32 %v5554_v63, %v3756_v32  ;;  %v3754_v38 = vpop.f32.mrb[71].mxu1 }
0x4bc3   :  { %3769 = vrot.lane.b32.xlu1 %v3767_v35, %s5225_s0 }
0x4bc4   :  { %v3758_v39 = vadd.f32 %v3757_v37, %v3751_v33  ;;  %v3766_v62 = vadd.f32 %v5846_v16, %v3757_v37 }
0x4bc6   :  { %v3759_v40 = vadd.f32 %v3758_v39, %v5559_v8 }
0x4bc8   :  { %v4534_v41 = vmul.f32 -1.442695, %v3759_v40 }
0x4bca   :  { %5137 = vpow2.f32 %v4534_v41 }
0x4bd4   :  { %v5138_v42 = vpop.eup %5137 }
0x4bd5   :  { %v3763_v43 = vadd.f32 1.0, %v5138_v42 }
0x4bd7   :  { %5139 = vrcp.f32 %v3763_v43 }
0x4be1   :  { %v5140_v44 = vpop.eup %5139 }
0x4c35   :  { %v3770_v45 = vpop.permute.xlu1 %3769 }
0x4c36   :  { %v3772_v46 = vmul.f32 %v5140_v44, %v3770_v45 }
0x4c38   :  { %3774 = vrot.lane.b32.xlu0 %v3772_v46, %s5226_s28 }
0x4caa   :  { %v3775_v48 = vpop.permute.xlu0 %3774 }
0x4cab   :  { %v3777_v49 = vadd.f32 %v3775_v48, %v3766_v62 }
0x4cad   :  { %5141 = vtanh.f32 %v3777_v49  ;;  %v4961_v49 = vld [vmem:[#allocation2 + $0x3c0] ss:$8 sps:$4 sm:$0xff]  }
0x4cb7   :  { %v5142_v54 = vpop.eup %5141 }
0x4cb8   :  { %v3779_v55 = vsub.f32 %v3685_v17, %v5142_v54 }
0x4cba   :  { %3781 = vrot.lane.b32.xlu1 %v3779_v55, %s5227_s11 }
0x4d2c   :  { %v3782_v56 = vpop.permute.xlu1 %3781 }
0x4d2d   :  { %v3784_v57 = vmul.f32 %v5140_v44, %v3782_v56 }
0x4d2f   :  { %3786 = vrot.lane.b32.xlu0 %v3784_v57, %s5227_s11 }
0x4da1   :  { %v3787_v47 = vpop.permute.xlu0 %3786 }
0x4da2   :  { %v3789_v58 = vadd.f32 %v5142_v54, %v3787_v47 }
0x4da4   :  { %v3790_v59 = vpack.c.bf16 %v3789_v58, %v3789_v58 }
0x4da6   :  { %4539 = vmatmul.mubr.msk.bf16.vlgmr.msra.gmra.mrb[60].mxu0 %vm899_vm1, %v3790_v59 }
0x4da7   :  { %4059 = vmatprep.mubr.bf16.mxu0 %v5224_v26  ;;  %4028 = vmatpush1.bf16.msra.mxu0 %v4961_v49 }
0x4da8   :  { %4029 = vmatprep.subr.bf16.mxu0 %v4966_v51 }
0x4dab   :  { %4030 = vmatpush1.bf16.msra.mxu0 %v4964_v52 }
0x4dac   :  { %4682 = vmatprep.subr.bf16.mxu0 %v5222_v9 }
0x4e79   :  { %v3853_v60 = vpop.f32.mrb[60].mxu0 }
0x4e7a   :  { %v3860_v61 = vrot.slane %v3853_v60, 7  ;;  %v3855_v0 = vpop.f32.mrb[61].mxu0 }
0x4e7b   :  { %v3871_v1 = vadd.f32 %v5826_v34, %v3855_v0  ;;  %v3857_v3 = vpop.f32.mrb[62].mxu0 }
0x4e7c   :  { %v3861_v4 = vmul.f32 %v5554_v63, %v3860_v61  ;;  %v3858_v5 = vpop.f32.mrb[63].mxu0 }
0x4e7d   :  { %3873 = vrot.lane.b32.xlu1 %v3871_v1, %s5225_s0 }
0x4e7e   :  { %v3862_v6 = vadd.f32 %v3861_v4, %v3855_v0  ;;  %v3870_v2 = vadd.f32 %v5846_v16, %v3861_v4 }
0x4e80   :  { %v3863_v7 = vadd.f32 %v3862_v6, %v5559_v8 }
0x4e82   :  { %v4540_v10 = vmul.f32 -1.442695, %v3863_v7 }
0x4e84   :  { %5143 = vpow2.f32 %v4540_v10 }
0x4e8e   :  { %v5144_v11 = vpop.eup %5143 }
0x4e8f   :  { %v3867_v12 = vadd.f32 1.0, %v5144_v11 }
0x4e91   :  { %5145 = vrcp.f32 %v3867_v12 }
0x4e9b   :  { %v5146_v13 = vpop.eup %5145 }
0x4eef   :  { %v3874_v14 = vpop.permute.xlu1 %3873 }
0x4ef0   :  { %v3876_v15 = vmul.f32 %v5146_v13, %v3874_v14 }
0x4ef2   :  { %3878 = vrot.lane.b32.xlu0 %v3876_v15, %s5226_s28 }
0x4f64   :  { %v3879_v18 = vpop.permute.xlu0 %3878 }
0x4f65   :  { %v3881_v19 = vadd.f32 %v3879_v18, %v3870_v2 }
0x4f67   :  { %5147 = vtanh.f32 %v3881_v19  ;;  %v4967_v19 = vld [vmem:[#allocation2 + $0x3e0] ss:$8 sps:$4 sm:$0xff]  }
0x4f71   :  { %v5148_v24 = vpop.eup %5147 }
0x4f72   :  { %v3883_v25 = vsub.f32 %v3789_v58, %v5148_v24 }
0x4f74   :  { %3885 = vrot.lane.b32.xlu1 %v3883_v25, %s5227_s11 }
0x4fe6   :  { %v3886_v27 = vpop.permute.xlu1 %3885 }
0x4fe7   :  { %v3888_v28 = vmul.f32 %v5146_v13, %v3886_v27 }
0x4fe9   :  { %3890 = vrot.lane.b32.xlu0 %v3888_v28, %s5227_s11 }
0x505b   :  { %v3891_v29 = vpop.permute.xlu0 %3890 }
0x505c   :  { %v3893_v17 = vadd.f32 %v5148_v24, %v3891_v29 }
0x505e   :  { %v3894_v30 = vpack.c.bf16 %v3893_v17, %v3893_v17 }
0x5060   :  { %4545 = vmatmul.mubr.msk.bf16.vlgmr.msra.gmra.mrb[72].mxu1 %vm899_vm1, %v3894_v30 }
0x5061   :  { %4163 = vmatprep.mubr.bf16.mxu1 %v5224_v26  ;;  %4132 = vmatpush1.bf16.msra.mxu1 %v4967_v19 }
0x5062   :  { %4133 = vmatprep.subr.bf16.mxu1 %v4972_v21 }
0x5065   :  { %4134 = vmatpush1.bf16.msra.mxu1 %v4970_v22 }
0x5133   :  { %v3957_v31 = vpop.f32.mrb[72].mxu1 }
0x5134   :  { %v3964_v32 = vrot.slane %v3957_v31, 7  ;;  %v3959_v33 = vpop.f32.mrb[73].mxu1 }
0x5135   :  { %v3975_v35 = vadd.f32 %v5826_v34, %v3959_v33  ;;  %v3961_v36 = vpop.f32.mrb[74].mxu1 }
0x5136   :  { %v3965_v37 = vmul.f32 %v5554_v63, %v3964_v32  ;;  %v3962_v38 = vpop.f32.mrb[75].mxu1 }
0x5137   :  { %3977 = vrot.lane.b32.xlu1 %v3975_v35, %s5225_s0 }
0x5138   :  { %v3966_v39 = vadd.f32 %v3965_v37, %v3959_v33  ;;  %v3974_v46 = vadd.f32 %v5846_v16, %v3965_v37 }
0x513a   :  { %v3967_v40 = vadd.f32 %v3966_v39, %v5559_v8 }
0x513c   :  { %v4546_v41 = vmul.f32 -1.442695, %v3967_v40 }
0x513e   :  { %5149 = vpow2.f32 %v4546_v41 }
0x5148   :  { %v5150_v42 = vpop.eup %5149 }
0x5149   :  { %v3971_v43 = vadd.f32 1.0, %v5150_v42 }
0x514b   :  { %5151 = vrcp.f32 %v3971_v43 }
0x5155   :  { %v5152_v26 = vpop.eup %5151 }
0x51a9   :  { %v3978_v44 = vpop.permute.xlu1 %3977 }
0x51aa   :  { %v3980_v45 = vmul.f32 %v5152_v26, %v3978_v44 }
0x51ac   :  { %3982 = vrot.lane.b32.xlu0 %v3980_v45, %s5226_s28 }
0x521e   :  { %v3983_v62 = vpop.permute.xlu0 %3982 }
0x521f   :  { %v3985_v48 = vadd.f32 %v3983_v62, %v3974_v46  ;;  %v4973_v46 = vld [vmem:[%s5933_s8] sm:$0xff]  }
0x5221   :  { %5153 = vtanh.f32 %v3985_v48  ;;  %v4974_v48 = vld [vmem:[%s5933_s8 + $0x8] sm:$0xff]   ;;  %s5193_s8 = scalar_lea.vmem %s4277_s24, 128 }
0x5222   :  { %p5194_p8 = scmp.ne.s32.totalorder %s4277_s24, %s5193_s8  ;;  %p5199_p10 = scmp.lt.s32.totalorder %s5193_s8, %s5193_s8 }
0x5224   :  { %p5200_p11 = por %p5199_p10, %p5198_p9 }
0x5226   :  { %p5201_p12 = pnand %p5200_p11, %p5194_p8 }
0x522b   :  { %v5154_v53 = vpop.eup %5153 }
0x522c   :  { %v3987_v54 = vsub.f32 %v3893_v17, %v5154_v53 }
0x522e   :  { %3989 = vrot.lane.b32.xlu1 %v3987_v54, %s5227_s11 }
0x52a0   :  { %v3990_v55 = vpop.permute.xlu1 %3989 }
0x52a1   :  { %v3992_v56 = vmul.f32 %v5152_v26, %v3990_v55 }
0x52a3   :  { %3994 = vrot.lane.b32.xlu0 %v3992_v56, %s5227_s11 }
0x5315   :  { %v3995_v57 = vpop.permute.xlu0 %3994 }
0x5316   :  { %v3997_v47 = vadd.f32 %v5154_v53, %v3995_v57 }
0x5318   :  { %v3998_v58 = vpack.c.bf16 %v3997_v47, %v3997_v47 }
0x531a   :  { %4551 = vmatmul.mubr.msk.bf16.vlgmr.msra.gmra.mrb[64].mxu0 %vm899_vm1, %v3998_v58 }
0x531b   :  { %4686 = vmatprep.mubr.msk.bf16.mxu0 %vm5223_vm0, %v5222_v9  ;;  %4683 = vmatpush3.bf16.msra.mxu0 %v4973_v46 }
0x531c   :  { %4684 = vmatprep.subr.bf16.mxu0 %v5222_v9  ;;  %v4212_v9 = vld [vmem:[%s5934_s9] sm:$0xff] }
0x531f   :  { %4685 = vmatpush3.bf16.msra.mxu0 %v4974_v48 }
0x53ed   :  { %v4061_v59 = vpop.f32.mrb[64].mxu0 }
0x53ee   :  { %v4068_v60 = vrot.slane %v4061_v59, 7  ;;  %v4063_v61 = vpop.f32.mrb[65].mxu0 }
0x53ef   :  { %v4079_v0 = vadd.f32 %v5826_v34, %v4063_v61  ;;  %v4065_v1 = vpop.f32.mrb[66].mxu0 }
0x53f0   :  { %v4069_v3 = vmul.f32 %v5554_v63, %v4068_v60  ;;  %v4066_v4 = vpop.f32.mrb[67].mxu0 }
0x53f1   :  { %4081 = vrot.lane.b32.xlu1 %v4079_v0, %s5225_s0 }
0x53f2   :  { %v4070_v5 = vadd.f32 %v4069_v3, %v4063_v61  ;;  %v4078_v15 = vadd.f32 %v5846_v16, %v4069_v3 }
0x53f4   :  { %v4071_v6 = vadd.f32 %v4070_v5, %v5559_v8 }
0x53f6   :  { %v4552_v7 = vmul.f32 -1.442695, %v4071_v6 }
0x53f8   :  { %5155 = vpow2.f32 %v4552_v7 }
0x5402   :  { %v5156_v10 = vpop.eup %5155 }
0x5403   :  { %v4075_v11 = vadd.f32 1.0, %v5156_v10 }
0x5405   :  { %5157 = vrcp.f32 %v4075_v11 }
0x540f   :  { %v5158_v12 = vpop.eup %5157 }
0x5463   :  { %v4082_v13 = vpop.permute.xlu1 %4081 }
0x5464   :  { %v4084_v14 = vmul.f32 %v5158_v12, %v4082_v13 }
0x5466   :  { %4086 = vrot.lane.b32.xlu0 %v4084_v14, %s5226_s28 }
0x54d8   :  { %v4087_v2 = vpop.permute.xlu0 %4086 }
0x54d9   :  { %v4089_v18 = vadd.f32 %v4087_v2, %v4078_v15 }
0x54db   :  { %5159 = vtanh.f32 %v4089_v18 }
0x54e5   :  { %v5160_v23 = vpop.eup %5159 }
0x54e6   :  { %v4091_v24 = vsub.f32 %v3997_v47, %v5160_v23 }
0x54e8   :  { %4093 = vrot.lane.b32.xlu1 %v4091_v24, %s5227_s11 }
0x555a   :  { %v4094_v25 = vpop.permute.xlu1 %4093 }
0x555b   :  { %v4096_v27 = vmul.f32 %v5158_v12, %v4094_v25 }
0x555d   :  { %4098 = vrot.lane.b32.xlu0 %v4096_v27, %s5227_s11 }
0x55cf   :  { %v4099_v28 = vpop.permute.xlu0 %4098 }
0x55d0   :  { %v4101_v29 = vadd.f32 %v5160_v23, %v4099_v28 }
0x55d2   :  { %v4102_v17 = vpack.c.bf16 %v4101_v29, %v4101_v29 }
0x55d4   :  { %4557 = vmatmul.mubr.msk.bf16.vlgmr.msra.gmra.mrb[76].mxu1 %vm899_vm1, %v4102_v17 }
0x56a7   :  { %v4165_v30 = vpop.f32.mrb[76].mxu1 }
0x56a8   :  { %v4172_v31 = vrot.slane %v4165_v30, 7  ;;  %v4167_v32 = vpop.f32.mrb[77].mxu1 }
0x56a9   :  { %v4183_v33 = vadd.f32 %v5826_v34, %v4167_v32  ;;  %v4169_v35 = vpop.f32.mrb[78].mxu1 }
0x56aa   :  { %v4173_v36 = vmul.f32 %v5554_v63, %v4172_v31  ;;  %v4170_v37 = vpop.f32.mrb[79].mxu1 }
0x56ab   :  { %4185 = vrot.lane.b32.xlu1 %v4183_v33, %s5225_s0 }
0x56ac   :  { %v4174_v38 = vadd.f32 %v4173_v36, %v4167_v32  ;;  %v4182_v34 = vadd.f32 %v5846_v16, %v4173_v36 }
0x56ae   :  { %v4175_v39 = vadd.f32 %v4174_v38, %v5559_v8 }
0x56b0   :  { %v4558_v40 = vmul.f32 -1.442695, %v4175_v39 }
0x56b2   :  { %5161 = vpow2.f32 %v4558_v40 }
0x56bc   :  { %v5162_v41 = vpop.eup %5161 }
0x56bd   :  { %v4179_v42 = vadd.f32 1.0, %v5162_v41 }
0x56bf   :  { %5163 = vrcp.f32 %v4179_v42 }
0x56c9   :  { %v5164_v43 = vpop.eup %5163 }
0x571d   :  { %v4186_v26 = vpop.permute.xlu1 %4185 }
0x571e   :  { %v4188_v44 = vmul.f32 %v5164_v43, %v4186_v26 }
0x5720   :  { %4190 = vrot.lane.b32.xlu0 %v4188_v44, %s5226_s28 }
0x5792   :  { %v4191_v45 = vpop.permute.xlu0 %4190 }
0x5793   :  { %v4193_v63 = vadd.f32 %v4191_v45, %v4182_v34 }
0x5795   :  { %5165 = vtanh.f32 %v4193_v63 }
0x579f   :  { %v5166_v8 = vpop.eup %5165 }
0x57a0   :  { %v4195_v62 = vsub.f32 %v4101_v29, %v5166_v8 }
0x57a2   :  { %4197 = vrot.lane.b32.xlu1 %v4195_v62, %s5227_s11 }
0x5814   :  { %v4198_v16 = vpop.permute.xlu1 %4197 }
0x5815   :  { %v4200_v49 = vmul.f32 %v5164_v43, %v4198_v16 }
0x5817   :  { %4202 = vrot.lane.b32.xlu0 %v4200_v49, %s5227_s11 }
0x5889   :  { %v4203_v50 = vpop.permute.xlu0 %4202 }
0x588a   :  { %v4205_v51 = vadd.f32 %v5166_v8, %v4203_v50 }
0x588c   :  { %v4206_v52 = vmax.f32 %v4205_v51, 0.0 }
0x588e   :  { %v4207_v53 = vpack.c.bf16 %v4206_v52, %v4206_v52 }
0x5890   :  { %4687 = vmatmul.mubr.msk.bf16.vlgmr.msra.gmra.mrb[68].mxu0 %vm899_vm1, %v4207_v53 }
0x5963   :  { %v4262_v54 = vpop.f32.mrb[68].mxu0 }
0x5964   :  { %v4263_v55 = vadd.f32 %v4262_v54, %v4212_v9  ;;  %v4688_v56 = vpop.f32.mrb[69].mxu0 }
0x5965   :  { %v4265_v57 = vpop.f32.mrb[70].mxu0 }
0x5966   :  { %v4689_v47 = vpop.f32.mrb[71].mxu0  ;;  %4269 = vst.msk [vmem:[#allocation5] sm:$0xff] %vm4268_vm3, %v4263_v55 }
0x5967   :  { %5204 = shalt.err (!%p5201_p12)
}
0x5968   :  { %s5205_s9 = scalar_lea.hbm %s5935_s10, 128 }
0x5969   :  { %p5206_p13 = scmp.ne.s32.totalorder %s5935_s10, %s5205_s9  ;;  %p5209_p0 = scmp.lt.u32.totalorder %s5205_s9, %s5935_s10 }
0x596b   :  { %p5211_p1 = pnand %p5209_p0, %p5206_p13 }
0x596d   :  { %5214 = shalt.err (!%p5211_p1)
}
0x596e   :  { %4279 = dma.vmem_to_hbm [thread:$0]  %s4277_s24, 128, %s5935_s10, [#allocation4]  }
0x596f   :  { %5217 = dma.done.wait [#allocation4], 128  }
0x5970   :  { %5218 = vsyncadd [#allocation4], 4294967168 }
0x5971   :  { %4283 = vsyncpa [#allocation3], 1 }
0x5972   :  { %4284 = vsyncpa [#allocation4], 1 }

</bundles_post_ra>
